<compile_context>
chip_gen: v5e
topology: v5e:2x2
jax: 0.10.0
libtpu: 0.0.40
codegen_flags: <defaults>
</compile_context>

<pallas_src>
import functools

import jax
import jax.numpy as jnp
from jax.experimental import pallas as pl
from jax.experimental.pallas import tpu as pltpu

BN_EPS = 1e-5


def _round_up(x, m):
    return ((x + m - 1) // m) * m


def _chip_tiling():
    """Pick (tm_max, vmem_limit_bytes) from the per-core VMEM capacity.

    v5e/v6e have 128 MiB VMEM per TensorCore -> big tiles (8192) + 96 MiB limit.
    v7x has 64 MiB per TensorCore (or detection fails) -> 4096 + 44 MiB (safe anywhere).
    """
    vmem = 0
    try:
        vmem = int(pltpu.get_tpu_info().vmem_capacity_bytes)
    except Exception:
        vmem = 0
    if vmem >= (100 << 20):
        return 8192, 96 << 20
    return 4096, 44 << 20


TM_MAX, VMEM_LIMIT_BYTES = _chip_tiling()


# ----------------------------- in-kernel helpers -----------------------------

def _conv1_vpu(w1, x):
    """conv1 has K=3: 3 broadcast FMAs on the VPU (keeps the MXU free), f32."""
    return (w1[:, 0:1] * x[0:1, :]
            + w1[:, 1:2] * x[1:2, :]
            + w1[:, 2:3] * x[2:3, :])


def _bn_relu_bf16(z, sc_ref, sh_ref):
    """Folded BN (scale/shift) + ReLU, emitting bf16 activations directly."""
    return jnp.maximum(z * sc_ref[...] + sh_ref[...], 0.0).astype(jnp.bfloat16)


def _relu_bias_bf16(z, b_ref):
    return jnp.maximum(z + b_ref[...], 0.0).astype(jnp.bfloat16)


def _dot(w_ref, h_bf16):
    """bf16 x bf16 MXU matmul with f32 accumulation (weights pre-cast in the wrapper)."""
    return jnp.dot(w_ref[...], h_bf16, preferred_element_type=jnp.float32)


def _write_stats(z, out_ref, *, tm, m_valid, needs_mask):
    """Write per-channel [sum, sum_sq] over the valid columns of z [C, tm] to out_ref [1, C, 2].

    The column mask is only generated for the last tile, and only when padding exists.
    """
    def write(zc):
        s = jnp.sum(zc, axis=1, keepdims=True)        # [C, 1]
        ss = jnp.sum(zc * zc, axis=1, keepdims=True)  # [C, 1]
        out_ref[0] = jnp.concatenate([s, ss], axis=1)  # [C, 2]

    if not needs_mask:
        write(z)
        return

    last = pl.num_programs(0) - 1

    @pl.when(pl.program_id(0) != last)
    def _():
        write(z)

    @pl.when(pl.program_id(0) == last)
    def _():
        col = pl.program_id(0) * tm + jax.lax.broadcasted_iota(jnp.int32, (1, tm), 1)
        write(jnp.where(col < m_valid, z, 0.0))


# ----------------------------- kernels ---------------------------------------

def stats1_kernel(x_ref, w1_ref, out_ref, *, tm, m_valid, needs_mask):
    del needs_mask  # padded x columns are exactly zero -> z1 pad columns are zero.
    z1 = _conv1_vpu(w1_ref[...], x_ref[...])                       # [64, tm] f32
    _write_stats(z1, out_ref, tm=tm, m_valid=m_valid, needs_mask=False)


def stats2_kernel(x_ref, w1_ref, sc1_ref, sh1_ref, w2_ref, out_ref,
                  *, tm, m_valid, needs_mask):
    z1 = _conv1_vpu(w1_ref[...], x_ref[...])
    h1 = _bn_relu_bf16(z1, sc1_ref, sh1_ref)                       # [64, tm] bf16
    z2 = _dot(w2_ref, h1)                                          # [128, tm] f32
    _write_stats(z2, out_ref, tm=tm, m_valid=m_valid, needs_mask=needs_mask)


def stats3_kernel(x_ref, w1_ref, sc1_ref, sh1_ref, w2_ref, sc2_ref, sh2_ref, w3_ref,
                  out_ref, *, tm, m_valid, needs_mask):
    z1 = _conv1_vpu(w1_ref[...], x_ref[...])
    h1 = _bn_relu_bf16(z1, sc1_ref, sh1_ref)
    h2 = _bn_relu_bf16(_dot(w2_ref, h1), sc2_ref, sh2_ref)         # [128, tm] bf16
    z3 = _dot(w3_ref, h2)                                          # [256, tm] f32
    _write_stats(z3, out_ref, tm=tm, m_valid=m_valid, needs_mask=needs_mask)


def final_kernel(x_ref, w1_ref, sc1_ref, sh1_ref, w2_ref, sc2_ref, sh2_ref,
                 w3_ref, sc3_ref, sh3_ref, fw1_ref, fb1_ref, fw2_ref, fb2_ref,
                 fw3_ref, fb3_ref, o_ref):
    z1 = _conv1_vpu(w1_ref[...], x_ref[...])                       # [64,  tm] f32 (VPU)
    h1 = _bn_relu_bf16(z1, sc1_ref, sh1_ref)                       # [64,  tm] bf16
    h2 = _bn_relu_bf16(_dot(w2_ref, h1), sc2_ref, sh2_ref)         # [128, tm] bf16
    h3 = _bn_relu_bf16(_dot(w3_ref, h2), sc3_ref, sh3_ref)         # [256, tm] bf16
    a1 = _relu_bias_bf16(_dot(fw1_ref, h3), fb1_ref)               # [128, tm] bf16
    a2 = _relu_bias_bf16(_dot(fw2_ref, a1), fb2_ref)               # [64,  tm] bf16
    o_ref[...] = _dot(fw3_ref, a2) + fb3_ref[...]                  # [3,   tm] f32


# ----------------------------- wrapper ---------------------------------------

def _const_spec(shape):
    # Constant index_map -> operand stays VMEM-resident across the grid.
    # (pl.Buffered(1) single-buffering intentionally skipped: <0.5 MiB total, and this
    #  keeps lowering maximally robust.)
    nd = len(shape)
    return pl.BlockSpec(shape, lambda i: (0,) * nd)


def p2sfield_forward(points, params, *, tm_max=None, vmem_limit_bytes=None):
    """points: [B, N, 3] float32 -> per-point gradients [B, N, 3] float32."""
    B, N, C = points.shape
    assert C == 3
    M = B * N
    if tm_max is None:
        tm_max = TM_MAX
    if vmem_limit_bytes is None:
        vmem_limit_bytes = VMEM_LIMIT_BYTES

    # Channel-first lane-dense layout [3, M].
    x = points.reshape(M, 3).T.astype(jnp.float32)

    # Tile M so that (a) nt >= 2 whenever M > 128 (keeps both v7x TensorCores busy),
    # and (b) tm <= tm_max (VMEM-derived).
    tm = min(tm_max, _round_up(max((M + 1) // 2, 1), 128))
    m_pad = _round_up(M, tm)
    if m_pad != M:
        x = jnp.pad(x, ((0, 0), (0, m_pad - M)))
    nt = m_pad // tm
    needs_mask = (m_pad != M)

    (w1, g1, b1, w2, g2, b2, w3, g3, b3, fw1, fb1, fw2, fb2, fw3, fb3) = params
    w2b = w2.astype(jnp.bfloat16)
    w3b = w3.astype(jnp.bfloat16)
    fw1b = fw1.astype(jnp.bfloat16)
    fw2b = fw2.astype(jnp.bfloat16)
    fw3b = fw3.astype(jnp.bfloat16)

    cp = pltpu.CompilerParams(
        dimension_semantics=("parallel",),       # independent M tiles -> megacore on v7x
        vmem_limit_bytes=vmem_limit_bytes,
    )
    x_spec = pl.BlockSpec((3, tm), lambda i: (0, i))
    inv_m = 1.0 / float(M)

    def stats_call(kernel, n_ch, extra_args):
        out = pl.pallas_call(
            functools.partial(kernel, tm=tm, m_valid=M, needs_mask=needs_mask),
            grid=(nt,),
            in_specs=[x_spec] + [_const_spec(a.shape) for a in extra_args],
            out_specs=pl.BlockSpec((1, n_ch, 2), lambda i: (i, 0, 0)),
            out_shape=jax.ShapeDtypeStruct((nt, n_ch, 2), jnp.float32),
            compiler_params=cp,
        )(x, *extra_args)
        tot = out.sum(axis=0)                    # [C, 2] totals over all tiles
        return tot[:, 0:1], tot[:, 1:2]

    def fold_bn(s, ss, gamma, beta):
        mean = s * inv_m
        # Biased variance (torch training mode); E[z^2]-E[z]^2 in f32, clamped >= 0.
        var = jnp.maximum(ss * inv_m - mean * mean, 0.0)
        scale = gamma * jax.lax.rsqrt(var + BN_EPS)
        shift = beta - mean * scale
        return scale, shift

    # Pass 1: bn1 statistics of conv1(x)
    s1, ss1 = stats_call(stats1_kernel, 64, (w1,))
    sc1, sh1 = fold_bn(s1, ss1, g1, b1)

    # Pass 2: bn2 statistics of conv2(relu(bn1(conv1(x))))
    s2, ss2 = stats_call(stats2_kernel, 128, (w1, sc1, sh1, w2b))
    sc2, sh2 = fold_bn(s2, ss2, g2, b2)

    # Pass 3: bn3 statistics
    s3, ss3 = stats_call(stats3_kernel, 256, (w1, sc1, sh1, w2b, sc2, sh2, w3b))
    sc3, sh3 = fold_bn(s3, ss3, g3, b3)

    # Pass 4: fused apply of the whole network, lane-dense [3, m_pad] output.
    final_args = (w1, sc1, sh1, w2b, sc2, sh2, w3b, sc3, sh3,
                  fw1b, fb1, fw2b, fb2, fw3b, fb3)
    out_cm = pl.pallas_call(
        final_kernel,
        grid=(nt,),
        in_specs=[x_spec] + [_const_spec(a.shape) for a in final_args],
        out_specs=pl.BlockSpec((3, tm), lambda i: (0, i)),
        out_shape=jax.ShapeDtypeStruct((3, m_pad), jnp.float32),
        compiler_params=cp,
    )(x, *final_args)

    return out_cm[:, :M].T.reshape(B, N, 3)


def init_params(key):
    """Deterministic synthetic parameters, torch layout:
    conv/linear weights [Cout, Cin]; BN gamma/beta and linear biases as [Cout, 1].
    Conv1d biases are omitted: a bias immediately before training-mode BatchNorm cancels
    exactly (mean subtraction removes it, variance unchanged), so forward semantics are
    preserved."""
    keys = iter(jax.random.split(key, 32))
    params = []
    # conv1/2/3 weights + bn1/2/3 (gamma, beta)
    for cin, cout in [(3, 64), (64, 128), (128, 256)]:
        w = jax.random.normal(next(keys), (cout, cin), jnp.float32) / jnp.sqrt(float(cin))
        gamma = 1.0 + 0.05 * jax.random.normal(next(keys), (cout, 1), jnp.float32)
        beta = 0.05 * jax.random.normal(next(keys), (cout, 1), jnp.float32)
        params += [w, gamma, beta]
    # fc1/2/3 (weight, bias)
    for cin, cout in [(256, 128), (128, 64), (64, 3)]:
        w = jax.random.normal(next(keys), (cout, cin), jnp.float32) / jnp.sqrt(float(cin))
        b = 0.01 * jax.random.normal(next(keys), (cout, 1), jnp.float32)
        params += [w, b]
    return params


if __name__ == "__main__":
    key = jax.random.PRNGKey(0)
    k_pts, k_par = jax.random.split(key)

    B, N = 2, 128
    points = jax.random.normal(k_pts, (B, N, 3), jnp.float32)
    params = init_params(k_par)

    fwd = jax.jit(p2sfield_forward)
    out = jax.block_until_ready(fwd(points, params))

    assert out.shape == (B, N, 3) and out.dtype == jnp.float32
    assert bool(jnp.all(jnp.isfinite(out)))
    print("KERNEL_OK")
</pallas_src>

<mosaic_0001>
module attributes {stable_mosaic.version = 11 : i64} {
  func.func @stats1_kernel(%arg0: i32, %arg1: memref<3x128xf32, #tpu.memory_space<vmem>>, %arg2: memref<64x3xf32, #tpu.memory_space<vmem>>, %arg3: memref<1x64x2xf32, #tpu.memory_space<vmem>>) attributes {dimension_semantics = [#tpu.dimension_semantics<parallel>], iteration_bounds = array<i64: 2>, scalar_prefetch = 0 : i64, scratch_operands = 0 : i64, tpu.core_type = #tpu.core_type<tc>, window_params = [{transform_indices = @transform_0, window_bounds = array<i64: 3, 128>}, {pipeline_mode = #tpu.pipeline_mode<synchronous>, transform_indices = @transform_1, window_bounds = array<i64: 64, 3>}, {transform_indices = @transform_2, window_bounds = array<i64: 1, 64, 2>}]} {
    %c0 = arith.constant 0 : index
    %c0_0 = arith.constant 0 : index
    %0 = vector.load %arg2[%c0, %c0_0] : memref<64x3xf32, #tpu.memory_space<vmem>>, vector<64x3xf32>
    %c0_1 = arith.constant 0 : index
    %c0_2 = arith.constant 0 : index
    %1 = vector.load %arg1[%c0_1, %c0_2] : memref<3x128xf32, #tpu.memory_space<vmem>>, vector<3x128xf32>
    %2 = vector.extract_strided_slice %0 {offsets = [0, 0], sizes = [64, 1], strides = [1, 1]} : vector<64x3xf32> to vector<64x1xf32>
    %3 = vector.extract_strided_slice %1 {offsets = [0, 0], sizes = [1, 128], strides = [1, 1]} : vector<3x128xf32> to vector<1x128xf32>
    %4 = vector.broadcast %2 : vector<64x1xf32> to vector<64x128xf32>
    %5 = vector.broadcast %3 : vector<1x128xf32> to vector<64x128xf32>
    %6 = arith.mulf %4, %5 : vector<64x128xf32>
    %7 = vector.extract_strided_slice %0 {offsets = [0, 1], sizes = [64, 1], strides = [1, 1]} : vector<64x3xf32> to vector<64x1xf32>
    %8 = vector.extract_strided_slice %1 {offsets = [1, 0], sizes = [1, 128], strides = [1, 1]} : vector<3x128xf32> to vector<1x128xf32>
    %9 = vector.broadcast %7 : vector<64x1xf32> to vector<64x128xf32>
    %10 = vector.broadcast %8 : vector<1x128xf32> to vector<64x128xf32>
    %11 = arith.mulf %9, %10 : vector<64x128xf32>
    %12 = arith.addf %6, %11 : vector<64x128xf32>
    %13 = vector.extract_strided_slice %0 {offsets = [0, 2], sizes = [64, 1], strides = [1, 1]} : vector<64x3xf32> to vector<64x1xf32>
    %14 = vector.extract_strided_slice %1 {offsets = [2, 0], sizes = [1, 128], strides = [1, 1]} : vector<3x128xf32> to vector<1x128xf32>
    %15 = vector.broadcast %13 : vector<64x1xf32> to vector<64x128xf32>
    %16 = vector.broadcast %14 : vector<1x128xf32> to vector<64x128xf32>
    %17 = arith.mulf %15, %16 : vector<64x128xf32>
    %18 = arith.addf %12, %17 : vector<64x128xf32>
    %cst = arith.constant dense<0.000000e+00> : vector<64xf32>
    %19 = vector.multi_reduction <add>, %18, %cst [1] : vector<64x128xf32> to vector<64xf32>
    %20 = vector.shape_cast %19 : vector<64xf32> to vector<64x1xf32>
    %21 = arith.mulf %18, %18 : vector<64x128xf32>
    %cst_3 = arith.constant dense<0.000000e+00> : vector<64xf32>
    %22 = vector.multi_reduction <add>, %21, %cst_3 [1] : vector<64x128xf32> to vector<64xf32>
    %23 = vector.shape_cast %22 : vector<64xf32> to vector<64x1xf32>
    %24 = tpu.concatenate %20, %23 in 1 : vector<64x1xf32>, vector<64x1xf32> -> vector<64x2xf32>
    %c0_4 = arith.constant 0 : index
    %c0_5 = arith.constant 0 : index
    %c0_6 = arith.constant 0 : index
    %25 = vector.load %arg3[%c0_4, %c0_5, %c0_6] : memref<1x64x2xf32, #tpu.memory_space<vmem>>, vector<1x64x2xf32>
    %26 = vector.shape_cast %25 : vector<1x64x2xf32> to vector<64x2xf32>
    %27 = vector.shape_cast %24 : vector<64x2xf32> to vector<1x64x2xf32>
    tpu.vector_store %arg3[%c0_4, %c0_5, %c0_6], %27 {strides = array<i32>} : memref<1x64x2xf32, #tpu.memory_space<vmem>>, vector<1x64x2xf32>,
    return
  }
  func.func @transform_0(%arg0: i32) -> (i32, i32) {
    %c0_i32 = arith.constant 0 : i32
    %c0_i32_0 = arith.constant 0 : i32
    return %c0_i32, %arg0 : i32, i32
  }
  func.func @transform_1(%arg0: i32) -> (i32, i32) {
    %c0_i32 = arith.constant 0 : i32
    %c0_i32_0 = arith.constant 0 : i32
    %c0_i32_1 = arith.constant 0 : i32
    return %c0_i32, %c0_i32_0 : i32, i32
  }
  func.func @transform_2(%arg0: i32) -> (i32, i32, i32) {
    %c0_i32 = arith.constant 0 : i32
    %c0_i32_0 = arith.constant 0 : i32
    %c0_i32_1 = arith.constant 0 : i32
    return %arg0, %c0_i32, %c0_i32_0 : i32, i32, i32
  }
}

module attributes {stable_mosaic.version = 11 : i64} {
  func.func @stats2_kernel(%arg0: i32, %arg1: memref<3x128xf32, #tpu.memory_space<vmem>>, %arg2: memref<64x3xf32, #tpu.memory_space<vmem>>, %arg3: memref<64x1xf32, #tpu.memory_space<vmem>>, %arg4: memref<64x1xf32, #tpu.memory_space<vmem>>, %arg5: memref<128x64xbf16, #tpu.memory_space<vmem>>, %arg6: memref<1x128x2xf32, #tpu.memory_space<vmem>>) attributes {dimension_semantics = [#tpu.dimension_semantics<parallel>], iteration_bounds = array<i64: 2>, scalar_prefetch = 0 : i64, scratch_operands = 0 : i64, tpu.core_type = #tpu.core_type<tc>, window_params = [{transform_indices = @transform_0, window_bounds = array<i64: 3, 128>}, {pipeline_mode = #tpu.pipeline_mode<synchronous>, transform_indices = @transform_1, window_bounds = array<i64: 64, 3>}, {pipeline_mode = #tpu.pipeline_mode<synchronous>, transform_indices = @transform_2, window_bounds = array<i64: 64, 1>}, {pipeline_mode = #tpu.pipeline_mode<synchronous>, transform_indices = @transform_3, window_bounds = array<i64: 64, 1>}, {pipeline_mode = #tpu.pipeline_mode<synchronous>, transform_indices = @transform_4, window_bounds = array<i64: 128, 64>}, {transform_indices = @transform_5, window_bounds = array<i64: 1, 128, 2>}]} {
    %c0 = arith.constant 0 : index
    %c0_0 = arith.constant 0 : index
    %0 = vector.load %arg2[%c0, %c0_0] : memref<64x3xf32, #tpu.memory_space<vmem>>, vector<64x3xf32>
    %c0_1 = arith.constant 0 : index
    %c0_2 = arith.constant 0 : index
    %1 = vector.load %arg1[%c0_1, %c0_2] : memref<3x128xf32, #tpu.memory_space<vmem>>, vector<3x128xf32>
    %2 = vector.extract_strided_slice %0 {offsets = [0, 0], sizes = [64, 1], strides = [1, 1]} : vector<64x3xf32> to vector<64x1xf32>
    %3 = vector.extract_strided_slice %1 {offsets = [0, 0], sizes = [1, 128], strides = [1, 1]} : vector<3x128xf32> to vector<1x128xf32>
    %4 = vector.broadcast %2 : vector<64x1xf32> to vector<64x128xf32>
    %5 = vector.broadcast %3 : vector<1x128xf32> to vector<64x128xf32>
    %6 = arith.mulf %4, %5 : vector<64x128xf32>
    %7 = vector.extract_strided_slice %0 {offsets = [0, 1], sizes = [64, 1], strides = [1, 1]} : vector<64x3xf32> to vector<64x1xf32>
    %8 = vector.extract_strided_slice %1 {offsets = [1, 0], sizes = [1, 128], strides = [1, 1]} : vector<3x128xf32> to vector<1x128xf32>
    %9 = vector.broadcast %7 : vector<64x1xf32> to vector<64x128xf32>
    %10 = vector.broadcast %8 : vector<1x128xf32> to vector<64x128xf32>
    %11 = arith.mulf %9, %10 : vector<64x128xf32>
    %12 = arith.addf %6, %11 : vector<64x128xf32>
    %13 = vector.extract_strided_slice %0 {offsets = [0, 2], sizes = [64, 1], strides = [1, 1]} : vector<64x3xf32> to vector<64x1xf32>
    %14 = vector.extract_strided_slice %1 {offsets = [2, 0], sizes = [1, 128], strides = [1, 1]} : vector<3x128xf32> to vector<1x128xf32>
    %15 = vector.broadcast %13 : vector<64x1xf32> to vector<64x128xf32>
    %16 = vector.broadcast %14 : vector<1x128xf32> to vector<64x128xf32>
    %17 = arith.mulf %15, %16 : vector<64x128xf32>
    %18 = arith.addf %12, %17 : vector<64x128xf32>
    %c0_3 = arith.constant 0 : index
    %c0_4 = arith.constant 0 : index
    %19 = vector.load %arg3[%c0_3, %c0_4] : memref<64x1xf32, #tpu.memory_space<vmem>>, vector<64x1xf32>
    %20 = vector.broadcast %19 : vector<64x1xf32> to vector<64x128xf32>
    %21 = arith.mulf %18, %20 : vector<64x128xf32>
    %c0_5 = arith.constant 0 : index
    %c0_6 = arith.constant 0 : index
    %22 = vector.load %arg4[%c0_5, %c0_6] : memref<64x1xf32, #tpu.memory_space<vmem>>, vector<64x1xf32>
    %23 = vector.broadcast %22 : vector<64x1xf32> to vector<64x128xf32>
    %24 = arith.addf %21, %23 : vector<64x128xf32>
    %cst = arith.constant 0.000000e+00 : f32
    %25 = vector.broadcast %cst : f32 to vector<64x128xf32>
    %26 = arith.maximumf %24, %25 : vector<64x128xf32>
    %27 = arith.truncf %26 : vector<64x128xf32> to vector<64x128xbf16>
    %c0_7 = arith.constant 0 : index
    %c0_8 = arith.constant 0 : index
    %28 = vector.load %arg5[%c0_7, %c0_8] : memref<128x64xbf16, #tpu.memory_space<vmem>>, vector<128x64xbf16>
    %cst_9 = arith.constant dense<0.000000e+00> : vector<128x128xf32>
    %29 = tpu.matmul %28, %27, %cst_9 {dimension_numbers = #tpu.dot_dimension_numbers<[1], [0], [0], [1], [0, 0, 1, 1], [], []>} : vector<128x64xbf16>, vector<64x128xbf16>, vector<128x128xf32> -> vector<128x128xf32>
    %cst_10 = arith.constant dense<0.000000e+00> : vector<128xf32>
    %30 = vector.multi_reduction <add>, %29, %cst_10 [1] : vector<128x128xf32> to vector<128xf32>
    %31 = vector.shape_cast %30 : vector<128xf32> to vector<128x1xf32>
    %32 = arith.mulf %29, %29 : vector<128x128xf32>
    %cst_11 = arith.constant dense<0.000000e+00> : vector<128xf32>
    %33 = vector.multi_reduction <add>, %32, %cst_11 [1] : vector<128x128xf32> to vector<128xf32>
    %34 = vector.shape_cast %33 : vector<128xf32> to vector<128x1xf32>
    %35 = tpu.concatenate %31, %34 in 1 : vector<128x1xf32>, vector<128x1xf32> -> vector<128x2xf32>
    %c0_12 = arith.constant 0 : index
    %c0_13 = arith.constant 0 : index
    %c0_14 = arith.constant 0 : index
    %36 = vector.load %arg6[%c0_12, %c0_13, %c0_14] : memref<1x128x2xf32, #tpu.memory_space<vmem>>, vector<1x128x2xf32>
    %37 = vector.shape_cast %36 : vector<1x128x2xf32> to vector<128x2xf32>
    %38 = vector.shape_cast %35 : vector<128x2xf32> to vector<1x128x2xf32>
    tpu.vector_store %arg6[%c0_12, %c0_13, %c0_14], %38 {strides = array<i32>} : memref<1x128x2xf32, #tpu.memory_space<vmem>>, vector<1x128x2xf32>,
    return
  }
  func.func @transform_0(%arg0: i32) -> (i32, i32) {
    %c0_i32 = arith.constant 0 : i32
    %c0_i32_0 = arith.constant 0 : i32
    return %c0_i32, %arg0 : i32, i32
  }
  func.func @transform_1(%arg0: i32) -> (i32, i32) {
    %c0_i32 = arith.constant 0 : i32
    %c0_i32_0 = arith.constant 0 : i32
    %c0_i32_1 = arith.constant 0 : i32
    return %c0_i32, %c0_i32_0 : i32, i32
  }
  func.func @transform_2(%arg0: i32) -> (i32, i32) {
    %c0_i32 = arith.constant 0 : i32
    %c0_i32_0 = arith.constant 0 : i32
    %c0_i32_1 = arith.constant 0 : i32
    return %c0_i32, %c0_i32_0 : i32, i32
  }
  func.func @transform_3(%arg0: i32) -> (i32, i32) {
    %c0_i32 = arith.constant 0 : i32
    %c0_i32_0 = arith.constant 0 : i32
    %c0_i32_1 = arith.constant 0 : i32
    return %c0_i32, %c0_i32_0 : i32, i32
  }
  func.func @transform_4(%arg0: i32) -> (i32, i32) {
    %c0_i32 = arith.constant 0 : i32
    %c0_i32_0 = arith.constant 0 : i32
    %c0_i32_1 = arith.constant 0 : i32
    return %c0_i32, %c0_i32_0 : i32, i32
  }
  func.func @transform_5(%arg0: i32) -> (i32, i32, i32) {
    %c0_i32 = arith.constant 0 : i32
    %c0_i32_0 = arith.constant 0 : i32
    %c0_i32_1 = arith.constant 0 : i32
    return %arg0, %c0_i32, %c0_i32_0 : i32, i32, i32
  }
}

module attributes {stable_mosaic.version = 11 : i64} {
  func.func @stats3_kernel(%arg0: i32, %arg1: memref<3x128xf32, #tpu.memory_space<vmem>>, %arg2: memref<64x3xf32, #tpu.memory_space<vmem>>, %arg3: memref<64x1xf32, #tpu.memory_space<vmem>>, %arg4: memref<64x1xf32, #tpu.memory_space<vmem>>, %arg5: memref<128x64xbf16, #tpu.memory_space<vmem>>, %arg6: memref<128x1xf32, #tpu.memory_space<vmem>>, %arg7: memref<128x1xf32, #tpu.memory_space<vmem>>, %arg8: memref<256x128xbf16, #tpu.memory_space<vmem>>, %arg9: memref<1x256x2xf32, #tpu.memory_space<vmem>>) attributes {dimension_semantics = [#tpu.dimension_semantics<parallel>], iteration_bounds = array<i64: 2>, scalar_prefetch = 0 : i64, scratch_operands = 0 : i64, tpu.core_type = #tpu.core_type<tc>, window_params = [{transform_indices = @transform_0, window_bounds = array<i64: 3, 128>}, {pipeline_mode = #tpu.pipeline_mode<synchronous>, transform_indices = @transform_1, window_bounds = array<i64: 64, 3>}, {pipeline_mode = #tpu.pipeline_mode<synchronous>, transform_indices = @transform_2, window_bounds = array<i64: 64, 1>}, {pipeline_mode = #tpu.pipeline_mode<synchronous>, transform_indices = @transform_3, window_bounds = array<i64: 64, 1>}, {pipeline_mode = #tpu.pipeline_mode<synchronous>, transform_indices = @transform_4, window_bounds = array<i64: 128, 64>}, {pipeline_mode = #tpu.pipeline_mode<synchronous>, transform_indices = @transform_5, window_bounds = array<i64: 128, 1>}, {pipeline_mode = #tpu.pipeline_mode<synchronous>, transform_indices = @transform_6, window_bounds = array<i64: 128, 1>}, {pipeline_mode = #tpu.pipeline_mode<synchronous>, transform_indices = @transform_7, window_bounds = array<i64: 256, 128>}, {transform_indices = @transform_8, window_bounds = array<i64: 1, 256, 2>}]} {
    %c0 = arith.constant 0 : index
    %c0_0 = arith.constant 0 : index
    %0 = vector.load %arg2[%c0, %c0_0] : memref<64x3xf32, #tpu.memory_space<vmem>>, vector<64x3xf32>
    %c0_1 = arith.constant 0 : index
    %c0_2 = arith.constant 0 : index
    %1 = vector.load %arg1[%c0_1, %c0_2] : memref<3x128xf32, #tpu.memory_space<vmem>>, vector<3x128xf32>
    %2 = vector.extract_strided_slice %0 {offsets = [0, 0], sizes = [64, 1], strides = [1, 1]} : vector<64x3xf32> to vector<64x1xf32>
    %3 = vector.extract_strided_slice %1 {offsets = [0, 0], sizes = [1, 128], strides = [1, 1]} : vector<3x128xf32> to vector<1x128xf32>
    %4 = vector.broadcast %2 : vector<64x1xf32> to vector<64x128xf32>
    %5 = vector.broadcast %3 : vector<1x128xf32> to vector<64x128xf32>
    %6 = arith.mulf %4, %5 : vector<64x128xf32>
    %7 = vector.extract_strided_slice %0 {offsets = [0, 1], sizes = [64, 1], strides = [1, 1]} : vector<64x3xf32> to vector<64x1xf32>
    %8 = vector.extract_strided_slice %1 {offsets = [1, 0], sizes = [1, 128], strides = [1, 1]} : vector<3x128xf32> to vector<1x128xf32>
    %9 = vector.broadcast %7 : vector<64x1xf32> to vector<64x128xf32>
    %10 = vector.broadcast %8 : vector<1x128xf32> to vector<64x128xf32>
    %11 = arith.mulf %9, %10 : vector<64x128xf32>
    %12 = arith.addf %6, %11 : vector<64x128xf32>
    %13 = vector.extract_strided_slice %0 {offsets = [0, 2], sizes = [64, 1], strides = [1, 1]} : vector<64x3xf32> to vector<64x1xf32>
    %14 = vector.extract_strided_slice %1 {offsets = [2, 0], sizes = [1, 128], strides = [1, 1]} : vector<3x128xf32> to vector<1x128xf32>
    %15 = vector.broadcast %13 : vector<64x1xf32> to vector<64x128xf32>
    %16 = vector.broadcast %14 : vector<1x128xf32> to vector<64x128xf32>
    %17 = arith.mulf %15, %16 : vector<64x128xf32>
    %18 = arith.addf %12, %17 : vector<64x128xf32>
    %c0_3 = arith.constant 0 : index
    %c0_4 = arith.constant 0 : index
    %19 = vector.load %arg3[%c0_3, %c0_4] : memref<64x1xf32, #tpu.memory_space<vmem>>, vector<64x1xf32>
    %20 = vector.broadcast %19 : vector<64x1xf32> to vector<64x128xf32>
    %21 = arith.mulf %18, %20 : vector<64x128xf32>
    %c0_5 = arith.constant 0 : index
    %c0_6 = arith.constant 0 : index
    %22 = vector.load %arg4[%c0_5, %c0_6] : memref<64x1xf32, #tpu.memory_space<vmem>>, vector<64x1xf32>
    %23 = vector.broadcast %22 : vector<64x1xf32> to vector<64x128xf32>
    %24 = arith.addf %21, %23 : vector<64x128xf32>
    %cst = arith.constant 0.000000e+00 : f32
    %25 = vector.broadcast %cst : f32 to vector<64x128xf32>
    %26 = arith.maximumf %24, %25 : vector<64x128xf32>
    %27 = arith.truncf %26 : vector<64x128xf32> to vector<64x128xbf16>
    %c0_7 = arith.constant 0 : index
    %c0_8 = arith.constant 0 : index
    %28 = vector.load %arg5[%c0_7, %c0_8] : memref<128x64xbf16, #tpu.memory_space<vmem>>, vector<128x64xbf16>
    %cst_9 = arith.constant dense<0.000000e+00> : vector<128x128xf32>
    %29 = tpu.matmul %28, %27, %cst_9 {dimension_numbers = #tpu.dot_dimension_numbers<[1], [0], [0], [1], [0, 0, 1, 1], [], []>} : vector<128x64xbf16>, vector<64x128xbf16>, vector<128x128xf32> -> vector<128x128xf32>
    %c0_10 = arith.constant 0 : index
    %c0_11 = arith.constant 0 : index
    %30 = vector.load %arg6[%c0_10, %c0_11] : memref<128x1xf32, #tpu.memory_space<vmem>>, vector<128x1xf32>
    %31 = vector.broadcast %30 : vector<128x1xf32> to vector<128x128xf32>
    %32 = arith.mulf %29, %31 : vector<128x128xf32>
    %c0_12 = arith.constant 0 : index
    %c0_13 = arith.constant 0 : index
    %33 = vector.load %arg7[%c0_12, %c0_13] : memref<128x1xf32, #tpu.memory_space<vmem>>, vector<128x1xf32>
    %34 = vector.broadcast %33 : vector<128x1xf32> to vector<128x128xf32>
    %35 = arith.addf %32, %34 : vector<128x128xf32>
    %cst_14 = arith.constant 0.000000e+00 : f32
    %36 = vector.broadcast %cst_14 : f32 to vector<128x128xf32>
    %37 = arith.maximumf %35, %36 : vector<128x128xf32>
    %38 = arith.truncf %37 : vector<128x128xf32> to vector<128x128xbf16>
    %c0_15 = arith.constant 0 : index
    %c0_16 = arith.constant 0 : index
    %39 = vector.load %arg8[%c0_15, %c0_16] : memref<256x128xbf16, #tpu.memory_space<vmem>>, vector<256x128xbf16>
    %cst_17 = arith.constant dense<0.000000e+00> : vector<256x128xf32>
    %40 = tpu.matmul %39, %38, %cst_17 {dimension_numbers = #tpu.dot_dimension_numbers<[1], [0], [0], [1], [0, 0, 1, 1], [], []>} : vector<256x128xbf16>, vector<128x128xbf16>, vector<256x128xf32> -> vector<256x128xf32>
    %cst_18 = arith.constant dense<0.000000e+00> : vector<256xf32>
    %41 = vector.multi_reduction <add>, %40, %cst_18 [1] : vector<256x128xf32> to vector<256xf32>
    %42 = vector.shape_cast %41 : vector<256xf32> to vector<256x1xf32>
    %43 = arith.mulf %40, %40 : vector<256x128xf32>
    %cst_19 = arith.constant dense<0.000000e+00> : vector<256xf32>
    %44 = vector.multi_reduction <add>, %43, %cst_19 [1] : vector<256x128xf32> to vector<256xf32>
    %45 = vector.shape_cast %44 : vector<256xf32> to vector<256x1xf32>
    %46 = tpu.concatenate %42, %45 in 1 : vector<256x1xf32>, vector<256x1xf32> -> vector<256x2xf32>
    %c0_20 = arith.constant 0 : index
    %c0_21 = arith.constant 0 : index
    %c0_22 = arith.constant 0 : index
    %47 = vector.load %arg9[%c0_20, %c0_21, %c0_22] : memref<1x256x2xf32, #tpu.memory_space<vmem>>, vector<1x256x2xf32>
    %48 = vector.shape_cast %47 : vector<1x256x2xf32> to vector<256x2xf32>
    %49 = vector.shape_cast %46 : vector<256x2xf32> to vector<1x256x2xf32>
    tpu.vector_store %arg9[%c0_20, %c0_21, %c0_22], %49 {strides = array<i32>} : memref<1x256x2xf32, #tpu.memory_space<vmem>>, vector<1x256x2xf32>,
    return
  }
  func.func @transform_0(%arg0: i32) -> (i32, i32) {
    %c0_i32 = arith.constant 0 : i32
    %c0_i32_0 = arith.constant 0 : i32
    return %c0_i32, %arg0 : i32, i32
  }
  func.func @transform_1(%arg0: i32) -> (i32, i32) {
    %c0_i32 = arith.constant 0 : i32
    %c0_i32_0 = arith.constant 0 : i32
    %c0_i32_1 = arith.constant 0 : i32
    return %c0_i32, %c0_i32_0 : i32, i32
  }
  func.func @transform_2(%arg0: i32) -> (i32, i32) {
    %c0_i32 = arith.constant 0 : i32
    %c0_i32_0 = arith.constant 0 : i32
    %c0_i32_1 = arith.constant 0 : i32
    return %c0_i32, %c0_i32_0 : i32, i32
  }
  func.func @transform_3(%arg0: i32) -> (i32, i32) {
    %c0_i32 = arith.constant 0 : i32
    %c0_i32_0 = arith.constant 0 : i32
    %c0_i32_1 = arith.constant 0 : i32
    return %c0_i32, %c0_i32_0 : i32, i32
  }
  func.func @transform_4(%arg0: i32) -> (i32, i32) {
    %c0_i32 = arith.constant 0 : i32
    %c0_i32_0 = arith.constant 0 : i32
    %c0_i32_1 = arith.constant 0 : i32
    return %c0_i32, %c0_i32_0 : i32, i32
  }
  func.func @transform_5(%arg0: i32) -> (i32, i32) {
    %c0_i32 = arith.constant 0 : i32
    %c0_i32_0 = arith.constant 0 : i32
    %c0_i32_1 = arith.constant 0 : i32
    return %c0_i32, %c0_i32_0 : i32, i32
  }
  func.func @transform_6(%arg0: i32) -> (i32, i32) {
    %c0_i32 = arith.constant 0 : i32
    %c0_i32_0 = arith.constant 0 : i32
    %c0_i32_1 = arith.constant 0 : i32
    return %c0_i32, %c0_i32_0 : i32, i32
  }
  func.func @transform_7(%arg0: i32) -> (i32, i32) {
    %c0_i32 = arith.constant 0 : i32
    %c0_i32_0 = arith.constant 0 : i32
    %c0_i32_1 = arith.constant 0 : i32
    return %c0_i32, %c0_i32_0 : i32, i32
  }
  func.func @transform_8(%arg0: i32) -> (i32, i32, i32) {
    %c0_i32 = arith.constant 0 : i32
    %c0_i32_0 = arith.constant 0 : i32
    %c0_i32_1 = arith.constant 0 : i32
    return %arg0, %c0_i32, %c0_i32_0 : i32, i32, i32
  }
}

module attributes {stable_mosaic.version = 11 : i64} {
  func.func @final_kernel(%arg0: i32, %arg1: memref<3x128xf32, #tpu.memory_space<vmem>>, %arg2: memref<64x3xf32, #tpu.memory_space<vmem>>, %arg3: memref<64x1xf32, #tpu.memory_space<vmem>>, %arg4: memref<64x1xf32, #tpu.memory_space<vmem>>, %arg5: memref<128x64xbf16, #tpu.memory_space<vmem>>, %arg6: memref<128x1xf32, #tpu.memory_space<vmem>>, %arg7: memref<128x1xf32, #tpu.memory_space<vmem>>, %arg8: memref<256x128xbf16, #tpu.memory_space<vmem>>, %arg9: memref<256x1xf32, #tpu.memory_space<vmem>>, %arg10: memref<256x1xf32, #tpu.memory_space<vmem>>, %arg11: memref<128x256xbf16, #tpu.memory_space<vmem>>, %arg12: memref<128x1xf32, #tpu.memory_space<vmem>>, %arg13: memref<64x128xbf16, #tpu.memory_space<vmem>>, %arg14: memref<64x1xf32, #tpu.memory_space<vmem>>, %arg15: memref<3x64xbf16, #tpu.memory_space<vmem>>, %arg16: memref<3x1xf32, #tpu.memory_space<vmem>>, %arg17: memref<3x128xf32, #tpu.memory_space<vmem>>) attributes {dimension_semantics = [#tpu.dimension_semantics<parallel>], iteration_bounds = array<i64: 2>, scalar_prefetch = 0 : i64, scratch_operands = 0 : i64, tpu.core_type = #tpu.core_type<tc>, window_params = [{transform_indices = @transform_0, window_bounds = array<i64: 3, 128>}, {pipeline_mode = #tpu.pipeline_mode<synchronous>, transform_indices = @transform_1, window_bounds = array<i64: 64, 3>}, {pipeline_mode = #tpu.pipeline_mode<synchronous>, transform_indices = @transform_2, window_bounds = array<i64: 64, 1>}, {pipeline_mode = #tpu.pipeline_mode<synchronous>, transform_indices = @transform_3, window_bounds = array<i64: 64, 1>}, {pipeline_mode = #tpu.pipeline_mode<synchronous>, transform_indices = @transform_4, window_bounds = array<i64: 128, 64>}, {pipeline_mode = #tpu.pipeline_mode<synchronous>, transform_indices = @transform_5, window_bounds = array<i64: 128, 1>}, {pipeline_mode = #tpu.pipeline_mode<synchronous>, transform_indices = @transform_6, window_bounds = array<i64: 128, 1>}, {pipeline_mode = #tpu.pipeline_mode<synchronous>, transform_indices = @transform_7, window_bounds = array<i64: 256, 128>}, {pipeline_mode = #tpu.pipeline_mode<synchronous>, transform_indices = @transform_8, window_bounds = array<i64: 256, 1>}, {pipeline_mode = #tpu.pipeline_mode<synchronous>, transform_indices = @transform_9, window_bounds = array<i64: 256, 1>}, {pipeline_mode = #tpu.pipeline_mode<synchronous>, transform_indices = @transform_10, window_bounds = array<i64: 128, 256>}, {pipeline_mode = #tpu.pipeline_mode<synchronous>, transform_indices = @transform_11, window_bounds = array<i64: 128, 1>}, {pipeline_mode = #tpu.pipeline_mode<synchronous>, transform_indices = @transform_12, window_bounds = array<i64: 64, 128>}, {pipeline_mode = #tpu.pipeline_mode<synchronous>, transform_indices = @transform_13, window_bounds = array<i64: 64, 1>}, {pipeline_mode = #tpu.pipeline_mode<synchronous>, transform_indices = @transform_14, window_bounds = array<i64: 3, 64>}, {pipeline_mode = #tpu.pipeline_mode<synchronous>, transform_indices = @transform_15, window_bounds = array<i64: 3, 1>}, {transform_indices = @transform_16, window_bounds = array<i64: 3, 128>}]} {
    %c0 = arith.constant 0 : index
    %c0_0 = arith.constant 0 : index
    %0 = vector.load %arg2[%c0, %c0_0] : memref<64x3xf32, #tpu.memory_space<vmem>>, vector<64x3xf32>
    %c0_1 = arith.constant 0 : index
    %c0_2 = arith.constant 0 : index
    %1 = vector.load %arg1[%c0_1, %c0_2] : memref<3x128xf32, #tpu.memory_space<vmem>>, vector<3x128xf32>
    %2 = vector.extract_strided_slice %0 {offsets = [0, 0], sizes = [64, 1], strides = [1, 1]} : vector<64x3xf32> to vector<64x1xf32>
    %3 = vector.extract_strided_slice %1 {offsets = [0, 0], sizes = [1, 128], strides = [1, 1]} : vector<3x128xf32> to vector<1x128xf32>
    %4 = vector.broadcast %2 : vector<64x1xf32> to vector<64x128xf32>
    %5 = vector.broadcast %3 : vector<1x128xf32> to vector<64x128xf32>
    %6 = arith.mulf %4, %5 : vector<64x128xf32>
    %7 = vector.extract_strided_slice %0 {offsets = [0, 1], sizes = [64, 1], strides = [1, 1]} : vector<64x3xf32> to vector<64x1xf32>
    %8 = vector.extract_strided_slice %1 {offsets = [1, 0], sizes = [1, 128], strides = [1, 1]} : vector<3x128xf32> to vector<1x128xf32>
    %9 = vector.broadcast %7 : vector<64x1xf32> to vector<64x128xf32>
    %10 = vector.broadcast %8 : vector<1x128xf32> to vector<64x128xf32>
    %11 = arith.mulf %9, %10 : vector<64x128xf32>
    %12 = arith.addf %6, %11 : vector<64x128xf32>
    %13 = vector.extract_strided_slice %0 {offsets = [0, 2], sizes = [64, 1], strides = [1, 1]} : vector<64x3xf32> to vector<64x1xf32>
    %14 = vector.extract_strided_slice %1 {offsets = [2, 0], sizes = [1, 128], strides = [1, 1]} : vector<3x128xf32> to vector<1x128xf32>
    %15 = vector.broadcast %13 : vector<64x1xf32> to vector<64x128xf32>
    %16 = vector.broadcast %14 : vector<1x128xf32> to vector<64x128xf32>
    %17 = arith.mulf %15, %16 : vector<64x128xf32>
    %18 = arith.addf %12, %17 : vector<64x128xf32>
    %c0_3 = arith.constant 0 : index
    %c0_4 = arith.constant 0 : index
    %19 = vector.load %arg3[%c0_3, %c0_4] : memref<64x1xf32, #tpu.memory_space<vmem>>, vector<64x1xf32>
    %20 = vector.broadcast %19 : vector<64x1xf32> to vector<64x128xf32>
    %21 = arith.mulf %18, %20 : vector<64x128xf32>
    %c0_5 = arith.constant 0 : index
    %c0_6 = arith.constant 0 : index
    %22 = vector.load %arg4[%c0_5, %c0_6] : memref<64x1xf32, #tpu.memory_space<vmem>>, vector<64x1xf32>
    %23 = vector.broadcast %22 : vector<64x1xf32> to vector<64x128xf32>
    %24 = arith.addf %21, %23 : vector<64x128xf32>
    %cst = arith.constant 0.000000e+00 : f32
    %25 = vector.broadcast %cst : f32 to vector<64x128xf32>
    %26 = arith.maximumf %24, %25 : vector<64x128xf32>
    %27 = arith.truncf %26 : vector<64x128xf32> to vector<64x128xbf16>
    %c0_7 = arith.constant 0 : index
    %c0_8 = arith.constant 0 : index
    %28 = vector.load %arg5[%c0_7, %c0_8] : memref<128x64xbf16, #tpu.memory_space<vmem>>, vector<128x64xbf16>
    %cst_9 = arith.constant dense<0.000000e+00> : vector<128x128xf32>
    %29 = tpu.matmul %28, %27, %cst_9 {dimension_numbers = #tpu.dot_dimension_numbers<[1], [0], [0], [1], [0, 0, 1, 1], [], []>} : vector<128x64xbf16>, vector<64x128xbf16>, vector<128x128xf32> -> vector<128x128xf32>
    %c0_10 = arith.constant 0 : index
    %c0_11 = arith.constant 0 : index
    %30 = vector.load %arg6[%c0_10, %c0_11] : memref<128x1xf32, #tpu.memory_space<vmem>>, vector<128x1xf32>
    %31 = vector.broadcast %30 : vector<128x1xf32> to vector<128x128xf32>
    %32 = arith.mulf %29, %31 : vector<128x128xf32>
    %c0_12 = arith.constant 0 : index
    %c0_13 = arith.constant 0 : index
    %33 = vector.load %arg7[%c0_12, %c0_13] : memref<128x1xf32, #tpu.memory_space<vmem>>, vector<128x1xf32>
    %34 = vector.broadcast %33 : vector<128x1xf32> to vector<128x128xf32>
    %35 = arith.addf %32, %34 : vector<128x128xf32>
    %cst_14 = arith.constant 0.000000e+00 : f32
    %36 = vector.broadcast %cst_14 : f32 to vector<128x128xf32>
    %37 = arith.maximumf %35, %36 : vector<128x128xf32>
    %38 = arith.truncf %37 : vector<128x128xf32> to vector<128x128xbf16>
    %c0_15 = arith.constant 0 : index
    %c0_16 = arith.constant 0 : index
    %39 = vector.load %arg8[%c0_15, %c0_16] : memref<256x128xbf16, #tpu.memory_space<vmem>>, vector<256x128xbf16>
    %cst_17 = arith.constant dense<0.000000e+00> : vector<256x128xf32>
    %40 = tpu.matmul %39, %38, %cst_17 {dimension_numbers = #tpu.dot_dimension_numbers<[1], [0], [0], [1], [0, 0, 1, 1], [], []>} : vector<256x128xbf16>, vector<128x128xbf16>, vector<256x128xf32> -> vector<256x128xf32>
    %c0_18 = arith.constant 0 : index
    %c0_19 = arith.constant 0 : index
    %41 = vector.load %arg9[%c0_18, %c0_19] : memref<256x1xf32, #tpu.memory_space<vmem>>, vector<256x1xf32>
    %42 = vector.broadcast %41 : vector<256x1xf32> to vector<256x128xf32>
    %43 = arith.mulf %40, %42 : vector<256x128xf32>
    %c0_20 = arith.constant 0 : index
    %c0_21 = arith.constant 0 : index
    %44 = vector.load %arg10[%c0_20, %c0_21] : memref<256x1xf32, #tpu.memory_space<vmem>>, vector<256x1xf32>
    %45 = vector.broadcast %44 : vector<256x1xf32> to vector<256x128xf32>
    %46 = arith.addf %43, %45 : vector<256x128xf32>
    %cst_22 = arith.constant 0.000000e+00 : f32
    %47 = vector.broadcast %cst_22 : f32 to vector<256x128xf32>
    %48 = arith.maximumf %46, %47 : vector<256x128xf32>
    %49 = arith.truncf %48 : vector<256x128xf32> to vector<256x128xbf16>
    %c0_23 = arith.constant 0 : index
    %c0_24 = arith.constant 0 : index
    %50 = vector.load %arg11[%c0_23, %c0_24] : memref<128x256xbf16, #tpu.memory_space<vmem>>, vector<128x256xbf16>
    %cst_25 = arith.constant dense<0.000000e+00> : vector<128x128xf32>
    %51 = tpu.matmul %50, %49, %cst_25 {dimension_numbers = #tpu.dot_dimension_numbers<[1], [0], [0], [1], [0, 0, 1, 1], [], []>} : vector<128x256xbf16>, vector<256x128xbf16>, vector<128x128xf32> -> vector<128x128xf32>
    %c0_26 = arith.constant 0 : index
    %c0_27 = arith.constant 0 : index
    %52 = vector.load %arg12[%c0_26, %c0_27] : memref<128x1xf32, #tpu.memory_space<vmem>>, vector<128x1xf32>
    %53 = vector.broadcast %52 : vector<128x1xf32> to vector<128x128xf32>
    %54 = arith.addf %51, %53 : vector<128x128xf32>
    %cst_28 = arith.constant 0.000000e+00 : f32
    %55 = vector.broadcast %cst_28 : f32 to vector<128x128xf32>
    %56 = arith.maximumf %54, %55 : vector<128x128xf32>
    %57 = arith.truncf %56 : vector<128x128xf32> to vector<128x128xbf16>
    %c0_29 = arith.constant 0 : index
    %c0_30 = arith.constant 0 : index
    %58 = vector.load %arg13[%c0_29, %c0_30] : memref<64x128xbf16, #tpu.memory_space<vmem>>, vector<64x128xbf16>
    %cst_31 = arith.constant dense<0.000000e+00> : vector<64x128xf32>
    %59 = tpu.matmul %58, %57, %cst_31 {dimension_numbers = #tpu.dot_dimension_numbers<[1], [0], [0], [1], [0, 0, 1, 1], [], []>} : vector<64x128xbf16>, vector<128x128xbf16>, vector<64x128xf32> -> vector<64x128xf32>
    %c0_32 = arith.constant 0 : index
    %c0_33 = arith.constant 0 : index
    %60 = vector.load %arg14[%c0_32, %c0_33] : memref<64x1xf32, #tpu.memory_space<vmem>>, vector<64x1xf32>
    %61 = vector.broadcast %60 : vector<64x1xf32> to vector<64x128xf32>
    %62 = arith.addf %59, %61 : vector<64x128xf32>
    %cst_34 = arith.constant 0.000000e+00 : f32
    %63 = vector.broadcast %cst_34 : f32 to vector<64x128xf32>
    %64 = arith.maximumf %62, %63 : vector<64x128xf32>
    %65 = arith.truncf %64 : vector<64x128xf32> to vector<64x128xbf16>
    %c0_35 = arith.constant 0 : index
    %c0_36 = arith.constant 0 : index
    %66 = vector.load %arg15[%c0_35, %c0_36] : memref<3x64xbf16, #tpu.memory_space<vmem>>, vector<3x64xbf16>
    %cst_37 = arith.constant dense<0.000000e+00> : vector<3x128xf32>
    %67 = tpu.matmul %66, %65, %cst_37 {dimension_numbers = #tpu.dot_dimension_numbers<[1], [0], [0], [1], [0, 0, 1, 1], [], []>} : vector<3x64xbf16>, vector<64x128xbf16>, vector<3x128xf32> -> vector<3x128xf32>
    %c0_38 = arith.constant 0 : index
    %c0_39 = arith.constant 0 : index
    %68 = vector.load %arg16[%c0_38, %c0_39] : memref<3x1xf32, #tpu.memory_space<vmem>>, vector<3x1xf32>
    %69 = vector.broadcast %68 : vector<3x1xf32> to vector<3x128xf32>
    %70 = arith.addf %67, %69 : vector<3x128xf32>
    %c0_40 = arith.constant 0 : index
    %c0_41 = arith.constant 0 : index
    %71 = vector.load %arg17[%c0_40, %c0_41] : memref<3x128xf32, #tpu.memory_space<vmem>>, vector<3x128xf32>
    tpu.vector_store %arg17[%c0_40, %c0_41], %70 {strides = array<i32>} : memref<3x128xf32, #tpu.memory_space<vmem>>, vector<3x128xf32>,
    return
  }
  func.func @transform_0(%arg0: i32) -> (i32, i32) {
    %c0_i32 = arith.constant 0 : i32
    %c0_i32_0 = arith.constant 0 : i32
    return %c0_i32, %arg0 : i32, i32
  }
  func.func @transform_1(%arg0: i32) -> (i32, i32) {
    %c0_i32 = arith.constant 0 : i32
    %c0_i32_0 = arith.constant 0 : i32
    %c0_i32_1 = arith.constant 0 : i32
    return %c0_i32, %c0_i32_0 : i32, i32
  }
  func.func @transform_2(%arg0: i32) -> (i32, i32) {
    %c0_i32 = arith.constant 0 : i32
    %c0_i32_0 = arith.constant 0 : i32
    %c0_i32_1 = arith.constant 0 : i32
    return %c0_i32, %c0_i32_0 : i32, i32
  }
  func.func @transform_3(%arg0: i32) -> (i32, i32) {
    %c0_i32 = arith.constant 0 : i32
    %c0_i32_0 = arith.constant 0 : i32
    %c0_i32_1 = arith.constant 0 : i32
    return %c0_i32, %c0_i32_0 : i32, i32
  }
  func.func @transform_4(%arg0: i32) -> (i32, i32) {
    %c0_i32 = arith.constant 0 : i32
    %c0_i32_0 = arith.constant 0 : i32
    %c0_i32_1 = arith.constant 0 : i32
    return %c0_i32, %c0_i32_0 : i32, i32
  }
  func.func @transform_5(%arg0: i32) -> (i32, i32) {
    %c0_i32 = arith.constant 0 : i32
    %c0_i32_0 = arith.constant 0 : i32
    %c0_i32_1 = arith.constant 0 : i32
    return %c0_i32, %c0_i32_0 : i32, i32
  }
  func.func @transform_6(%arg0: i32) -> (i32, i32) {
    %c0_i32 = arith.constant 0 : i32
    %c0_i32_0 = arith.constant 0 : i32
    %c0_i32_1 = arith.constant 0 : i32
    return %c0_i32, %c0_i32_0 : i32, i32
  }
  func.func @transform_7(%arg0: i32) -> (i32, i32) {
    %c0_i32 = arith.constant 0 : i32
    %c0_i32_0 = arith.constant 0 : i32
    %c0_i32_1 = arith.constant 0 : i32
    return %c0_i32, %c0_i32_0 : i32, i32
  }
  func.func @transform_8(%arg0: i32) -> (i32, i32) {
    %c0_i32 = arith.constant 0 : i32
    %c0_i32_0 = arith.constant 0 : i32
    %c0_i32_1 = arith.constant 0 : i32
    return %c0_i32, %c0_i32_0 : i32, i32
  }
  func.func @transform_9(%arg0: i32) -> (i32, i32) {
    %c0_i32 = arith.constant 0 : i32
    %c0_i32_0 = arith.constant 0 : i32
    %c0_i32_1 = arith.constant 0 : i32
    return %c0_i32, %c0_i32_0 : i32, i32
  }
  func.func @transform_10(%arg0: i32) -> (i32, i32) {
    %c0_i32 = arith.constant 0 : i32
    %c0_i32_0 = arith.constant 0 : i32
    %c0_i32_1 = arith.constant 0 : i32
    return %c0_i32, %c0_i32_0 : i32, i32
  }
  func.func @transform_11(%arg0: i32) -> (i32, i32) {
    %c0_i32 = arith.constant 0 : i32
    %c0_i32_0 = arith.constant 0 : i32
    %c0_i32_1 = arith.constant 0 : i32
    return %c0_i32, %c0_i32_0 : i32, i32
  }
  func.func @transform_12(%arg0: i32) -> (i32, i32) {
    %c0_i32 = arith.constant 0 : i32
    %c0_i32_0 = arith.constant 0 : i32
    %c0_i32_1 = arith.constant 0 : i32
    return %c0_i32, %c0_i32_0 : i32, i32
  }
  func.func @transform_13(%arg0: i32) -> (i32, i32) {
    %c0_i32 = arith.constant 0 : i32
    %c0_i32_0 = arith.constant 0 : i32
    %c0_i32_1 = arith.constant 0 : i32
    return %c0_i32, %c0_i32_0 : i32, i32
  }
  func.func @transform_14(%arg0: i32) -> (i32, i32) {
    %c0_i32 = arith.constant 0 : i32
    %c0_i32_0 = arith.constant 0 : i32
    %c0_i32_1 = arith.constant 0 : i32
    return %c0_i32, %c0_i32_0 : i32, i32
  }
  func.func @transform_15(%arg0: i32) -> (i32, i32) {
    %c0_i32 = arith.constant 0 : i32
    %c0_i32_0 = arith.constant 0 : i32
    %c0_i32_1 = arith.constant 0 : i32
    return %c0_i32, %c0_i32_0 : i32, i32
  }
  func.func @transform_16(%arg0: i32) -> (i32, i32) {
    %c0_i32 = arith.constant 0 : i32
    %c0_i32_0 = arith.constant 0 : i32
    return %c0_i32, %arg0 : i32, i32
  }
}

</mosaic_0001>

<bundles_post_ra>
// kernel: p2sfield_forward.4
= control target key start
LH: loop header
LB: loop body
LE: loop exit
PB: predicated region body
PF: predicated region fallthrough
CT: control target
= control target key end

     0   :  { %s467_s9 = smov 0   ;;  %s532_s0 = inlined_call_operand.vmem [shape: f32[3,256], index: 0, kind: input, shape index: {}]   ;;  %s533_s1 = inlined_call_operand.vmem [shape: f32[64,3], index: 1, kind: input, shape index: {}]   ;;  %s534_s2 = inlined_call_operand.vmem [shape: f32[2,64,2], index: 2, kind: output, shape index: {}]  }
   0x1 LB: > { %s410_s10 = sadd.s32 4294967295, %s447_s9   ;;  %p414_p0 = scmp.ge.s32.totalorder %s447_s9, 1  ;;  %s447_s9 = sphi %s467_s9, %s12_s9  }
   0x2   : > { %p111_p1 = scmp.lt.s32.totalorder %s447_s9, 3 }
   0x4   : > { %p112_p2 = pnand %p414_p0, %p111_p1 }
   0x5   : > { %p132_p3 = scmp.lt.s32.totalorder (!%p112_p2), %s410_s10, 1 }
   0x6   : > { %115 = sbr.rel (%p112_p2) target bundleno = 334 (0x14e), region = 28 }
   0xb   : > { %v145_v0 = vld [vmem:[%s533_s1 + $0x20] sm:$0xff]  ;;  %v143_v1 = vld [vmem:[%s533_s1 + $0x10] sm:$0xff]  ;;  %v449_v3 = vmov 0   ;;  %v146_v4 = vld [vmem:[%s533_s1 + $0x28] sm:$0xff]  ;;  %v450_v9 = vmov 1   ;;  %v451_v10 = vmov 2  }
   0xc   : > { %v141_v2 = vld [vmem:[%s533_s1] sm:$0xff]  ;;  %434 = vset.pattern.permute.xlu2 %v449_v3  ;;  %433 = vset.pattern.permute.xlu1 %v449_v3  ;;  %v144_v5 = vld [vmem:[%s533_s1 + $0x18] sm:$0xff]  ;;  %v142_v6 = vld [vmem:[%s533_s1 + $0x8] sm:$0xff]  ;;  %s536_s10 = smov (!%p132_p3, %s410_s10), 1  ;;  %vm337_vm0 = vcmask 7168   ;;  %vm346_vm1 = vcmask 15360  }
   0xd   : > { %432 = vset.pattern.permute.xlu0 %v449_v3  ;;  %172 = vperm.xlu2 %434, %v145_v0   ;;  %v148_v7 = vld [vmem:[%s533_s1 + $0x38] sm:$0xff]  ;;  %v147_v8 = vld [vmem:[%s533_s1 + $0x30] sm:$0xff]  ;;  %s415_s27 = sshll.u32 %s536_s10, 2  ;;  %s420_s3 = sshll.u32 %s536_s10, 6 }
   0xe   : > { %162 = vperm.xlu1 %433, %v143_v1   ;;  %152 = vperm.xlu0 %432, %v141_v2   ;;  %s135_s30 = scalar_lea.vmem %s532_s0, %s415_s27  ;;  %s140_s6 = scalar_lea.vmem %s534_s2, %s420_s3 }
   0xf   : > { %v149_v20 = vld [vmem:[%s135_s30] sm:$0x7] }
  0x10   : > { %v231_v21 = vperm.slane %v149_v20, 1  ;;  %v190_v22 = vperm.slane %v149_v20, 0  ;;  %v280_v25 = vperm.slane %v149_v20, 2 }
  0x15   : > { %177 = vperm.xlu2 %434, %v146_v4  }
  0x16   : > { %167 = vperm.xlu1 %433, %v144_v5   ;;  %157 = vperm.xlu0 %432, %v142_v6  }
  0x1d   : > { %435 = vset.pattern.permute.xlu2 %v450_v9 }
  0x1e   : > { %187 = vperm.xlu1 %433, %v148_v7   ;;  %182 = vperm.xlu0 %432, %v147_v8  }
  0x1f   : > { %200 = vperm.xlu2 %435, %v141_v2  }
  0x26   : > { %437 = vset.pattern.permute.xlu1 %v450_v9  ;;  %436 = vset.pattern.permute.xlu0 %v450_v9 }
  0x27   : > { %208 = vperm.xlu1 %437, %v143_v1   ;;  %212 = vperm.xlu2 %435, %v144_v5  }
  0x28   : > { %204 = vperm.xlu0 %436, %v142_v6  }
  0x2f   : > { %216 = vperm.xlu1 %437, %v145_v0   ;;  %220 = vperm.xlu2 %435, %v146_v4  }
  0x30   : > { %224 = vperm.xlu0 %436, %v147_v8  }
  0x37   : > { %228 = vperm.xlu1 %437, %v148_v7   ;;  %438 = vset.pattern.permute.xlu2 %v451_v10 }
  0x38   : > { %439 = vset.pattern.permute.xlu0 %v451_v10  ;;  %249 = vperm.xlu2 %438, %v141_v2  }
  0x39   : > { %253 = vperm.xlu0 %439, %v142_v6  }
  0x3f   : > { %440 = vset.pattern.permute.xlu1 %v451_v10 }
  0x40   : > { %257 = vperm.xlu1 %440, %v143_v1   ;;  %261 = vperm.xlu2 %438, %v144_v5  }
  0x41   : > { %273 = vperm.xlu0 %439, %v147_v8  }
  0x48   : > { %265 = vperm.xlu1 %440, %v145_v0   ;;  %269 = vperm.xlu2 %438, %v146_v4  }
  0x50   : > { %277 = vperm.xlu1 %440, %v148_v7  }
  0x67   : > { %v173_v11 = vpop.permute.xlu2 %172 }
  0x68   : > { %v195_v0 = vmul.f32 %v190_v22, %v173_v11 }
  0x6f   : > { %v178_v12 = vpop.permute.xlu2 %177 }
  0x70   : > { %v196_v53 = vmul.f32 %v190_v22, %v178_v12 }
  0x79   : > { %v201_v13 = vpop.permute.xlu2 %200 }
  0x7a   : > { %v232_v23 = vmul.f32 %v231_v21, %v201_v13 }
  0x80   : > { %v163_v14 = vpop.permute.xlu1 %162  ;;  %v153_v15 = vpop.permute.xlu0 %152 }
  0x81   : > { %v213_v16 = vpop.permute.xlu2 %212  ;;  %v191_v24 = vmul.f32 %v190_v22, %v153_v15  ;;  %v193_v52 = vmul.f32 %v190_v22, %v163_v14 }
  0x82   : > { %v235_v32 = vmul.f32 %v231_v21, %v213_v16 }
  0x83   : > { %v240_v29 = vadd.f32 %v232_v23, %v191_v24 }
  0x88   : > { %v168_v17 = vpop.permute.xlu1 %167  ;;  %v158_v18 = vpop.permute.xlu0 %157 }
  0x89   : > { %v221_v19 = vpop.permute.xlu2 %220  ;;  %v194_v33 = vmul.f32 %v190_v22, %v168_v17  ;;  %v192_v44 = vmul.f32 %v190_v22, %v158_v18 }
  0x8a   : > { %v237_v51 = vmul.f32 %v231_v21, %v221_v19 }
  0x8b   : > { %v243_v37 = vadd.f32 %v235_v32, %v194_v33 }
  0x8c   : > { %v245_v58 = vadd.f32 %v237_v51, %v196_v53 }
  0x90   : > { %v188_v26 = vpop.permute.xlu1 %187  ;;  %v183_v27 = vpop.permute.xlu0 %182 }
  0x91   : > { %v197_v1 = vmul.f32 %v190_v22, %v183_v27  ;;  %v198_v12 = vmul.f32 %v190_v22, %v188_v26 }
  0x92   : > { %v250_v28 = vpop.permute.xlu2 %249 }
  0x93   : > { %v281_v30 = vmul.f32 %v280_v25, %v250_v28 }
  0x95   : > { %v289_v31 = vadd.f32 %v281_v30, %v240_v29 }
  0x97   : > { %297 = vadd.xlane.f32.xlu2 %v289_v31  ;;  %v313_v9 = vmul.f32 %v289_v31, %v289_v31 }
  0x99   : > { %v209_v34 = vpop.permute.xlu1 %208 }
  0x9a   : > { %v205_v35 = vpop.permute.xlu0 %204  ;;  %v262_v36 = vpop.permute.xlu2 %261  ;;  %v234_v49 = vmul.f32 %v231_v21, %v209_v34 }
  0x9b   : > { %v284_v38 = vmul.f32 %v280_v25, %v262_v36  ;;  %v233_v42 = vmul.f32 %v231_v21, %v205_v35 }
  0x9c   : > { %v242_v56 = vadd.f32 %v234_v49, %v193_v52 }
  0x9d   : > { %v292_v39 = vadd.f32 %v284_v38, %v243_v37  ;;  %v241_v46 = vadd.f32 %v233_v42, %v192_v44 }
  0x9f   : > { %303 = vadd.xlane.f32.xlu2 %v292_v39  ;;  %v316_v11 = vmul.f32 %v292_v39, %v292_v39 }
  0xa1   : > { %v217_v40 = vpop.permute.xlu1 %216 }
  0xa2   : > { %v225_v41 = vpop.permute.xlu0 %224  ;;  %v270_v50 = vpop.permute.xlu2 %269  ;;  %v236_v62 = vmul.f32 %v231_v21, %v217_v40 }
  0xa3   : > { %v286_v54 = vmul.f32 %v280_v25, %v270_v50  ;;  %v238_v63 = vmul.f32 %v231_v21, %v225_v41 }
  0xa4   : > { %v244_v4 = vadd.f32 %v236_v62, %v195_v0 }
  0xa5   : > { %v294_v61 = vadd.f32 %v286_v54, %v245_v58  ;;  %v246_v5 = vadd.f32 %v238_v63, %v197_v1 }
  0xa7   : > { %v318_v23 = vmul.f32 %v294_v61, %v294_v61 }
  0xa9   : > { %v229_v43 = vpop.permute.xlu1 %228 }
  0xaa   : > { %v239_v10 = vmul.f32 %v231_v21, %v229_v43 }
  0xab   : > { %v254_v45 = vpop.permute.xlu0 %253 }
  0xac   : > { %v282_v47 = vmul.f32 %v280_v25, %v254_v45  ;;  %v247_v14 = vadd.f32 %v239_v10, %v198_v12 }
  0xae   : > { %v290_v48 = vadd.f32 %v282_v47, %v241_v46 }
  0xb0   : > { %299 = vadd.xlane.f32.xlu0 %v290_v48  ;;  %v314_v16 = vmul.f32 %v290_v48, %v290_v48 }
  0xb2   : > { %v258_v55 = vpop.permute.xlu1 %257 }
  0xb3   : > { %v283_v57 = vmul.f32 %v280_v25, %v258_v55  ;;  %v274_v60 = vpop.permute.xlu0 %273 }
  0xb4   : > { %v287_v2 = vmul.f32 %v280_v25, %v274_v60 }
  0xb5   : > { %v291_v59 = vadd.f32 %v283_v57, %v242_v56 }
  0xb6   : > { %v295_v7 = vadd.f32 %v287_v2, %v246_v5 }
  0xb7   : > { %301 = vadd.xlane.f32.xlu1 %v291_v59  ;;  %v315_v19 = vmul.f32 %v291_v59, %v291_v59 }
  0xb8   : > { %307 = vadd.xlane.f32.xlu0 %v294_v61  ;;  %v319_v20 = vmul.f32 %v295_v7, %v295_v7 }
  0xba   : > { %v266_v3 = vpop.permute.xlu1 %265 }
  0xbb   : > { %v285_v6 = vmul.f32 %v280_v25, %v266_v3 }
  0xbd   : > { %v293_v8 = vadd.f32 %v285_v6, %v244_v4 }
  0xbf   : > { %309 = vadd.xlane.f32.xlu1 %v295_v7  ;;  %305 = vadd.xlane.f32.xlu2 %v293_v8  ;;  %v317_v18 = vmul.f32 %v293_v8, %v293_v8 }
  0xc0   : > { %321 = vadd.xlane.f32.xlu0 %v313_v9 }
  0xc2   : > { %v278_v13 = vpop.permute.xlu1 %277 }
  0xc3   : > { %v288_v15 = vmul.f32 %v280_v25, %v278_v13 }
  0xc5   : > { %v296_v17 = vadd.f32 %v288_v15, %v247_v14 }
  0xc7   : > { %323 = vadd.xlane.f32.xlu1 %v314_v16  ;;  %311 = vadd.xlane.f32.xlu2 %v296_v17  ;;  %v320_v21 = vmul.f32 %v296_v17, %v296_v17 }
  0xc8   : > { %327 = vadd.xlane.f32.xlu0 %v316_v11 }
  0xcf   : > { %329 = vadd.xlane.f32.xlu1 %v317_v18  ;;  %325 = vadd.xlane.f32.xlu2 %v315_v19 }
  0xd0   : > { %333 = vadd.xlane.f32.xlu0 %v319_v20 }
  0xd7   : > { %335 = vadd.xlane.f32.xlu1 %v320_v21  ;;  %331 = vadd.xlane.f32.xlu2 %v318_v23 }
 0x10a   : > { %v298_v22 = vpop.xlane.xlu2 %297 }
 0x112   : > { %v304_v25 = vpop.xlane.xlu2 %303 }
 0x123   : > { %v300_v24 = vpop.xlane.xlu0 %299 }
 0x12a   : > { %v302_v26 = vpop.xlane.xlu1 %301 }
 0x12b   : > { %v308_v27 = vpop.xlane.xlu0 %307 }
 0x132   : > { %v310_v28 = vpop.xlane.xlu1 %309  ;;  %v306_v29 = vpop.xlane.xlu2 %305 }
 0x133   : > { %v322_v30 = vpop.xlane.xlu0 %321 }
 0x134   : > { %v338_v31 = vsel %vm337_vm0, %v298_v22, %v322_v30 }
 0x135   : > { %347 = vst.msk [vmem:[%s140_s6] sm:$0xff] %vm346_vm1, %v338_v31 }
 0x13a   : > { %v324_v32 = vpop.xlane.xlu1 %323  ;;  %v312_v33 = vpop.xlane.xlu2 %311 }
 0x13b   : > { %v339_v34 = vsel %vm337_vm0, %v300_v24, %v324_v32  ;;  %v328_v35 = vpop.xlane.xlu0 %327 }
 0x13c   : > { %348 = vst.msk [vmem:[%s140_s6 + $0x8] sm:$0xff] %vm346_vm1, %v339_v34  ;;  %v341_v36 = vsel %vm337_vm0, %v304_v25, %v328_v35 }
 0x13d   : > { %350 = vst.msk [vmem:[%s140_s6 + $0x18] sm:$0xff] %vm346_vm1, %v341_v36 }
 0x142   : > { %v330_v37 = vpop.xlane.xlu1 %329  ;;  %v326_v38 = vpop.xlane.xlu2 %325 }
 0x143   : > { %v342_v39 = vsel %vm337_vm0, %v306_v29, %v330_v37  ;;  %v340_v40 = vsel %vm337_vm0, %v302_v26, %v326_v38  ;;  %v334_v41 = vpop.xlane.xlu0 %333 }
 0x144   : > { %351 = vst.msk [vmem:[%s140_s6 + $0x20] sm:$0xff] %vm346_vm1, %v342_v39  ;;  %v344_v42 = vsel %vm337_vm0, %v310_v28, %v334_v41 }
 0x145   : > { %349 = vst.msk [vmem:[%s140_s6 + $0x10] sm:$0xff] %vm346_vm1, %v340_v40 }
 0x146   : > { %353 = vst.msk [vmem:[%s140_s6 + $0x30] sm:$0xff] %vm346_vm1, %v344_v42 }
 0x14a   : > { %v336_v43 = vpop.xlane.xlu1 %335  ;;  %v332_v44 = vpop.xlane.xlu2 %331 }
 0x14b   : > { %v345_v45 = vsel %vm337_vm0, %v312_v33, %v336_v43  ;;  %v343_v46 = vsel %vm337_vm0, %v308_v27, %v332_v44 }
 0x14c   : > { %354 = vst.msk [vmem:[%s140_s6 + $0x38] sm:$0xff] %vm346_vm1, %v345_v45 }
 0x14d   : > { %352 = vst.msk [vmem:[%s140_s6 + $0x28] sm:$0xff] %vm346_vm1, %v343_v46 }
 0x14e PF: > { %s12_s9 = sadd.s32 1, %s447_s9  }
 0x14f   : > { %p9_p4 = scmp.ge.s32.totalorder %s12_s9, 4  }
 0x151   :  { %11 = sbr.rel (!%p9_p4) target bundleno = 1 (0x1), region = 58 }

// kernel: p2sfield_forward.5
= control target key start
LH: loop header
LB: loop body
LE: loop exit
PB: predicated region body
PF: predicated region fallthrough
CT: control target
= control target key end

     0   :  { %s942_s18 = smov 0   ;;  %s1185_s0 = inlined_call_operand.vmem [shape: f32[3,256], index: 0, kind: input, shape index: {}]   ;;  %s1186_s1 = inlined_call_operand.vmem [shape: f32[64,3], index: 1, kind: input, shape index: {}]   ;;  %s1187_s2 = inlined_call_operand.vmem [shape: f32[64,1], index: 2, kind: input, shape index: {}]   ;;  %s1188_s3 = inlined_call_operand.vmem [shape: f32[64,1], index: 3, kind: input, shape index: {}]   ;;  %s1189_s4 = inlined_call_operand.vmem [shape: bf16[128,64], index: 4, kind: input, shape index: {}]   ;;  %s1190_s5 = inlined_call_operand.vmem [shape: f32[2,128,2], index: 5, kind: output, shape index: {}]  }
   0x1 LB: > { %s802_s19 = sadd.s32 4294967295, %s907_s18   ;;  %p806_p0 = scmp.ge.s32.totalorder %s907_s18, 1  ;;  %s907_s18 = sphi %s942_s18, %s15_s18  }
   0x2   : > { %p186_p1 = scmp.lt.s32.totalorder %s907_s18, 3 }
   0x4   : > { %p187_p2 = pnand %p806_p0, %p186_p1 }
   0x5   : > { %p213_p3 = scmp.lt.s32.totalorder (!%p187_p2), %s802_s19, 1 }
   0x6   : > { %190 = sbr.rel (%p187_p2) target bundleno = 588 (0x24c), region = 40 }
   0xb   : > { %v227_v0 = vld [vmem:[%s1186_s1 + $0x20] sm:$0xff]  ;;  %v225_v1 = vld [vmem:[%s1186_s1 + $0x10] sm:$0xff]  ;;  %v959_v2 = vld [vmem:[%s1186_s1 + $0x8] sm:$0xff]  ;;  %v909_v3 = vmov 1   ;;  %v910_v4 = vmov 0   ;;  %v911_v10 = vmov 2  }
   0xc   : > { %887 = vset.pattern.permute.xlu0 %v909_v3  ;;  %885 = vset.pattern.permute.xlu2 %v910_v4  ;;  %v228_v5 = vld [vmem:[%s1186_s1 + $0x28] sm:$0xff]  ;;  %v226_v6 = vld [vmem:[%s1186_s1 + $0x18] sm:$0xff]  ;;  %v229_v7 = vld [vmem:[%s1186_s1 + $0x30] sm:$0xff]  ;;  %s1192_s19 = smov (!%p213_p3, %s802_s19), 1  ;;  %vm559_vm0 = vcmask 523264   ;;  %vm713_vm1 = vcmask 7168  }
   0xd   : > { %884 = vset.pattern.permute.xlu1 %v910_v4  ;;  %254 = vperm.xlu2 %885, %v227_v0   ;;  %v230_v8 = vld [vmem:[%s1186_s1 + $0x38] sm:$0xff]  ;;  %v223_v9 = vld [vmem:[%s1186_s1] sm:$0xff]  ;;  %v441_v11 = vld [vmem:[%s1188_s3 + $0x30] sm:$0xff]  ;;  %s807_s16 = sshll.u32 %s1192_s19, 2  ;;  %s852_s17 = sshll.u32 %s1192_s19, 7  ;;  %vm730_vm2 = vcmask 15360  }
   0xe   : > { %244 = vperm.xlu1 %884, %v225_v1   ;;  %286 = vperm.xlu0 %887, %v959_v2   ;;  %v385_v12 = vld [vmem:[%s1187_s2 + $0x30] sm:$0xff]  ;;  %v386_v13 = vld [vmem:[%s1187_s2 + $0x38] sm:$0xff]  ;;  %v384_v14 = vld [vmem:[%s1187_s2 + $0x28] sm:$0xff]  ;;  %s216_s21 = scalar_lea.vmem %s1185_s0, %s807_s16  ;;  %s1132_s22 = scalar_lea.vmem %s1190_s5, %s852_s17 }
   0xf   : > { %v442_v15 = vld [vmem:[%s1188_s3 + $0x38] sm:$0xff]  ;;  %v383_v17 = vld [vmem:[%s1187_s2 + $0x20] sm:$0xff]  ;;  %v440_v19 = vld [vmem:[%s1188_s3 + $0x28] sm:$0xff] }
  0x10   : > { %v438_v16 = vld [vmem:[%s1188_s3 + $0x18] sm:$0xff]  ;;  %v439_v18 = vld [vmem:[%s1188_s3 + $0x20] sm:$0xff]  ;;  %v381_v21 = vld [vmem:[%s1187_s2 + $0x10] sm:$0xff] }
  0x11   : > { %v437_v22 = vld [vmem:[%s1188_s3 + $0x10] sm:$0xff]  ;;  %v382_v24 = vld [vmem:[%s1187_s2 + $0x18] sm:$0xff]  ;;  %v380_v25 = vld [vmem:[%s1187_s2 + $0x8] sm:$0xff] }
  0x12   : > { %v379_v26 = vld [vmem:[%s1187_s2] sm:$0xff]  ;;  %v436_v30 = vld [vmem:[%s1188_s3 + $0x8] sm:$0xff] }
  0x13   : > { %v231_v31 = vld [vmem:[%s216_s21] sm:$0x7] }
  0x14   : > { %v435_v32 = vld [vmem:[%s1188_s3] sm:$0xff]  ;;  %v1051_v33 = vperm.slane %v231_v31, 1  ;;  %v1053_v35 = vperm.slane %v231_v31, 0  ;;  %v1063_v50 = vperm.slane %v231_v31, 2 }
  0x15   : > { %259 = vperm.xlu2 %885, %v228_v5  }
  0x16   : > { %249 = vperm.xlu1 %884, %v226_v6   ;;  %306 = vperm.xlu0 %887, %v229_v7  }
  0x1d   : > { %886 = vset.pattern.permute.xlu2 %v909_v3 }
  0x1e   : > { %269 = vperm.xlu1 %884, %v230_v8   ;;  %890 = vset.pattern.permute.xlu0 %v911_v10 }
  0x1f   : > { %359 = vperm.xlu0 %890, %v230_v8   ;;  %282 = vperm.xlu2 %886, %v223_v9  }
  0x26   : > { %888 = vset.pattern.permute.xlu1 %v909_v3 }
  0x27   : > { %290 = vperm.xlu1 %888, %v225_v1   ;;  %331 = vperm.xlu0 %890, %v223_v9  }
  0x28   : > { %294 = vperm.xlu2 %886, %v226_v6  }
  0x2f   : > { %298 = vperm.xlu1 %888, %v227_v0   ;;  %898 = vset.pattern.permute.xlu0 %v910_v4 }
  0x30   : > { %302 = vperm.xlu2 %886, %v228_v5   ;;  %234 = vperm.xlu0 %898, %v223_v9  }
  0x37   : > { %310 = vperm.xlu1 %888, %v230_v8  }
  0x38   : > { %889 = vset.pattern.permute.xlu2 %v911_v10  ;;  %239 = vperm.xlu0 %898, %v959_v2  }
  0x39   : > { %355 = vperm.xlu2 %889, %v229_v7  }
  0x3f   : > { %891 = vset.pattern.permute.xlu1 %v911_v10 }
  0x40   : > { %347 = vperm.xlu1 %891, %v227_v0   ;;  %264 = vperm.xlu0 %898, %v229_v7  }
  0x41   : > { %351 = vperm.xlu2 %889, %v228_v5  }
  0x48   : > { %892 = vset.pattern.permute.xlu1 %v910_v4  ;;  %475 = vperm.xlu0 %898, %v441_v11  }
  0x49   : > { %893 = vset.pattern.permute.xlu2 %v910_v4  ;;  %419 = vperm.xlu1 %892, %v385_v12  }
  0x4a   : > { %424 = vperm.xlu2 %893, %v386_v13  }
  0x50   : > { %414 = vperm.xlu0 %898, %v384_v14  }
  0x51   : > { %480 = vperm.xlu1 %892, %v442_v15  }
  0x52   : > { %894 = vset.pattern.permute.xlu2 %v911_v10 }
  0x53   : > { %339 = vperm.xlu2 %894, %v225_v1  }
  0x58   : > { %460 = vperm.xlu0 %898, %v438_v16  }
  0x59   : > { %895 = vset.pattern.permute.xlu1 %v911_v10 }
  0x5a   : > { %343 = vperm.xlu1 %895, %v226_v6  }
  0x5b   : > { %896 = vset.pattern.permute.xlu2 %v910_v4 }
  0x5c   : > { %409 = vperm.xlu2 %896, %v383_v17  }
  0x62   : > { %897 = vset.pattern.permute.xlu1 %v910_v4 }
  0x63   : > { %465 = vperm.xlu1 %897, %v439_v18  }
  0x64   : > { %470 = vperm.xlu2 %896, %v440_v19  }
  0x67   : > { %v1012_v20 = vpop.permute.xlu2 %254 }
  0x6b   : > { %899 = vset.pattern.permute.xlu1 %v911_v10 }
  0x6c   : > { %399 = vperm.xlu2 %896, %v381_v21   ;;  %335 = vperm.xlu1 %899, %v959_v2  }
  0x6f   : > { %v1021_v23 = vpop.permute.xlu2 %259 }
  0x74   : > { %455 = vperm.xlu2 %896, %v437_v22   ;;  %900 = vset.pattern.permute.xlu1 %v910_v4 }
  0x75   : > { %404 = vperm.xlu1 %900, %v382_v24  }
  0x79   : > { %v283_v27 = vpop.permute.xlu2 %282 }
  0x7a   : > { %v314_v53 = vmul.f32 %v1051_v33, %v283_v27 }
  0x7c   : > { %394 = vperm.xlu2 %896, %v380_v25   ;;  %v278_v25 = vmul.f32 %v1053_v35, %v1021_v23 }
  0x7d   : > { %389 = vperm.xlu1 %900, %v379_v26  }
  0x80   : > { %v245_v28 = vpop.permute.xlu1 %244  ;;  %v1043_v29 = vpop.permute.xlu0 %286 }
  0x81   : > { %v275_v46 = vmul.f32 %v1053_v35, %v245_v28  ;;  %v277_v28 = vmul.f32 %v1053_v35, %v1012_v20 }
  0x82   : > { %v295_v34 = vpop.permute.xlu2 %294 }
  0x83   : > { %v317_v36 = vmul.f32 %v1051_v33, %v295_v34 }
  0x84   : > { %450 = vperm.xlu2 %896, %v436_v30  }
  0x85   : > { %445 = vperm.xlu1 %900, %v435_v32  }
  0x88   : > { %v250_v37 = vpop.permute.xlu1 %249  ;;  %v307_v38 = vpop.permute.xlu0 %306 }
  0x89   : > { %v276_v39 = vmul.f32 %v1053_v35, %v250_v37  ;;  %v320_v1 = vmul.f32 %v1051_v33, %v307_v38 }
  0x8a   : > { %v303_v43 = vpop.permute.xlu2 %302 }
  0x8b   : > { %v1057_v40 = vadd.f32 %v317_v36, %v276_v39  ;;  %v319_v22 = vmul.f32 %v1051_v33, %v303_v43 }
  0x8d   : > { %v327_v30 = vadd.f32 %v319_v22, %v278_v25 }
  0x90   : > { %v270_v41 = vpop.permute.xlu1 %269 }
  0x91   : > { %v360_v42 = vpop.permute.xlu0 %359  ;;  %v280_v3 = vmul.f32 %v1053_v35, %v270_v41 }
  0x92   : > { %v370_v6 = vmul.f32 %v1063_v50, %v360_v42 }
  0x93   : > { %v356_v49 = vpop.permute.xlu2 %355 }
  0x94   : > { %v369_v7 = vmul.f32 %v1063_v50, %v356_v49 }
  0x99   : > { %v291_v44 = vpop.permute.xlu1 %290  ;;  %v332_v45 = vpop.permute.xlu0 %331 }
  0x9a   : > { %v316_v47 = vmul.f32 %v1051_v33, %v291_v44  ;;  %v363_v54 = vmul.f32 %v1063_v50, %v332_v45 }
  0x9b   : > { %v352_v57 = vpop.permute.xlu2 %351 }
  0x9c   : > { %v1061_v48 = vadd.f32 %v316_v47, %v275_v46  ;;  %v368_v26 = vmul.f32 %v1063_v50, %v352_v57 }
  0x9e   : > { %v376_v38 = vadd.f32 %v368_v26, %v327_v30 }
  0xa1   : > { %v299_v51 = vpop.permute.xlu1 %298 }
  0xa2   : > { %v235_v52 = vpop.permute.xlu0 %234  ;;  %v318_v27 = vmul.f32 %v1051_v33, %v299_v51 }
  0xa3   : > { %v273_v55 = vmul.f32 %v1053_v35, %v235_v52 }
  0xa4   : > { %v425_v61 = vpop.permute.xlu2 %424  ;;  %v326_v37 = vadd.f32 %v318_v27, %v277_v28 }
  0xa5   : > { %v322_v56 = vadd.f32 %v314_v53, %v273_v55 }
  0xa7   : > { %v1068_v58 = vadd.f32 %v363_v54, %v322_v56 }
  0xa9   : > { %v311_v59 = vpop.permute.xlu1 %310 }
  0xaa   : > { %v1070_v60 = vpop.permute.xlu0 %239  ;;  %v321_v2 = vmul.f32 %v1051_v33, %v311_v59  ;;  %v315_v59 = vmul.f32 %v1051_v33, %v1043_v29 }
  0xac   : > { %v329_v8 = vadd.f32 %v321_v2, %v280_v3 }
  0xad   : > { %v340_v5 = vpop.permute.xlu2 %339 }
  0xae   : > { %v378_v12 = vadd.f32 %v370_v6, %v329_v8  ;;  %v365_v51 = vmul.f32 %v1063_v50, %v340_v5 }
  0xb0   : > { %v434_v15 = vmul.f32 %v425_v61, %v378_v12  ;;  %v373_v54 = vadd.f32 %v365_v51, %v1061_v48  ;;  %v274_v61 = vmul.f32 %v1053_v35, %v1070_v60  ;;  %v853_v12 = vld [vmem:[%s1189_s4] sm:$0xff] }
  0xb2   : > { %v348_v62 = vpop.permute.xlu1 %347  ;;  %v265_v63 = vpop.permute.xlu0 %264 }
  0xb3   : > { %v279_v0 = vmul.f32 %v1053_v35, %v265_v63  ;;  %v367_v31 = vmul.f32 %v1063_v50, %v348_v62 }
  0xb5   : > { %v328_v4 = vadd.f32 %v320_v1, %v279_v0  ;;  %v375_v23 = vadd.f32 %v367_v31, %v326_v37 }
  0xb6   : > { %v410_v16 = vpop.permute.xlu2 %409 }
  0xb7   : > { %v377_v10 = vadd.f32 %v369_v7, %v328_v4  ;;  %v431_v41 = vmul.f32 %v410_v16, %v375_v23  ;;  %v323_v4 = vadd.f32 %v315_v59, %v274_v61  ;;  %v856_v16 = vld [vmem:[%s1189_s4 + $0x18] sm:$0xff] }
  0xba   : > { %v476_v13 = vpop.permute.xlu0 %475 }
  0xbb   : > { %v420_v9 = vpop.permute.xlu1 %419 }
  0xbc   : > { %v433_v11 = vmul.f32 %v420_v9, %v377_v10 }
  0xbe   : > { %v489_v14 = vadd.f32 %v476_v13, %v433_v11  ;;  %v471_v34 = vpop.permute.xlu2 %470  ;;  %v855_v13 = vld [vmem:[%s1189_s4 + $0x10] sm:$0xff] }
  0xc0   : > { %v497_v19 = vmax.f32 %v489_v14, 0.0  ;;  %v859_v14 = vld [vmem:[%s1189_s4 + $0x30] sm:$0xff] }
  0xc2   : > { %v415_v36 = vpop.permute.xlu0 %414 }
  0xc3   : > { %v481_v17 = vpop.permute.xlu1 %480  ;;  %v432_v39 = vmul.f32 %v415_v36, %v376_v38 }
  0xc4   : > { %v490_v18 = vadd.f32 %v481_v17, %v434_v15  ;;  %v854_v15 = vld [vmem:[%s1189_s4 + $0x8] sm:$0xff]  ;;  %v860_v17 = vld [vmem:[%s1189_s4 + $0x38] sm:$0xff] }
  0xc5   : > { %v488_v42 = vadd.f32 %v471_v34, %v432_v39 }
  0xc6   : > { %v498_v21 = vmax.f32 %v490_v18, 0.0  ;;  %v400_v45 = vpop.permute.xlu2 %399  ;;  %v858_v18 = vld [vmem:[%s1189_s4 + $0x28] sm:$0xff] }
  0xc7   : > { %v496_v46 = vmax.f32 %v488_v42, 0.0  ;;  %v429_v55 = vmul.f32 %v400_v45, %v373_v54 }
  0xc8   : > { %v502_v24 = vpack.c.bf16 %v498_v21, %v497_v19 }
  0xca   : > { %588 = vmatpush.bf16.msra.mxu0 %v502_v24  ;;  %861 = vmatpush.bf16.msra.mxu1 %v502_v24  ;;  %v461_v0 = vpop.permute.xlu0 %460 }
  0xcb   : > { %862 = vmatpush.bf16.msra.mxu2 %v502_v24  ;;  %863 = vmatpush.bf16.msra.mxu3 %v502_v24 }
  0xcc   : > { %v344_v32 = vpop.permute.xlu1 %343 }
  0xcd   : > { %v366_v53 = vmul.f32 %v1063_v50, %v344_v32 }
  0xce   : > { %v456_v52 = vpop.permute.xlu2 %455 }
  0xcf   : > { %v374_v56 = vadd.f32 %v366_v53, %v1057_v40  ;;  %v485_v62 = vadd.f32 %v456_v52, %v429_v55 }
  0xd1   : > { %v493_v5 = vmax.f32 %v485_v62, 0.0 }
  0xd5   : > { %v466_v43 = vpop.permute.xlu1 %465 }
  0xd6   : > { %v487_v44 = vadd.f32 %v466_v43, %v431_v41  ;;  %v395_v3 = vpop.permute.xlu2 %394 }
  0xd8   : > { %v495_v47 = vmax.f32 %v487_v44, 0.0 }
  0xda   : > { %v501_v49 = vpack.c.bf16 %v496_v46, %v495_v47 }
  0xdc   : > { %589 = vmatpush.bf16.msra.mxu0 %v501_v49  ;;  %864 = vmatpush.bf16.msra.mxu1 %v501_v49 }
  0xdd   : > { %865 = vmatpush.bf16.msra.mxu2 %v501_v49  ;;  %866 = vmatpush.bf16.msra.mxu3 %v501_v49 }
  0xde   : > { %v336_v20 = vpop.permute.xlu1 %335  ;;  %v451_v33 = vpop.permute.xlu2 %450 }
  0xdf   : > { %v364_v1 = vmul.f32 %v1063_v50, %v336_v20 }
  0xe1   : > { %v372_v6 = vadd.f32 %v364_v1, %v323_v4 }
  0xe3   : > { %v428_v29 = vmul.f32 %v395_v3, %v372_v6 }
  0xe5   : > { %v484_v60 = vadd.f32 %v451_v33, %v428_v29 }
  0xe7   : > { %v405_v57 = vpop.permute.xlu1 %404  ;;  %v492_v10 = vmax.f32 %v484_v60, 0.0 }
  0xe8   : > { %v430_v63 = vmul.f32 %v405_v57, %v374_v56 }
  0xea   : > { %v486_v2 = vadd.f32 %v461_v0, %v430_v63 }
  0xec   : > { %v494_v48 = vmax.f32 %v486_v2, 0.0 }
  0xee   : > { %v500_v7 = vpack.c.bf16 %v494_v48, %v493_v5 }
  0xef   : > { %v390_v40 = vpop.permute.xlu1 %389 }
  0xf0   : > { %590 = vmatpush.bf16.msra.mxu0 %v500_v7  ;;  %867 = vmatpush.bf16.msra.mxu1 %v500_v7  ;;  %v427_v35 = vmul.f32 %v390_v40, %v1068_v58  ;;  %v857_v58 = vld [vmem:[%s1189_s4 + $0x20] sm:$0xff] }
  0xf1   : > { %868 = vmatpush.bf16.msra.mxu2 %v500_v7  ;;  %869 = vmatpush.bf16.msra.mxu3 %v500_v7 }
  0xf7   : > { %v446_v8 = vpop.permute.xlu1 %445 }
  0xf8   : > { %v483_v9 = vadd.f32 %v446_v8, %v427_v35 }
  0xfa   : > { %v491_v50 = vmax.f32 %v483_v9, 0.0 }
  0xfc   : > { %v499_v11 = vpack.c.bf16 %v492_v10, %v491_v50 }
  0xfe   : > { %591 = vmatpush.bf16.msra.mxu0 %v499_v11  ;;  %870 = vmatpush.bf16.msra.mxu1 %v499_v11 }
  0xff   : > { %871 = vmatpush.bf16.msra.mxu2 %v499_v11  ;;  %872 = vmatpush.bf16.msra.mxu3 %v499_v11 }
 0x101   : > { %842 = vmatmul.msk.bf16.vlgmr.msra.gmra.mxu0 %vm559_vm0, %v853_v12  ;;  %844 = vmatmul.msk.bf16.vlgmr.msra.gmra.mxu1 %vm559_vm0, %v855_v13 }
 0x102   : > { %846 = vmatmul.msk.bf16.vlgmr.msra.gmra.mxu2 %vm559_vm0, %v857_v58  ;;  %848 = vmatmul.msk.bf16.vlgmr.msra.gmra.mxu3 %vm559_vm0, %v859_v14 }
 0x111   : > { %843 = vmatmul.msk.bf16.gmra.mxu0 %vm559_vm0, %v854_v15  ;;  %845 = vmatmul.msk.bf16.gmra.mxu1 %vm559_vm0, %v856_v16 }
 0x112   : > { %849 = vmatmul.msk.bf16.gmra.mxu3 %vm559_vm0, %v860_v17  ;;  %847 = vmatmul.msk.bf16.gmra.mxu2 %vm559_vm0, %v858_v18 }
 0x17e   : > { %v593_v19 = vpop.f32.mrf.mxu0  ;;  %v603_v21 = vpop.f32.mrf.mxu1 }
 0x17f   : > { %633 = vadd.xlane.f32.xlu0 %v593_v19  ;;  %v669_v22 = vmul.f32 %v603_v21, %v603_v21  ;;  %v665_v27 = vmul.f32 %v593_v19, %v593_v19 }
 0x181   : > { %689 = vadd.xlane.f32.xlu1 %v669_v22 }
 0x185   : > { %v623_v24 = vpop.f32.mrf.mxu3  ;;  %v613_v25 = vpop.f32.mrf.mxu2 }
 0x186   : > { %657 = vadd.xlane.f32.xlu2 %v623_v24  ;;  %v673_v26 = vmul.f32 %v613_v25, %v613_v25  ;;  %v595_v28 = vpop.f32.mrf.mxu0  ;;  %v605_v30 = vpop.f32.mrf.mxu1  ;;  %v677_v32 = vmul.f32 %v623_v24, %v623_v24 }
 0x187   : > { %641 = vadd.xlane.f32.xlu0 %v603_v21  ;;  %v670_v31 = vmul.f32 %v605_v30, %v605_v30  ;;  %v666_v37 = vmul.f32 %v595_v28, %v595_v28 }
 0x189   : > { %649 = vadd.xlane.f32.xlu1 %v613_v25 }
 0x18d   : > { %v615_v34 = vpop.f32.mrf.mxu2  ;;  %v625_v36 = vpop.f32.mrf.mxu3 }
 0x18e   : > { %697 = vadd.xlane.f32.xlu2 %v673_v26  ;;  %v598_v38 = vpop.f32.mrf.mxu0  ;;  %v674_v23 = vmul.f32 %v615_v34, %v615_v34  ;;  %v608_v41 = vpop.f32.mrf.mxu1  ;;  %v678_v53 = vmul.f32 %v625_v36, %v625_v36 }
 0x18f   : > { %681 = vadd.xlane.f32.xlu0 %v665_v27  ;;  %v671_v43 = vmul.f32 %v608_v41, %v608_v41  ;;  %v667_v46 = vmul.f32 %v598_v38, %v598_v38 }
 0x191   : > { %635 = vadd.xlane.f32.xlu1 %v595_v28 }
 0x195   : > { %v628_v39 = vpop.f32.mrf.mxu3  ;;  %v618_v42 = vpop.f32.mrf.mxu2 }
 0x196   : > { %691 = vadd.xlane.f32.xlu2 %v670_v31  ;;  %v675_v44 = vmul.f32 %v618_v42, %v618_v42  ;;  %v610_v45 = vpop.f32.mrf.mxu1  ;;  %v600_v49 = vpop.f32.mrf.mxu0  ;;  %v679_v56 = vmul.f32 %v628_v39, %v628_v39 }
 0x197   : > { %705 = vadd.xlane.f32.xlu0 %v677_v32  ;;  %v672_v47 = vmul.f32 %v610_v45, %v610_v45  ;;  %v668_v51 = vmul.f32 %v600_v49, %v600_v49 }
 0x199   : > { %643 = vadd.xlane.f32.xlu1 %v605_v30 }
 0x19d   : > { %v620_v20 = vpop.f32.mrf.mxu2  ;;  %v630_v52 = vpop.f32.mrf.mxu3 }
 0x19e   : > { %651 = vadd.xlane.f32.xlu2 %v615_v34  ;;  %v676_v54 = vmul.f32 %v620_v20, %v620_v20  ;;  %v680_v55 = vmul.f32 %v630_v52, %v630_v52 }
 0x19f   : > { %659 = vadd.xlane.f32.xlu0 %v625_v36 }
 0x1a1   : > { %683 = vadd.xlane.f32.xlu1 %v666_v37 }
 0x1a6   : > { %637 = vadd.xlane.f32.xlu2 %v598_v38 }
 0x1a7   : > { %699 = vadd.xlane.f32.xlu0 %v674_v23 }
 0x1a9   : > { %661 = vadd.xlane.f32.xlu1 %v628_v39 }
 0x1ae   : > { %645 = vadd.xlane.f32.xlu2 %v608_v41 }
 0x1af   : > { %693 = vadd.xlane.f32.xlu0 %v671_v43 }
 0x1b1   : > { %701 = vadd.xlane.f32.xlu1 %v675_v44 }
 0x1b6   : > { %685 = vadd.xlane.f32.xlu2 %v667_v46 }
 0x1b7   : > { %653 = vadd.xlane.f32.xlu0 %v618_v42 }
 0x1b9   : > { %695 = vadd.xlane.f32.xlu1 %v672_v47 }
 0x1be   : > { %639 = vadd.xlane.f32.xlu2 %v600_v49 }
 0x1bf   : > { %647 = vadd.xlane.f32.xlu0 %v610_v45 }
 0x1c1   : > { %655 = vadd.xlane.f32.xlu1 %v620_v20 }
 0x1c6   : > { %663 = vadd.xlane.f32.xlu2 %v630_v52 }
 0x1c7   : > { %687 = vadd.xlane.f32.xlu0 %v668_v51 }
 0x1c9   : > { %707 = vadd.xlane.f32.xlu1 %v678_v53 }
 0x1ce   : > { %703 = vadd.xlane.f32.xlu2 %v676_v54 }
 0x1cf   : > { %711 = vadd.xlane.f32.xlu0 %v680_v55 }
 0x1d6   : > { %709 = vadd.xlane.f32.xlu2 %v679_v56 }
 0x1f2   : > { %v634_v57 = vpop.xlane.xlu0 %633 }
 0x1f4   : > { %v690_v59 = vpop.xlane.xlu1 %689 }
 0x1f9   : > { %v658_v61 = vpop.xlane.xlu2 %657 }
 0x1fa   : > { %v642_v62 = vpop.xlane.xlu0 %641 }
 0x1fb   : > { %v718_v63 = vsel %vm713_vm1, %v642_v62, %v690_v59 }
 0x1fc   : > { %735 = vst.msk [vmem:[%s1132_s22 + $0x20] sm:$0xff] %vm730_vm2, %v718_v63  ;;  %v650_v0 = vpop.xlane.xlu1 %649 }
 0x201   : > { %v698_v1 = vpop.xlane.xlu2 %697 }
 0x202   : > { %v722_v2 = vsel %vm713_vm1, %v650_v0, %v698_v1  ;;  %v682_v3 = vpop.xlane.xlu0 %681 }
 0x203   : > { %739 = vst.msk [vmem:[%s1132_s22 + $0x40] sm:$0xff] %vm730_vm2, %v722_v2  ;;  %v714_v4 = vsel %vm713_vm1, %v634_v57, %v682_v3 }
 0x204   : > { %731 = vst.msk [vmem:[%s1132_s22] sm:$0xff] %vm730_vm2, %v714_v4  ;;  %v636_v5 = vpop.xlane.xlu1 %635 }
 0x209   : > { %v692_v48 = vpop.xlane.xlu2 %691 }
 0x20a   : > { %v706_v6 = vpop.xlane.xlu0 %705 }
 0x20b   : > { %v726_v7 = vsel %vm713_vm1, %v658_v61, %v706_v6 }
 0x20c   : > { %743 = vst.msk [vmem:[%s1132_s22 + $0x60] sm:$0xff] %vm730_vm2, %v726_v7  ;;  %v644_v40 = vpop.xlane.xlu1 %643 }
 0x20d   : > { %v719_v29 = vsel %vm713_vm1, %v644_v40, %v692_v48 }
 0x20e   : > { %736 = vst.msk [vmem:[%s1132_s22 + $0x28] sm:$0xff] %vm730_vm2, %v719_v29 }
 0x211   : > { %v652_v33 = vpop.xlane.xlu2 %651 }
 0x212   : > { %v660_v35 = vpop.xlane.xlu0 %659 }
 0x214   : > { %v684_v60 = vpop.xlane.xlu1 %683 }
 0x215   : > { %v715_v8 = vsel %vm713_vm1, %v636_v5, %v684_v60 }
 0x216   : > { %732 = vst.msk [vmem:[%s1132_s22 + $0x8] sm:$0xff] %vm730_vm2, %v715_v8 }
 0x219   : > { %v638_v9 = vpop.xlane.xlu2 %637 }
 0x21a   : > { %v700_v50 = vpop.xlane.xlu0 %699 }
 0x21b   : > { %v723_v10 = vsel %vm713_vm1, %v652_v33, %v700_v50 }
 0x21c   : > { %740 = vst.msk [vmem:[%s1132_s22 + $0x48] sm:$0xff] %vm730_vm2, %v723_v10  ;;  %v662_v11 = vpop.xlane.xlu1 %661 }
 0x221   : > { %v646_v12 = vpop.xlane.xlu2 %645 }
 0x222   : > { %v694_v13 = vpop.xlane.xlu0 %693 }
 0x223   : > { %v720_v58 = vsel %vm713_vm1, %v646_v12, %v694_v13 }
 0x224   : > { %737 = vst.msk [vmem:[%s1132_s22 + $0x30] sm:$0xff] %vm730_vm2, %v720_v58  ;;  %v702_v14 = vpop.xlane.xlu1 %701 }
 0x229   : > { %v686_v15 = vpop.xlane.xlu2 %685 }
 0x22a   : > { %v716_v16 = vsel %vm713_vm1, %v638_v9, %v686_v15  ;;  %v654_v17 = vpop.xlane.xlu0 %653 }
 0x22b   : > { %733 = vst.msk [vmem:[%s1132_s22 + $0x10] sm:$0xff] %vm730_vm2, %v716_v16  ;;  %v724_v18 = vsel %vm713_vm1, %v654_v17, %v702_v14 }
 0x22c   : > { %741 = vst.msk [vmem:[%s1132_s22 + $0x50] sm:$0xff] %vm730_vm2, %v724_v18  ;;  %v696_v19 = vpop.xlane.xlu1 %695 }
 0x231   : > { %v640_v21 = vpop.xlane.xlu2 %639 }
 0x232   : > { %v648_v22 = vpop.xlane.xlu0 %647 }
 0x233   : > { %v721_v24 = vsel %vm713_vm1, %v648_v22, %v696_v19 }
 0x234   : > { %738 = vst.msk [vmem:[%s1132_s22 + $0x38] sm:$0xff] %vm730_vm2, %v721_v24  ;;  %v656_v25 = vpop.xlane.xlu1 %655 }
 0x239   : > { %v664_v26 = vpop.xlane.xlu2 %663 }
 0x23a   : > { %v688_v27 = vpop.xlane.xlu0 %687 }
 0x23b   : > { %v717_v28 = vsel %vm713_vm1, %v640_v21, %v688_v27 }
 0x23c   : > { %734 = vst.msk [vmem:[%s1132_s22 + $0x18] sm:$0xff] %vm730_vm2, %v717_v28  ;;  %v708_v30 = vpop.xlane.xlu1 %707 }
 0x23d   : > { %v727_v31 = vsel %vm713_vm1, %v660_v35, %v708_v30 }
 0x23e   : > { %744 = vst.msk [vmem:[%s1132_s22 + $0x68] sm:$0xff] %vm730_vm2, %v727_v31 }
 0x241   : > { %v704_v32 = vpop.xlane.xlu2 %703 }
 0x242   : > { %v725_v34 = vsel %vm713_vm1, %v656_v25, %v704_v32  ;;  %v712_v36 = vpop.xlane.xlu0 %711 }
 0x243   : > { %742 = vst.msk [vmem:[%s1132_s22 + $0x58] sm:$0xff] %vm730_vm2, %v725_v34  ;;  %v729_v37 = vsel %vm713_vm1, %v664_v26, %v712_v36 }
 0x244   : > { %746 = vst.msk [vmem:[%s1132_s22 + $0x78] sm:$0xff] %vm730_vm2, %v729_v37 }
 0x249   : > { %v710_v38 = vpop.xlane.xlu2 %709 }
 0x24a   : > { %v728_v23 = vsel %vm713_vm1, %v662_v11, %v710_v38 }
 0x24b   : > { %745 = vst.msk [vmem:[%s1132_s22 + $0x70] sm:$0xff] %vm730_vm2, %v728_v23 }
 0x24c PF: > { %s15_s18 = sadd.s32 1, %s907_s18  }
 0x24d   : > { %p12_p4 = scmp.ge.s32.totalorder %s15_s18, 4  }
 0x24f   :  { %14 = sbr.rel (!%p12_p4) target bundleno = 1 (0x1), region = 70 }

// kernel: p2sfield_forward.6
= control target key start
LH: loop header
LB: loop body
LE: loop exit
PB: predicated region body
PF: predicated region fallthrough
CT: control target
= control target key end

     0   :  { %s1707_s27 = smov 0   ;;  %s2250_s0 = inlined_call_operand.vmem [shape: f32[3,256], index: 0, kind: input, shape index: {}]   ;;  %s2251_s1 = inlined_call_operand.vmem [shape: f32[64,3], index: 1, kind: input, shape index: {}]   ;;  %s2252_s2 = inlined_call_operand.vmem [shape: f32[64,1], index: 2, kind: input, shape index: {}]   ;;  %s2253_s3 = inlined_call_operand.vmem [shape: f32[64,1], index: 3, kind: input, shape index: {}]   ;;  %s2254_s4 = inlined_call_operand.vmem [shape: bf16[128,64], index: 4, kind: input, shape index: {}]   ;;  %s2255_s5 = inlined_call_operand.vmem [shape: f32[128,1], index: 5, kind: input, shape index: {}]   ;;  %s2256_s6 = inlined_call_operand.vmem [shape: f32[128,1], index: 6, kind: input, shape index: {}]   ;;  %s2257_s7 = inlined_call_operand.vmem [shape: bf16[256,128], index: 7, kind: input, shape index: {}]   ;;  %s2258_s8 = inlined_call_operand.vmem [shape: f32[2,256,2], index: 8, kind: output, shape index: {}]  }
   0x1 LB: > { %s1460_s28 = sadd.s32 4294967295, %s1657_s27   ;;  %p1464_p0 = scmp.ge.s32.totalorder %s1657_s27, 1  ;;  %s1657_s27 = sphi %s1707_s27, %s18_s27  }
   0x2   : > { %p261_p1 = scmp.lt.s32.totalorder %s1657_s27, 3 }
   0x4   : > { %p262_p2 = pnand %p1464_p0, %p261_p1 }
   0x5   : > { %p294_p3 = scmp.lt.s32.totalorder (!%p262_p2), %s1460_s28, 1 }
   0x6   : > { %265 = sbr.rel (%p262_p2) target bundleno = 960 (0x3c0), region = 52 }
   0xb   : > { %v310_v0 = vld [vmem:[%s2251_s1 + $0x30] sm:$0xff]  ;;  %v1659_v2 = vmov 1   ;;  %v1660_v3 = vmov 0   ;;  %v307_v4 = vld [vmem:[%s2251_s1 + $0x18] sm:$0xff]  ;;  %v1734_v6 = vld [vmem:[%s2251_s1] sm:$0xff]  ;;  %v1661_v7 = vmov 2  }
   0xc   : > { %v306_v1 = vld [vmem:[%s2251_s1 + $0x10] sm:$0xff]  ;;  %1628 = vset.pattern.permute.xlu0 %v1659_v2  ;;  %1627 = vset.pattern.permute.xlu2 %v1660_v3  ;;  %v311_v5 = vld [vmem:[%s2251_s1 + $0x38] sm:$0xff]  ;;  %v305_v8 = vld [vmem:[%s2251_s1 + $0x8] sm:$0xff]  ;;  %s2260_s28 = smov (!%p294_p3, %s1460_s28), 1  ;;  %vm640_vm0 = vcmask 523264   ;;  %vm1339_vm1 = vcmask 7168  }
   0xd   : > { %1626 = vset.pattern.permute.xlu1 %v1660_v3  ;;  %387 = vperm.xlu0 %1628, %v310_v0   ;;  %v308_v9 = vld [vmem:[%s2251_s1 + $0x20] sm:$0xff]  ;;  %v309_v10 = vld [vmem:[%s2251_s1 + $0x28] sm:$0xff]  ;;  %v466_v11 = vld [vmem:[%s2252_s2 + $0x30] sm:$0xff]  ;;  %s1465_s17 = sshll.u32 %s2260_s28, 2  ;;  %s1574_s11 = sshll.u32 %s2260_s28, 8  ;;  %vm1372_vm2 = vcmask 15360  }
   0xe   : > { %345 = vperm.xlu2 %1627, %v310_v0   ;;  %325 = vperm.xlu1 %1626, %v306_v1   ;;  %v464_v12 = vld [vmem:[%s2252_s2 + $0x20] sm:$0xff]  ;;  %v467_v13 = vld [vmem:[%s2252_s2 + $0x38] sm:$0xff]  ;;  %v521_v14 = vld [vmem:[%s2253_s3 + $0x28] sm:$0xff]  ;;  %s297_s24 = scalar_lea.vmem %s2250_s0, %s1465_s17  ;;  %s2143_s14 = scalar_lea.vmem %s2258_s8, %s1574_s11 }
   0xf   : > { %v522_v15 = vld [vmem:[%s2253_s3 + $0x30] sm:$0xff]  ;;  %v523_v16 = vld [vmem:[%s2253_s3 + $0x38] sm:$0xff]  ;;  %v465_v19 = vld [vmem:[%s2252_s2 + $0x28] sm:$0xff] }
  0x10   : > { %v462_v17 = vld [vmem:[%s2252_s2 + $0x10] sm:$0xff]  ;;  %v519_v18 = vld [vmem:[%s2253_s3 + $0x18] sm:$0xff]  ;;  %v516_v20 = vld [vmem:[%s2253_s3] sm:$0xff] }
  0x11   : > { %v520_v21 = vld [vmem:[%s2253_s3 + $0x20] sm:$0xff]  ;;  %v715_v22 = vld [vmem:[%s2255_s5 + $0x8] sm:$0xff]  ;;  %v721_v25 = vld [vmem:[%s2255_s5 + $0x38] sm:$0xff] }
  0x12   : > { %v718_v23 = vld [vmem:[%s2255_s5 + $0x20] sm:$0xff]  ;;  %v463_v26 = vld [vmem:[%s2252_s2 + $0x18] sm:$0xff]  ;;  %v518_v27 = vld [vmem:[%s2253_s3 + $0x10] sm:$0xff] }
  0x13   : > { %v729_v29 = vld [vmem:[%s2255_s5 + $0x78] sm:$0xff]  ;;  %v460_v30 = vld [vmem:[%s2252_s2] sm:$0xff]  ;;  %v461_v32 = vld [vmem:[%s2252_s2 + $0x8] sm:$0xff] }
  0x14   : > { %v312_v35 = vld [vmem:[%s297_s24] sm:$0x7]  ;;  %v517_v38 = vld [vmem:[%s2253_s3 + $0x8] sm:$0xff]  ;;  %v716_v48 = vld [vmem:[%s2255_s5 + $0x10] sm:$0xff] }
  0x15   : > { %375 = vperm.xlu0 %1628, %v307_v4   ;;  %v726_v36 = vld [vmem:[%s2255_s5 + $0x60] sm:$0xff]  ;;  %v1849_v37 = vperm.slane %v312_v35, 1  ;;  %v1854_v39 = vperm.slane %v312_v35, 0  ;;  %v839_v47 = vld [vmem:[%s2256_s6 + $0x68] sm:$0xff]  ;;  %v717_v49 = vld [vmem:[%s2255_s5 + $0x18] sm:$0xff] }
  0x16   : > { %350 = vperm.xlu2 %1627, %v311_v5   ;;  %330 = vperm.xlu1 %1626, %v307_v4   ;;  %v714_v41 = vld [vmem:[%s2255_s5] sm:$0xff]  ;;  %v836_v51 = vld [vmem:[%s2256_s6 + $0x50] sm:$0xff]  ;;  %v719_v53 = vld [vmem:[%s2255_s5 + $0x28] sm:$0xff] }
  0x17   : > { %v720_v54 = vld [vmem:[%s2255_s5 + $0x30] sm:$0xff]  ;;  %v834_v57 = vld [vmem:[%s2256_s6 + $0x40] sm:$0xff]  ;;  %v833_v62 = vld [vmem:[%s2256_s6 + $0x38] sm:$0xff] }
  0x18   : > { %v722_v58 = vld [vmem:[%s2255_s5 + $0x40] sm:$0xff]  ;;  %v728_v59 = vld [vmem:[%s2255_s5 + $0x70] sm:$0xff] }
  0x1d   : > { %1639 = vset.pattern.permute.xlu0 %v1660_v3 }
  0x1e   : > { %1630 = vset.pattern.permute.xlu2 %v1661_v7  ;;  %1629 = vset.pattern.permute.xlu1 %v1659_v2 }
  0x1f   : > { %436 = vperm.xlu2 %1630, %v310_v0   ;;  %391 = vperm.xlu1 %1629, %v311_v5   ;;  %v840_v0 = vld [vmem:[%s2256_s6 + $0x70] sm:$0xff] }
  0x20   : > { %315 = vperm.xlu0 %1639, %v1734_v6  }
  0x27   : > { %1632 = vset.pattern.permute.xlu2 %v1660_v3  ;;  %1631 = vset.pattern.permute.xlu1 %v1661_v7 }
  0x28   : > { %320 = vperm.xlu0 %1639, %v305_v8   ;;  %335 = vperm.xlu2 %1632, %v308_v9  }
  0x29   : > { %440 = vperm.xlu1 %1631, %v311_v5   ;;  %v727_v5 = vld [vmem:[%s2255_s5 + $0x68] sm:$0xff] }
  0x30   : > { %340 = vperm.xlu0 %1639, %v309_v10   ;;  %1634 = vset.pattern.permute.xlu2 %v1659_v2 }
  0x31   : > { %1633 = vset.pattern.permute.xlu1 %v1659_v2  ;;  %383 = vperm.xlu2 %1634, %v309_v10  }
  0x32   : > { %379 = vperm.xlu1 %1633, %v308_v9  }
  0x38   : > { %500 = vperm.xlu0 %1639, %v466_v11  }
  0x39   : > { %1636 = vset.pattern.permute.xlu2 %v1661_v7 }
  0x3a   : > { %1635 = vset.pattern.permute.xlu1 %v1661_v7  ;;  %432 = vperm.xlu2 %1636, %v309_v10  }
  0x3b   : > { %428 = vperm.xlu1 %1635, %v308_v9  }
  0x40   : > { %490 = vperm.xlu0 %1639, %v464_v12  }
  0x42   : > { %1638 = vset.pattern.permute.xlu2 %v1659_v2 }
  0x43   : > { %1637 = vset.pattern.permute.xlu1 %v1660_v3  ;;  %371 = vperm.xlu2 %1638, %v306_v1  }
  0x44   : > { %505 = vperm.xlu1 %1637, %v467_v13  }
  0x48   : > { %551 = vperm.xlu0 %1639, %v521_v14  }
  0x4b   : > { %1640 = vset.pattern.permute.xlu2 %v1660_v3 }
  0x4c   : > { %556 = vperm.xlu1 %1637, %v522_v15   ;;  %561 = vperm.xlu2 %1640, %v523_v16   ;;  %v827_v16 = vld [vmem:[%s2256_s6 + $0x8] sm:$0xff] }
  0x50   : > { %480 = vperm.xlu0 %1639, %v462_v17  }
  0x54   : > { %1641 = vset.pattern.permute.xlu1 %v1661_v7  ;;  %1642 = vset.pattern.permute.xlu2 %v1661_v7 }
  0x55   : > { %420 = vperm.xlu1 %1641, %v306_v1   ;;  %424 = vperm.xlu2 %1642, %v307_v4   ;;  %v841_v1 = vld [vmem:[%s2256_s6 + $0x78] sm:$0xff]  ;;  %v828_v4 = vld [vmem:[%s2256_s6 + $0x10] sm:$0xff] }
  0x58   : > { %541 = vperm.xlu0 %1639, %v519_v18   ;;  %v724_v18 = vld [vmem:[%s2255_s5 + $0x50] sm:$0xff] }
  0x5d   : > { %1643 = vset.pattern.permute.xlu1 %v1660_v3  ;;  %1644 = vset.pattern.permute.xlu2 %v1659_v2 }
  0x5e   : > { %495 = vperm.xlu1 %1643, %v465_v19   ;;  %363 = vperm.xlu2 %1644, %v1734_v6  }
  0x60   : > { %526 = vperm.xlu0 %1639, %v516_v20  }
  0x66   : > { %1645 = vset.pattern.permute.xlu1 %v1659_v2  ;;  %1646 = vset.pattern.permute.xlu2 %v1660_v3 }
  0x67   : > { %367 = vperm.xlu1 %1645, %v305_v8   ;;  %546 = vperm.xlu2 %1646, %v520_v21  }
  0x68   : > { %737 = vperm.xlu0 %1639, %v715_v22   ;;  %v1803_v24 = vpop.permute.xlu2 %345  ;;  %v725_v22 = vld [vmem:[%s2255_s5 + $0x58] sm:$0xff] }
  0x69   : > { %v360_v11 = vmul.f32 %v1854_v39, %v1803_v24 }
  0x6f   : > { %1647 = vset.pattern.permute.xlu1 %v1661_v7  ;;  %1648 = vset.pattern.permute.xlu2 %v1661_v7 }
  0x70   : > { %412 = vperm.xlu1 %1647, %v1734_v6   ;;  %752 = vperm.xlu0 %1639, %v718_v23   ;;  %v1819_v28 = vpop.permute.xlu2 %350  ;;  %v838_v6 = vld [vmem:[%s2256_s6 + $0x60] sm:$0xff] }
  0x71   : > { %416 = vperm.xlu2 %1648, %v305_v8   ;;  %v1920_v8 = vperm.slane %v312_v35, 2  ;;  %v361_v12 = vmul.f32 %v1854_v39, %v1819_v28 }
  0x78   : > { %1649 = vset.pattern.permute.xlu1 %v1660_v3  ;;  %767 = vperm.xlu0 %1639, %v721_v25  }
  0x79   : > { %485 = vperm.xlu1 %1649, %v463_v26   ;;  %1650 = vset.pattern.permute.xlu2 %v1660_v3  ;;  %v1844_v34 = vpop.permute.xlu2 %436 }
  0x7a   : > { %536 = vperm.xlu2 %1650, %v518_v27   ;;  %v450_v19 = vmul.f32 %v1920_v8, %v1844_v34 }
  0x7f   : > { %v1834_v31 = vpop.permute.xlu0 %387 }
  0x80   : > { %807 = vperm.xlu0 %1639, %v729_v29   ;;  %v1839_v33 = vpop.permute.xlu1 %325  ;;  %v401_v13 = vmul.f32 %v1849_v37, %v1834_v31 }
  0x81   : > { %470 = vperm.xlu1 %1649, %v460_v30   ;;  %v837_v30 = vld [vmem:[%s2256_s6 + $0x58] sm:$0xff] }
  0x82   : > { %475 = vperm.xlu2 %1650, %v461_v32   ;;  %v1863_v46 = vpop.permute.xlu2 %335  ;;  %v409_v20 = vadd.f32 %v401_v13, %v360_v11  ;;  %v723_v32 = vld [vmem:[%s2255_s5 + $0x48] sm:$0xff] }
  0x84   : > { %v458_v25 = vadd.f32 %v450_v19, %v409_v20 }
  0x87   : > { %v376_v40 = vpop.permute.xlu0 %375 }
  0x88   : > { %792 = vperm.xlu0 %1639, %v726_v36   ;;  %v398_v42 = vmul.f32 %v1849_v37, %v376_v40  ;;  %v331_v43 = vpop.permute.xlu1 %330 }
  0x89   : > { %v357_v44 = vmul.f32 %v1854_v39, %v331_v43  ;;  %531 = vperm.xlu1 %1649, %v517_v38  }
  0x8a   : > { %732 = vperm.xlu2 %1650, %v714_v41   ;;  %v835_v41 = vld [vmem:[%s2256_s6 + $0x48] sm:$0xff] }
  0x8b   : > { %v1861_v45 = vadd.f32 %v398_v42, %v357_v44  ;;  %v1877_v52 = vpop.permute.xlu2 %383  ;;  %v358_v42 = vmul.f32 %v1854_v39, %v1863_v46 }
  0x8c   : > { %v400_v43 = vmul.f32 %v1849_v37, %v1877_v52  ;;  %v830_v52 = vld [vmem:[%s2256_s6 + $0x20] sm:$0xff] }
  0x90   : > { %909 = vperm.xlu0 %1639, %v839_v47  }
  0x91   : > { %742 = vperm.xlu1 %1649, %v716_v48   ;;  %v392_v50 = vpop.permute.xlu1 %391 }
  0x92   : > { %747 = vperm.xlu2 %1650, %v717_v49   ;;  %v1885_v56 = vpop.permute.xlu0 %315  ;;  %v402_v9 = vmul.f32 %v1849_v37, %v392_v50  ;;  %v832_v49 = vld [vmem:[%s2256_s6 + $0x30] sm:$0xff] }
  0x94   : > { %v1896_v60 = vpop.permute.xlu2 %432  ;;  %v410_v15 = vadd.f32 %v402_v9, %v361_v12  ;;  %v356_v12 = vmul.f32 %v1854_v39, %v1839_v33 }
  0x98   : > { %894 = vperm.xlu0 %1639, %v836_v51  }
  0x99   : > { %757 = vperm.xlu1 %1649, %v719_v53   ;;  %v449_v53 = vmul.f32 %v1920_v8, %v1896_v60 }
  0x9a   : > { %762 = vperm.xlu2 %1650, %v720_v54   ;;  %v1901_v63 = vpop.permute.xlu0 %320 }
  0x9b   : > { %v441_v55 = vpop.permute.xlu1 %440 }
  0x9c   : > { %v451_v14 = vmul.f32 %v1920_v8, %v441_v55 }
  0x9d   : > { %v1909_v2 = vpop.permute.xlu2 %371 }
  0x9e   : > { %v459_v21 = vadd.f32 %v451_v14, %v410_v15  ;;  %v397_v11 = vmul.f32 %v1849_v37, %v1909_v2  ;;  %v354_v2 = vmul.f32 %v1854_v39, %v1885_v56 }
  0xa0   : > { %884 = vperm.xlu0 %1639, %v834_v57  }
  0xa1   : > { %772 = vperm.xlu1 %1649, %v722_v58  }
  0xa2   : > { %802 = vperm.xlu2 %1650, %v728_v59   ;;  %v341_v7 = vpop.permute.xlu0 %340  ;;  %v831_v59 = vld [vmem:[%s2256_s6 + $0x28] sm:$0xff] }
  0xa3   : > { %v359_v44 = vmul.f32 %v1854_v39, %v341_v7  ;;  %v826_v7 = vld [vmem:[%s2256_s6] sm:$0xff] }
  0xa4   : > { %v380_v61 = vpop.permute.xlu1 %379 }
  0xa5   : > { %v399_v40 = vmul.f32 %v1849_v37, %v380_v61  ;;  %v408_v46 = vadd.f32 %v400_v43, %v359_v44 }
  0xa6   : > { %v562_v10 = vpop.permute.xlu2 %561 }
  0xa7   : > { %v407_v51 = vadd.f32 %v399_v40, %v358_v42  ;;  %v457_v58 = vadd.f32 %v449_v53, %v408_v46 }
  0xa8   : > { %879 = vperm.xlu0 %1639, %v833_v62  }
  0xa9   : > { %914 = vperm.xlu1 %1649, %v840_v0  }
  0xaa   : > { %919 = vperm.xlu2 %1650, %v841_v1   ;;  %v501_v24 = vpop.permute.xlu0 %500 }
  0xab   : > { %v514_v27 = vmul.f32 %v501_v24, %v458_v25 }
  0xad   : > { %v429_v3 = vpop.permute.xlu1 %428 }
  0xae   : > { %v448_v47 = vmul.f32 %v1920_v8, %v429_v3 }
  0xaf   : > { %v425_v26 = vpop.permute.xlu2 %424 }
  0xb0   : > { %854 = vperm.xlu0 %1639, %v828_v4   ;;  %v456_v54 = vadd.f32 %v448_v47, %v407_v51 }
  0xb1   : > { %797 = vperm.xlu1 %1649, %v727_v5   ;;  %v829_v5 = vld [vmem:[%s2256_s6 + $0x18] sm:$0xff] }
  0xb2   : > { %904 = vperm.xlu2 %1650, %v838_v6   ;;  %v491_v50 = vpop.permute.xlu0 %490 }
  0xb3   : > { %v512_v57 = vmul.f32 %v491_v50, %v456_v54  ;;  %v1577_v50 = vld [vmem:[%s2254_s4 + $0x10] sm:$0xff]  ;;  %v1578_v54 = vld [vmem:[%s2254_s4 + $0x18] sm:$0xff] }
  0xb6   : > { %v506_v17 = vpop.permute.xlu1 %505 }
  0xb7   : > { %v515_v23 = vmul.f32 %v506_v17, %v459_v21  ;;  %v447_v17 = vmul.f32 %v1920_v8, %v425_v26  ;;  %v355_v26 = vmul.f32 %v1854_v39, %v1901_v63 }
  0xb8   : > { %849 = vperm.xlu0 %1639, %v827_v16   ;;  %v364_v38 = vpop.permute.xlu2 %363  ;;  %v405_v16 = vadd.f32 %v397_v11, %v356_v12 }
  0xb9   : > { %782 = vperm.xlu1 %1649, %v724_v18   ;;  %v571_v28 = vadd.f32 %v562_v10, %v515_v23  ;;  %v455_v21 = vadd.f32 %v447_v17, %v1861_v45  ;;  %v395_v33 = vmul.f32 %v1849_v37, %v364_v38 }
  0xba   : > { %787 = vperm.xlu2 %1650, %v725_v22   ;;  %v552_v1 = vpop.permute.xlu0 %551 }
  0xbb   : > { %v579_v35 = vmax.f32 %v571_v28, 0.0  ;;  %v403_v45 = vadd.f32 %v395_v33, %v354_v2 }
  0xbe   : > { %v557_v29 = vpop.permute.xlu1 %556 }
  0xbf   : > { %v570_v31 = vadd.f32 %v557_v29, %v514_v27 }
  0xc1   : > { %v578_v34 = vmax.f32 %v570_v31, 0.0  ;;  %899 = vperm.xlu1 %1649, %v837_v30   ;;  %v547_v55 = vpop.permute.xlu2 %546 }
  0xc2   : > { %777 = vperm.xlu2 %1650, %v723_v32   ;;  %v568_v62 = vadd.f32 %v547_v55, %v512_v57  ;;  %v481_v15 = vpop.permute.xlu0 %480 }
  0xc3   : > { %v583_v36 = vpack.c.bf16 %v579_v35, %v578_v34 }
  0xc4   : > { %v576_v3 = vmax.f32 %v568_v62, 0.0 }
  0xc5   : > { %669 = vmatpush.bf16.msra.mxu0 %v583_v36 }
  0xc7   : > { %v421_v48 = vpop.permute.xlu1 %420 }
  0xc8   : > { %v446_v13 = vmul.f32 %v1920_v8, %v421_v48 }
  0xc9   : > { %889 = vperm.xlu1 %1649, %v835_v41  }
  0xca   : > { %874 = vperm.xlu2 %1650, %v832_v49   ;;  %v454_v18 = vadd.f32 %v446_v13, %v405_v16  ;;  %v542_v25 = vpop.permute.xlu0 %541  ;;  %v1576_v49 = vld [vmem:[%s2254_s4 + $0x8] sm:$0xff] }
  0xcb   : > { %v417_v10 = vpop.permute.xlu2 %416 }
  0xcc   : > { %v510_v20 = vmul.f32 %v481_v15, %v454_v18  ;;  %v445_v32 = vmul.f32 %v1920_v8, %v417_v10  ;;  %v1582_v15 = vld [vmem:[%s2254_s4 + $0x38] sm:$0xff] }
  0xd0   : > { %v496_v61 = vpop.permute.xlu1 %495 }
  0xd1   : > { %v513_v0 = vmul.f32 %v496_v61, %v457_v58  ;;  %864 = vperm.xlu1 %1649, %v830_v52   ;;  %v1579_v58 = vld [vmem:[%s2254_s4 + $0x20] sm:$0xff] }
  0xd2   : > { %869 = vperm.xlu2 %1650, %v831_v59   ;;  %v527_v41 = vpop.permute.xlu0 %526 }
  0xd3   : > { %v569_v60 = vadd.f32 %v552_v1, %v513_v0 }
  0xd4   : > { %v537_v19 = vpop.permute.xlu2 %536 }
  0xd5   : > { %v577_v4 = vmax.f32 %v569_v60, 0.0  ;;  %v566_v23 = vadd.f32 %v537_v19, %v510_v20 }
  0xd7   : > { %v582_v6 = vpack.c.bf16 %v577_v4, %v576_v3  ;;  %v574_v29 = vmax.f32 %v566_v23, 0.0  ;;  %v1580_v3 = vld [vmem:[%s2254_s4 + $0x28] sm:$0xff] }
  0xd9   : > { %v368_v9 = vpop.permute.xlu1 %367  ;;  %859 = vperm.xlu1 %1649, %v829_v5   ;;  %670 = vmatpush.bf16.msra.mxu0 %v582_v6 }
  0xda   : > { %844 = vperm.xlu2 %1650, %v826_v7   ;;  %v396_v27 = vmul.f32 %v1849_v37, %v368_v9  ;;  %v738_v53 = vpop.permute.xlu0 %737  ;;  %v1581_v9 = vld [vmem:[%s2254_s4 + $0x30] sm:$0xff] }
  0xdc   : > { %v404_v34 = vadd.f32 %v396_v27, %v355_v26  ;;  %v476_v37 = vpop.permute.xlu2 %475 }
  0xde   : > { %v453_v56 = vadd.f32 %v445_v32, %v404_v34 }
  0xe0   : > { %v509_v42 = vmul.f32 %v476_v37, %v453_v56 }
  0xe2   : > { %v413_v14 = vpop.permute.xlu1 %412  ;;  %v753_v55 = vpop.permute.xlu0 %752 }
  0xe3   : > { %v444_v30 = vmul.f32 %v1920_v8, %v413_v14  ;;  %v1575_v8 = vld [vmem:[%s2254_s4] sm:$0xff] }
  0xe4   : > { %v733_v51 = vpop.permute.xlu2 %732 }
  0xe5   : > { %v452_v40 = vadd.f32 %v444_v30, %v403_v45 }
  0xea   : > { %v2007_v57 = vpop.permute.xlu0 %767 }
  0xeb   : > { %v486_v22 = vpop.permute.xlu1 %485 }
  0xec   : > { %v511_v24 = vmul.f32 %v486_v22, %v455_v21  ;;  %v748_v46 = vpop.permute.xlu2 %747 }
  0xee   : > { %v567_v28 = vadd.f32 %v542_v25, %v511_v24 }
  0xf0   : > { %v575_v31 = vmax.f32 %v567_v28, 0.0 }
  0xf2   : > { %v581_v35 = vpack.c.bf16 %v575_v31, %v574_v29  ;;  %v2015_v62 = vpop.permute.xlu0 %807 }
  0xf3   : > { %v471_v36 = vpop.permute.xlu1 %470 }
  0xf4   : > { %671 = vmatpush.bf16.msra.mxu0 %v581_v35  ;;  %v508_v38 = vmul.f32 %v471_v36, %v452_v40  ;;  %v2005_v52 = vpop.permute.xlu2 %762 }
  0xf6   : > { %v564_v43 = vadd.f32 %v527_v41, %v508_v38 }
  0xf8   : > { %v572_v63 = vmax.f32 %v564_v43, 0.0 }
  0xfa   : > { %v2019_v60 = vpop.permute.xlu0 %792 }
  0xfb   : > { %v532_v44 = vpop.permute.xlu1 %531 }
  0xfc   : > { %v565_v39 = vadd.f32 %v532_v44, %v509_v42  ;;  %v2012_v61 = vpop.permute.xlu2 %802 }
  0xfe   : > { %v573_v47 = vmax.f32 %v565_v39, 0.0 }
 0x100   : > { %v580_v48 = vpack.c.bf16 %v573_v47, %v572_v63 }
 0x102   : > { %672 = vmatpush.bf16.msra.mxu0 %v580_v48  ;;  %v2029_v6 = vpop.permute.xlu0 %909 }
 0x103   : > { %v743_v59 = vpop.permute.xlu1 %742 }
 0x104   : > { %v2017_v1 = vpop.permute.xlu2 %919 }
 0x105   : > { %1500 = vmatmul.msk.bf16.vlgmr.msra.gmra.mxu0 %vm640_vm0, %v1575_v8 }
 0x10a   : > { %v2038_v11 = vpop.permute.xlu0 %894 }
 0x10b   : > { %v758_v0 = vpop.permute.xlu1 %757 }
 0x10c   : > { %v2027_v5 = vpop.permute.xlu2 %904 }
 0x112   : > { %v2043_v14 = vpop.permute.xlu0 %884 }
 0x113   : > { %v2025_v4 = vpop.permute.xlu1 %772 }
 0x114   : > { %v2036_v10 = vpop.permute.xlu2 %787 }
 0x115   : > { %1501 = vmatmul.msk.bf16.gmra.mxu0 %vm640_vm0, %v1576_v49 }
 0x11a   : > { %v880_v18 = vpop.permute.xlu0 %879 }
 0x11b   : > { %v2031_v7 = vpop.permute.xlu1 %914 }
 0x11c   : > { %v2041_v13 = vpop.permute.xlu2 %777 }
 0x122   : > { %v855_v21 = vpop.permute.xlu0 %854 }
 0x123   : > { %v798_v12 = vpop.permute.xlu1 %797 }
 0x124   : > { %v875_v17 = vpop.permute.xlu2 %874 }
 0x125   : > { %1502 = vmatmul.msk.bf16.gmra.mxu0 %vm640_vm0, %v1577_v50 }
 0x12a   : > { %v850_v28 = vpop.permute.xlu0 %849 }
 0x12b   : > { %v2048_v16 = vpop.permute.xlu1 %782 }
 0x12c   : > { %v870_v20 = vpop.permute.xlu2 %869 }
 0x133   : > { %v2051_v19 = vpop.permute.xlu1 %899 }
 0x134   : > { %v845_v25 = vpop.permute.xlu2 %844 }
 0x135   : > { %1503 = vmatmul.msk.bf16.gmra.mxu0 %vm640_vm0, %v1578_v54 }
 0x13b   : > { %v2053_v24 = vpop.permute.xlu1 %889 }
 0x143   : > { %v865_v45 = vpop.permute.xlu1 %864 }
 0x145   : > { %1504 = vmatmul.msk.bf16.gmra.mxu0 %vm640_vm0, %v1579_v58 }
 0x14b   : > { %v860_v56 = vpop.permute.xlu1 %859 }
 0x155   : > { %1505 = vmatmul.msk.bf16.gmra.mxu0 %vm640_vm0, %v1580_v3 }
 0x165   : > { %1506 = vmatmul.msk.bf16.gmra.mxu0 %vm640_vm0, %v1581_v9 }
 0x175   : > { %1507 = vmatmul.msk.bf16.gmra.mxu0 %vm640_vm0, %v1582_v15 }
 0x182   : > { %v674_v22 = vpop.f32.mrf.mxu0 }
 0x183   : > { %v810_v23 = vmul.f32 %v733_v51, %v674_v22 }
 0x185   : > { %v922_v33 = vadd.f32 %v845_v25, %v810_v23 }
 0x187   : > { %v938_v29 = vmax.f32 %v922_v33, 0.0 }
 0x18a   : > { %v676_v2 = vpop.f32.mrf.mxu0 }
 0x18b   : > { %v811_v27 = vmul.f32 %v738_v53, %v676_v2 }
 0x18d   : > { %v923_v26 = vadd.f32 %v850_v28, %v811_v27 }
 0x18f   : > { %v939_v30 = vmax.f32 %v923_v26, 0.0 }
 0x191   : > { %v2055_v31 = vpack.c.bf16 %v939_v30, %v938_v29 }
 0x192   : > { %v679_v32 = vpop.f32.mrf.mxu0 }
 0x193   : > { %v812_v34 = vmul.f32 %v743_v59, %v679_v32 }
 0x195   : > { %v924_v36 = vadd.f32 %v855_v21, %v812_v34 }
 0x197   : > { %v940_v41 = vmax.f32 %v924_v36, 0.0 }
 0x19a   : > { %v681_v35 = vpop.f32.mrf.mxu0 }
 0x19b   : > { %v813_v40 = vmul.f32 %v748_v46, %v681_v35 }
 0x19d   : > { %v925_v38 = vadd.f32 %v860_v56, %v813_v40  ;;  %v1590_v40 = vld [vmem:[%s2257_s7 + $0x38] sm:$0xff]  ;;  %v1584_v56 = vld [vmem:[%s2257_s7 + $0x8] sm:$0xff] }
 0x19f   : > { %v941_v37 = vmax.f32 %v925_v38, 0.0  ;;  %v1596_v38 = vld [vmem:[%s2257_s7 + $0x68] sm:$0xff] }
 0x1a1   : > { %v2057_v42 = vpack.c.bf16 %v941_v37, %v940_v41  ;;  %v1591_v41 = vld [vmem:[%s2257_s7 + $0x40] sm:$0xff]  ;;  %v1597_v37 = vld [vmem:[%s2257_s7 + $0x70] sm:$0xff] }
 0x1a2   : > { %v684_v43 = vpop.f32.mrf.mxu0 }
 0x1a3   : > { %v814_v44 = vmul.f32 %v753_v55, %v684_v43  ;;  %v1592_v43 = vld [vmem:[%s2257_s7 + $0x48] sm:$0xff] }
 0x1a5   : > { %v926_v63 = vadd.f32 %v865_v45, %v814_v44  ;;  %v1598_v44 = vld [vmem:[%s2257_s7 + $0x78] sm:$0xff] }
 0x1a7   : > { %v942_v8 = vmax.f32 %v926_v63, 0.0  ;;  %v1593_v63 = vld [vmem:[%s2257_s7 + $0x50] sm:$0xff] }
 0x1aa   : > { %v686_v39 = vpop.f32.mrf.mxu0 }
 0x1ab   : > { %v815_v47 = vmul.f32 %v758_v0, %v686_v39  ;;  %v1587_v39 = vld [vmem:[%s2257_s7 + $0x20] sm:$0xff] }
 0x1ad   : > { %v927_v48 = vadd.f32 %v870_v20, %v815_v47  ;;  %v1588_v47 = vld [vmem:[%s2257_s7 + $0x28] sm:$0xff] }
 0x1af   : > { %v943_v49 = vmax.f32 %v927_v48, 0.0  ;;  %v1594_v48 = vld [vmem:[%s2257_s7 + $0x58] sm:$0xff] }
 0x1b1   : > { %v956_v50 = vpack.c.bf16 %v943_v49, %v942_v8 }
 0x1b2   : > { %v689_v51 = vpop.f32.mrf.mxu0 }
 0x1b3   : > { %v816_v53 = vmul.f32 %v2005_v52, %v689_v51 }
 0x1b5   : > { %v928_v46 = vadd.f32 %v875_v17, %v816_v53 }
 0x1b7   : > { %v944_v3 = vmax.f32 %v928_v46, 0.0 }
 0x1ba   : > { %v691_v54 = vpop.f32.mrf.mxu0 }
 0x1bb   : > { %v817_v58 = vmul.f32 %v2007_v57, %v691_v54 }
 0x1bd   : > { %v929_v59 = vadd.f32 %v880_v18, %v817_v58 }
 0x1bf   : > { %v945_v9 = vmax.f32 %v929_v59, 0.0 }
 0x1c1   : > { %v957_v15 = vpack.c.bf16 %v945_v9, %v944_v3 }
 0x1c2   : > { %v694_v21 = vpop.f32.mrf.mxu0 }
 0x1ca   : > { %v696_v55 = vpop.f32.mrf.mxu0 }
 0x1d2   : > { %v699_v22 = vpop.f32.mrf.mxu0 }
 0x1d3   : > { %v820_v29 = vmul.f32 %v2048_v16, %v699_v22 }
 0x1da   : > { %v701_v23 = vpop.f32.mrf.mxu0 }
 0x1db   : > { %v821_v18 = vmul.f32 %v2036_v10, %v701_v23  ;;  %v932_v10 = vadd.f32 %v2038_v11, %v820_v29  ;;  %v1583_v11 = vld [vmem:[%s2257_s7] sm:$0xff] }
 0x1dd   : > { %v948_v35 = vmax.f32 %v932_v10, 0.0 }
 0x1e2   : > { %v704_v0 = vpop.f32.mrf.mxu0 }
 0x1e3   : > { %v822_v52 = vmul.f32 %v2019_v60, %v704_v0  ;;  %v933_v60 = vadd.f32 %v2051_v19, %v821_v18 }
 0x1e5   : > { %v934_v30 = vadd.f32 %v2027_v5, %v822_v52 }
 0x1e7   : > { %v950_v34 = vmax.f32 %v934_v30, 0.0 }
 0x1ea   : > { %v706_v20 = vpop.f32.mrf.mxu0 }
 0x1eb   : > { %v823_v33 = vmul.f32 %v798_v12, %v706_v20  ;;  %v819_v12 = vmul.f32 %v2041_v13, %v696_v55 }
 0x1ed   : > { %v935_v28 = vadd.f32 %v2029_v6, %v823_v33  ;;  %v949_v6 = vmax.f32 %v933_v60, 0.0 }
 0x1ef   : > { %v951_v32 = vmax.f32 %v935_v28, 0.0  ;;  %v959_v19 = vpack.c.bf16 %v949_v6, %v948_v35 }
 0x1f1   : > { %v960_v5 = vpack.c.bf16 %v951_v32, %v950_v34 }
 0x1f2   : > { %v709_v25 = vpop.f32.mrf.mxu0 }
 0x1f3   : > { %v824_v2 = vmul.f32 %v2012_v61, %v709_v25 }
 0x1f5   : > { %v936_v17 = vadd.f32 %v2031_v7, %v824_v2 }
 0x1f7   : > { %v952_v45 = vmax.f32 %v936_v17, 0.0 }
 0x1fa   : > { %v711_v27 = vpop.f32.mrf.mxu0 }
 0x1fb   : > { %v825_v57 = vmul.f32 %v2015_v62, %v711_v27  ;;  %v818_v62 = vmul.f32 %v2025_v4, %v694_v21 }
 0x1fd   : > { %v937_v26 = vadd.f32 %v2017_v1, %v825_v57  ;;  %v931_v1 = vadd.f32 %v2053_v24, %v819_v12  ;;  %v930_v16 = vadd.f32 %v2043_v14, %v818_v62  ;;  %v1589_v14 = vld [vmem:[%s2257_s7 + $0x30] sm:$0xff]  ;;  %v1595_v24 = vld [vmem:[%s2257_s7 + $0x60] sm:$0xff] }
 0x1ff   : > { %v953_v61 = vmax.f32 %v937_v26, 0.0  ;;  %v947_v13 = vmax.f32 %v931_v1, 0.0  ;;  %v946_v36 = vmax.f32 %v930_v16, 0.0 }
 0x201   : > { %v961_v7 = vpack.c.bf16 %v953_v61, %v952_v45  ;;  %v958_v4 = vpack.c.bf16 %v947_v13, %v946_v36 }
 0x203   : > { %1090 = vmatpush.bf16.msra.mxu1 %v961_v7  ;;  %1599 = vmatpush.bf16.msra.mxu2 %v961_v7 }
 0x204   : > { %1600 = vmatpush.bf16.msra.mxu3 %v961_v7 }
 0x207   : > { %1091 = vmatpush.bf16.msra.mxu1 %v960_v5  ;;  %1601 = vmatpush.bf16.msra.mxu2 %v960_v5 }
 0x208   : > { %1602 = vmatpush.bf16.msra.mxu3 %v960_v5 }
 0x20b   : > { %1092 = vmatpush.bf16.msra.mxu1 %v959_v19  ;;  %1603 = vmatpush.bf16.msra.mxu2 %v959_v19 }
 0x20c   : > { %1604 = vmatpush.bf16.msra.mxu3 %v959_v19 }
 0x20f   : > { %1093 = vmatpush.bf16.msra.mxu1 %v958_v4  ;;  %1605 = vmatpush.bf16.msra.mxu2 %v958_v4 }
 0x210   : > { %1606 = vmatpush.bf16.msra.mxu3 %v958_v4 }
 0x213   : > { %1094 = vmatpush.bf16.msra.mxu1 %v957_v15  ;;  %1607 = vmatpush.bf16.msra.mxu2 %v957_v15 }
 0x214   : > { %1608 = vmatpush.bf16.msra.mxu3 %v957_v15 }
 0x217   : > { %1095 = vmatpush.bf16.msra.mxu1 %v956_v50  ;;  %1609 = vmatpush.bf16.msra.mxu2 %v956_v50 }
 0x218   : > { %1610 = vmatpush.bf16.msra.mxu3 %v956_v50 }
 0x21b   : > { %1096 = vmatpush.bf16.msra.mxu1 %v2057_v42  ;;  %1611 = vmatpush.bf16.msra.mxu2 %v2057_v42 }
 0x21c   : > { %1612 = vmatpush.bf16.msra.mxu3 %v2057_v42  ;;  %v1586_v42 = vld [vmem:[%s2257_s7 + $0x18] sm:$0xff] }
 0x21f   : > { %1097 = vmatpush.bf16.msra.mxu1 %v2055_v31  ;;  %1613 = vmatpush.bf16.msra.mxu2 %v2055_v31 }
 0x220   : > { %1614 = vmatpush.bf16.msra.mxu3 %v2055_v31  ;;  %v1585_v31 = vld [vmem:[%s2257_s7 + $0x10] sm:$0xff] }
 0x222   : > { %1098 = vmatmul.bf16.vlgmr.msra.gmra.mxu1 %v1583_v11  ;;  %1128 = vmatmul.bf16.vlgmr.msra.gmra.mxu2 %v1589_v14 }
 0x223   : > { %1158 = vmatmul.bf16.vlgmr.msra.gmra.mxu3 %v1595_v24 }
 0x232   : > { %1133 = vmatmul.bf16.gmra.mxu2 %v1590_v40  ;;  %1103 = vmatmul.bf16.gmra.mxu1 %v1584_v56 }
 0x233   : > { %1163 = vmatmul.bf16.gmra.mxu3 %v1596_v38 }
 0x242   : > { %1108 = vmatmul.bf16.gmra.mxu1 %v1585_v31  ;;  %1138 = vmatmul.bf16.gmra.mxu2 %v1591_v41 }
 0x243   : > { %1168 = vmatmul.bf16.gmra.mxu3 %v1597_v37 }
 0x252   : > { %1113 = vmatmul.bf16.gmra.mxu1 %v1586_v42  ;;  %1143 = vmatmul.bf16.gmra.mxu2 %v1592_v43 }
 0x253   : > { %1173 = vmatmul.bf16.gmra.mxu3 %v1598_v44 }
 0x262   : > { %1118 = vmatmul.bf16.gmra.mxu1 %v1587_v39  ;;  %1148 = vmatmul.bf16.gmra.mxu2 %v1593_v63 }
 0x272   : > { %1123 = vmatmul.bf16.gmra.mxu1 %v1588_v47  ;;  %1153 = vmatmul.bf16.gmra.mxu2 %v1594_v48 }
 0x29f   : > { %v1099_v8 = vpop.f32.mrf.mxu1 }
 0x2a0   : > { %1179 = vadd.xlane.f32.xlu1 %v1099_v8  ;;  %v1243_v49 = vmul.f32 %v1099_v8, %v1099_v8 }
 0x2a2   : > { %1275 = vadd.xlane.f32.xlu2 %v1243_v49 }
 0x2a5   : > { %v1129_v50 = vpop.f32.mrf.mxu2 }
 0x2a6   : > { %1203 = vadd.xlane.f32.xlu0 %v1129_v50  ;;  %v1159_v53 = vpop.f32.mrf.mxu3  ;;  %v1255_v46 = vmul.f32 %v1129_v50, %v1129_v50 }
 0x2a7   : > { %v1101_v51 = vpop.f32.mrf.mxu1  ;;  %v1267_v3 = vmul.f32 %v1159_v53, %v1159_v53 }
 0x2a8   : > { %v1244_v58 = vmul.f32 %v1101_v51, %v1101_v51 }
 0x2aa   : > { %1181 = vadd.xlane.f32.xlu2 %v1101_v51 }
 0x2ad   : > { %v1131_v54 = vpop.f32.mrf.mxu2 }
 0x2ae   : > { %1227 = vadd.xlane.f32.xlu0 %v1159_v53  ;;  %1205 = vadd.xlane.f32.xlu1 %v1131_v54  ;;  %v1161_v59 = vpop.f32.mrf.mxu3  ;;  %v1256_v55 = vmul.f32 %v1131_v54, %v1131_v54 }
 0x2af   : > { %v1104_v9 = vpop.f32.mrf.mxu1  ;;  %v1268_v0 = vmul.f32 %v1161_v59, %v1161_v59 }
 0x2b0   : > { %v1245_v15 = vmul.f32 %v1104_v9, %v1104_v9 }
 0x2b2   : > { %1299 = vadd.xlane.f32.xlu2 %v1255_v46 }
 0x2b5   : > { %v1134_v21 = vpop.f32.mrf.mxu2 }
 0x2b6   : > { %1229 = vadd.xlane.f32.xlu1 %v1161_v59  ;;  %1277 = vadd.xlane.f32.xlu0 %v1244_v58  ;;  %v1257_v22 = vmul.f32 %v1134_v21, %v1134_v21  ;;  %v1164_v23 = vpop.f32.mrf.mxu3 }
 0x2b7   : > { %v1269_v20 = vmul.f32 %v1164_v23, %v1164_v23  ;;  %v1106_v25 = vpop.f32.mrf.mxu1 }
 0x2b8   : > { %v1246_v27 = vmul.f32 %v1106_v25, %v1106_v25 }
 0x2ba   : > { %1323 = vadd.xlane.f32.xlu2 %v1267_v3 }
 0x2bd   : > { %v1136_v2 = vpop.f32.mrf.mxu2 }
 0x2be   : > { %1183 = vadd.xlane.f32.xlu0 %v1104_v9  ;;  %1279 = vadd.xlane.f32.xlu1 %v1245_v15  ;;  %v1166_v52 = vpop.f32.mrf.mxu3  ;;  %v1258_v57 = vmul.f32 %v1136_v2, %v1136_v2 }
 0x2bf   : > { %v1109_v33 = vpop.f32.mrf.mxu1  ;;  %v1270_v26 = vmul.f32 %v1166_v52, %v1166_v52 }
 0x2c0   : > { %v1247_v18 = vmul.f32 %v1109_v33, %v1109_v33 }
 0x2c2   : > { %1207 = vadd.xlane.f32.xlu2 %v1134_v21 }
 0x2c5   : > { %v1139_v17 = vpop.f32.mrf.mxu2 }
 0x2c6   : > { %1301 = vadd.xlane.f32.xlu0 %v1256_v55  ;;  %1303 = vadd.xlane.f32.xlu1 %v1257_v22  ;;  %v1169_v28 = vpop.f32.mrf.mxu3  ;;  %v1259_v30 = vmul.f32 %v1139_v17, %v1139_v17 }
 0x2c7   : > { %v1111_v29 = vpop.f32.mrf.mxu1  ;;  %v1271_v60 = vmul.f32 %v1169_v28, %v1169_v28 }
 0x2c8   : > { %v1248_v45 = vmul.f32 %v1111_v29, %v1111_v29 }
 0x2ca   : > { %1231 = vadd.xlane.f32.xlu2 %v1164_v23 }
 0x2cd   : > { %v1141_v61 = vpop.f32.mrf.mxu2 }
 0x2ce   : > { %1325 = vadd.xlane.f32.xlu0 %v1268_v0  ;;  %1327 = vadd.xlane.f32.xlu1 %v1269_v20  ;;  %v1260_v32 = vmul.f32 %v1141_v61, %v1141_v61  ;;  %v2130_v7 = vpop.f32.mrf.mxu3 }
 0x2cf   : > { %v1114_v12 = vpop.f32.mrf.mxu1 }
 0x2d0   : > { %v1249_v6 = vmul.f32 %v1114_v12, %v1114_v12 }
 0x2d2   : > { %1185 = vadd.xlane.f32.xlu2 %v1106_v25 }
 0x2d5   : > { %v1144_v62 = vpop.f32.mrf.mxu2 }
 0x2d6   : > { %1209 = vadd.xlane.f32.xlu0 %v1136_v2  ;;  %1187 = vadd.xlane.f32.xlu1 %v1109_v33  ;;  %v2133_v34 = vpop.f32.mrf.mxu3  ;;  %v1261_v16 = vmul.f32 %v1144_v62, %v1144_v62 }
 0x2d7   : > { %v1116_v10 = vpop.f32.mrf.mxu1 }
 0x2d8   : > { %v1250_v19 = vmul.f32 %v1116_v10, %v1116_v10 }
 0x2da   : > { %1281 = vadd.xlane.f32.xlu2 %v1246_v27 }
 0x2dd   : > { %v1146_v1 = vpop.f32.mrf.mxu2 }
 0x2de   : > { %1233 = vadd.xlane.f32.xlu0 %v1166_v52  ;;  %1211 = vadd.xlane.f32.xlu1 %v1139_v17  ;;  %v2135_v5 = vpop.f32.mrf.mxu3  ;;  %v1262_v56 = vmul.f32 %v1146_v1, %v1146_v1 }
 0x2df   : > { %v1119_v35 = vpop.f32.mrf.mxu1 }
 0x2e0   : > { %v1251_v13 = vmul.f32 %v1119_v35, %v1119_v35 }
 0x2e2   : > { %1305 = vadd.xlane.f32.xlu2 %v1258_v57  ;;  %v1274_v57 = vmul.f32 %v2135_v5, %v2135_v5 }
 0x2e5   : > { %v1149_v14 = vpop.f32.mrf.mxu2 }
 0x2e6   : > { %1235 = vadd.xlane.f32.xlu1 %v1169_v28  ;;  %1283 = vadd.xlane.f32.xlu0 %v1247_v18  ;;  %v1263_v40 = vmul.f32 %v1149_v14, %v1149_v14  ;;  %v1272_v18 = vmul.f32 %v2130_v7, %v2130_v7 }
 0x2e7   : > { %v1121_v38 = vpop.f32.mrf.mxu1 }
 0x2e8   : > { %v1252_v63 = vmul.f32 %v1121_v38, %v1121_v38 }
 0x2ea   : > { %1329 = vadd.xlane.f32.xlu2 %v1270_v26  ;;  %v1273_v26 = vmul.f32 %v2133_v34, %v2133_v34 }
 0x2ed   : > { %v1151_v42 = vpop.f32.mrf.mxu2 }
 0x2ee   : > { %1307 = vadd.xlane.f32.xlu0 %v1259_v30  ;;  %1285 = vadd.xlane.f32.xlu1 %v1248_v45  ;;  %v1264_v54 = vmul.f32 %v1151_v42, %v1151_v42 }
 0x2ef   : > { %v1124_v43 = vpop.f32.mrf.mxu1 }
 0x2f0   : > { %v1253_v9 = vmul.f32 %v1124_v43, %v1124_v43 }
 0x2f2   : > { %1189 = vadd.xlane.f32.xlu2 %v1111_v29 }
 0x2f5   : > { %v1154_v49 = vpop.f32.mrf.mxu2 }
 0x2f6   : > { %1331 = vadd.xlane.f32.xlu0 %v1271_v60  ;;  %1309 = vadd.xlane.f32.xlu1 %v1260_v32  ;;  %v1265_v25 = vmul.f32 %v1154_v49, %v1154_v49 }
 0x2f7   : > { %v1126_v53 = vpop.f32.mrf.mxu1 }
 0x2f8   : > { %v1254_v3 = vmul.f32 %v1126_v53, %v1126_v53 }
 0x2fa   : > { %1213 = vadd.xlane.f32.xlu2 %v1141_v61 }
 0x2fd   : > { %v1156_v21 = vpop.f32.mrf.mxu2 }
 0x2fe   : > { %1191 = vadd.xlane.f32.xlu0 %v1114_v12  ;;  %1193 = vadd.xlane.f32.xlu1 %v1116_v10  ;;  %v1266_v20 = vmul.f32 %v1156_v21, %v1156_v21 }
 0x302   : > { %1237 = vadd.xlane.f32.xlu2 %v2130_v7 }
 0x306   : > { %1215 = vadd.xlane.f32.xlu0 %v1144_v62  ;;  %1217 = vadd.xlane.f32.xlu1 %v1146_v1 }
 0x30a   : > { %1287 = vadd.xlane.f32.xlu2 %v1249_v6 }
 0x30e   : > { %1239 = vadd.xlane.f32.xlu0 %v2133_v34  ;;  %1241 = vadd.xlane.f32.xlu1 %v2135_v5 }
 0x312   : > { %1311 = vadd.xlane.f32.xlu2 %v1261_v16 }
 0x313   : > { %v1180_v36 = vpop.xlane.xlu1 %1179 }
 0x315   : > { %v1276_v4 = vpop.xlane.xlu2 %1275 }
 0x316   : > { %v1340_v11 = vsel %vm1339_vm1, %v1180_v36, %v1276_v4  ;;  %1289 = vadd.xlane.f32.xlu0 %v1250_v19  ;;  %1291 = vadd.xlane.f32.xlu1 %v1251_v13 }
 0x317   : > { %1373 = vst.msk [vmem:[%s2143_s14] sm:$0xff] %vm1372_vm2, %v1340_v11 }
 0x319   : > { %v1204_v24 = vpop.xlane.xlu0 %1203 }
 0x31a   : > { %1195 = vadd.xlane.f32.xlu2 %v1119_v35 }
 0x31d   : > { %v1182_v31 = vpop.xlane.xlu2 %1181 }
 0x31e   : > { %1313 = vadd.xlane.f32.xlu0 %v1262_v56  ;;  %1315 = vadd.xlane.f32.xlu1 %v1263_v40 }
 0x321   : > { %v1228_v41 = vpop.xlane.xlu0 %1227  ;;  %v1206_v37 = vpop.xlane.xlu1 %1205 }
 0x322   : > { %1219 = vadd.xlane.f32.xlu2 %v1149_v14 }
 0x325   : > { %v1300_v44 = vpop.xlane.xlu2 %1299 }
 0x326   : > { %v1352_v39 = vsel %vm1339_vm1, %v1204_v24, %v1300_v44  ;;  %1197 = vadd.xlane.f32.xlu0 %v1121_v38  ;;  %1199 = vadd.xlane.f32.xlu1 %v1124_v43 }
 0x327   : > { %1385 = vst.msk [vmem:[%s2143_s14 + $0x60] sm:$0xff] %vm1372_vm2, %v1352_v39 }
 0x329   : > { %v1230_v47 = vpop.xlane.xlu1 %1229  ;;  %v1278_v48 = vpop.xlane.xlu0 %1277 }
 0x32a   : > { %v1341_v8 = vsel %vm1339_vm1, %v1182_v31, %v1278_v48  ;;  %1293 = vadd.xlane.f32.xlu2 %v1252_v63 }
 0x32b   : > { %1374 = vst.msk [vmem:[%s2143_s14 + $0x8] sm:$0xff] %vm1372_vm2, %v1341_v8 }
 0x32d   : > { %v1324_v50 = vpop.xlane.xlu2 %1323 }
 0x32e   : > { %v1364_v51 = vsel %vm1339_vm1, %v1228_v41, %v1324_v50  ;;  %1221 = vadd.xlane.f32.xlu0 %v1151_v42  ;;  %1223 = vadd.xlane.f32.xlu1 %v1154_v49 }
 0x32f   : > { %1397 = vst.msk [vmem:[%s2143_s14 + $0xc0] sm:$0xff] %vm1372_vm2, %v1364_v51 }
 0x331   : > { %v1184_v46 = vpop.xlane.xlu0 %1183  ;;  %v1280_v58 = vpop.xlane.xlu1 %1279 }
 0x332   : > { %v1342_v59 = vsel %vm1339_vm1, %v1184_v46, %v1280_v58  ;;  %1317 = vadd.xlane.f32.xlu2 %v1264_v54 }
 0x333   : > { %1375 = vst.msk [vmem:[%s2143_s14 + $0x10] sm:$0xff] %vm1372_vm2, %v1342_v59 }
 0x335   : > { %v1208_v15 = vpop.xlane.xlu2 %1207 }
 0x336   : > { %1295 = vadd.xlane.f32.xlu0 %v1253_v9  ;;  %1297 = vadd.xlane.f32.xlu1 %v1254_v3 }
 0x339   : > { %v1302_v55 = vpop.xlane.xlu0 %1301  ;;  %v1304_v22 = vpop.xlane.xlu1 %1303 }
 0x33a   : > { %v1353_v23 = vsel %vm1339_vm1, %v1206_v37, %v1302_v55  ;;  %v1354_v0 = vsel %vm1339_vm1, %v1208_v15, %v1304_v22  ;;  %1201 = vadd.xlane.f32.xlu2 %v1126_v53 }
 0x33b   : > { %1386 = vst.msk [vmem:[%s2143_s14 + $0x68] sm:$0xff] %vm1372_vm2, %v1353_v23 }
 0x33c   : > { %1387 = vst.msk [vmem:[%s2143_s14 + $0x70] sm:$0xff] %vm1372_vm2, %v1354_v0 }
 0x33d   : > { %v1232_v2 = vpop.xlane.xlu2 %1231 }
 0x33e   : > { %1319 = vadd.xlane.f32.xlu0 %v1265_v25  ;;  %1321 = vadd.xlane.f32.xlu1 %v1266_v20 }
 0x341   : > { %v1326_v33 = vpop.xlane.xlu0 %1325  ;;  %v1328_v27 = vpop.xlane.xlu1 %1327 }
 0x342   : > { %v1365_v52 = vsel %vm1339_vm1, %v1230_v47, %v1326_v33  ;;  %v1366_v17 = vsel %vm1339_vm1, %v1232_v2, %v1328_v27  ;;  %1225 = vadd.xlane.f32.xlu2 %v1156_v21 }
 0x343   : > { %1398 = vst.msk [vmem:[%s2143_s14 + $0xc8] sm:$0xff] %vm1372_vm2, %v1365_v52 }
 0x344   : > { %1399 = vst.msk [vmem:[%s2143_s14 + $0xd0] sm:$0xff] %vm1372_vm2, %v1366_v17 }
 0x345   : > { %v1186_v28 = vpop.xlane.xlu2 %1185 }
 0x346   : > { %1337 = vadd.xlane.f32.xlu0 %v1274_v57  ;;  %1333 = vadd.xlane.f32.xlu1 %v1272_v18 }
 0x349   : > { %v1210_v29 = vpop.xlane.xlu0 %1209  ;;  %v1188_v30 = vpop.xlane.xlu1 %1187 }
 0x34a   : > { %1335 = vadd.xlane.f32.xlu2 %v1273_v26 }
 0x34d   : > { %v1282_v45 = vpop.xlane.xlu2 %1281 }
 0x34e   : > { %v1343_v61 = vsel %vm1339_vm1, %v1186_v28, %v1282_v45 }
 0x34f   : > { %1376 = vst.msk [vmem:[%s2143_s14 + $0x18] sm:$0xff] %vm1372_vm2, %v1343_v61 }
 0x351   : > { %v1234_v12 = vpop.xlane.xlu0 %1233  ;;  %v1212_v60 = vpop.xlane.xlu1 %1211 }
 0x355   : > { %v1306_v32 = vpop.xlane.xlu2 %1305 }
 0x356   : > { %v1355_v7 = vsel %vm1339_vm1, %v1210_v29, %v1306_v32 }
 0x357   : > { %1388 = vst.msk [vmem:[%s2143_s14 + $0x78] sm:$0xff] %vm1372_vm2, %v1355_v7 }
 0x359   : > { %v1236_v62 = vpop.xlane.xlu1 %1235  ;;  %v1284_v10 = vpop.xlane.xlu0 %1283 }
 0x35a   : > { %v1344_v34 = vsel %vm1339_vm1, %v1188_v30, %v1284_v10 }
 0x35b   : > { %1377 = vst.msk [vmem:[%s2143_s14 + $0x20] sm:$0xff] %vm1372_vm2, %v1344_v34 }
 0x35d   : > { %v1330_v1 = vpop.xlane.xlu2 %1329 }
 0x35e   : > { %v1367_v6 = vsel %vm1339_vm1, %v1234_v12, %v1330_v1 }
 0x35f   : > { %1400 = vst.msk [vmem:[%s2143_s14 + $0xd8] sm:$0xff] %vm1372_vm2, %v1367_v6 }
 0x361   : > { %v1308_v5 = vpop.xlane.xlu0 %1307  ;;  %v1286_v16 = vpop.xlane.xlu1 %1285 }
 0x362   : > { %v1356_v35 = vsel %vm1339_vm1, %v1212_v60, %v1308_v5 }
 0x363   : > { %1389 = vst.msk [vmem:[%s2143_s14 + $0x80] sm:$0xff] %vm1372_vm2, %v1356_v35 }
 0x365   : > { %v1190_v13 = vpop.xlane.xlu2 %1189 }
 0x366   : > { %v1345_v19 = vsel %vm1339_vm1, %v1190_v13, %v1286_v16 }
 0x367   : > { %1378 = vst.msk [vmem:[%s2143_s14 + $0x28] sm:$0xff] %vm1372_vm2, %v1345_v19 }
 0x369   : > { %v1332_v36 = vpop.xlane.xlu0 %1331  ;;  %v1310_v4 = vpop.xlane.xlu1 %1309 }
 0x36a   : > { %v1368_v11 = vsel %vm1339_vm1, %v1236_v62, %v1332_v36 }
 0x36b   : > { %1401 = vst.msk [vmem:[%s2143_s14 + $0xe0] sm:$0xff] %vm1372_vm2, %v1368_v11 }
 0x36d   : > { %v1214_v14 = vpop.xlane.xlu2 %1213 }
 0x36e   : > { %v1357_v24 = vsel %vm1339_vm1, %v1214_v14, %v1310_v4 }
 0x36f   : > { %1390 = vst.msk [vmem:[%s2143_s14 + $0x88] sm:$0xff] %vm1372_vm2, %v1357_v24 }
 0x371   : > { %v1192_v40 = vpop.xlane.xlu0 %1191  ;;  %v1194_v56 = vpop.xlane.xlu1 %1193 }
 0x375   : > { %v1238_v38 = vpop.xlane.xlu2 %1237 }
 0x379   : > { %v1216_v31 = vpop.xlane.xlu0 %1215  ;;  %v1218_v41 = vpop.xlane.xlu1 %1217 }
 0x37d   : > { %v1288_v37 = vpop.xlane.xlu2 %1287 }
 0x37e   : > { %v1346_v42 = vsel %vm1339_vm1, %v1192_v40, %v1288_v37 }
 0x37f   : > { %1379 = vst.msk [vmem:[%s2143_s14 + $0x30] sm:$0xff] %vm1372_vm2, %v1346_v42 }
 0x381   : > { %v1240_v43 = vpop.xlane.xlu0 %1239  ;;  %v1242_v44 = vpop.xlane.xlu1 %1241 }
 0x385   : > { %v1312_v39 = vpop.xlane.xlu2 %1311 }
 0x386   : > { %v1358_v63 = vsel %vm1339_vm1, %v1216_v31, %v1312_v39 }
 0x387   : > { %1391 = vst.msk [vmem:[%s2143_s14 + $0x90] sm:$0xff] %vm1372_vm2, %v1358_v63 }
 0x389   : > { %v1290_v47 = vpop.xlane.xlu0 %1289  ;;  %v1292_v48 = vpop.xlane.xlu1 %1291 }
 0x38a   : > { %v1347_v8 = vsel %vm1339_vm1, %v1194_v56, %v1290_v47 }
 0x38b   : > { %1380 = vst.msk [vmem:[%s2143_s14 + $0x38] sm:$0xff] %vm1372_vm2, %v1347_v8 }
 0x38d   : > { %v1196_v49 = vpop.xlane.xlu2 %1195 }
 0x38e   : > { %v1348_v50 = vsel %vm1339_vm1, %v1196_v49, %v1292_v48 }
 0x38f   : > { %1381 = vst.msk [vmem:[%s2143_s14 + $0x40] sm:$0xff] %vm1372_vm2, %v1348_v50 }
 0x391   : > { %v1314_v51 = vpop.xlane.xlu0 %1313  ;;  %v1316_v53 = vpop.xlane.xlu1 %1315 }
 0x392   : > { %v1359_v54 = vsel %vm1339_vm1, %v1218_v41, %v1314_v51 }
 0x393   : > { %1392 = vst.msk [vmem:[%s2143_s14 + $0x98] sm:$0xff] %vm1372_vm2, %v1359_v54 }
 0x395   : > { %v1220_v46 = vpop.xlane.xlu2 %1219 }
 0x396   : > { %v1360_v58 = vsel %vm1339_vm1, %v1220_v46, %v1316_v53 }
 0x397   : > { %1393 = vst.msk [vmem:[%s2143_s14 + $0xa0] sm:$0xff] %vm1372_vm2, %v1360_v58 }
 0x399   : > { %v1198_v59 = vpop.xlane.xlu0 %1197  ;;  %v1200_v3 = vpop.xlane.xlu1 %1199 }
 0x39d   : > { %v1294_v9 = vpop.xlane.xlu2 %1293 }
 0x39e   : > { %v1349_v15 = vsel %vm1339_vm1, %v1198_v59, %v1294_v9 }
 0x39f   : > { %1382 = vst.msk [vmem:[%s2143_s14 + $0x48] sm:$0xff] %vm1372_vm2, %v1349_v15 }
 0x3a1   : > { %v1222_v21 = vpop.xlane.xlu0 %1221  ;;  %v1224_v55 = vpop.xlane.xlu1 %1223 }
 0x3a5   : > { %v1318_v22 = vpop.xlane.xlu2 %1317 }
 0x3a6   : > { %v1361_v23 = vsel %vm1339_vm1, %v1222_v21, %v1318_v22 }
 0x3a7   : > { %1394 = vst.msk [vmem:[%s2143_s14 + $0xa8] sm:$0xff] %vm1372_vm2, %v1361_v23 }
 0x3a9   : > { %v1296_v0 = vpop.xlane.xlu0 %1295  ;;  %v1298_v20 = vpop.xlane.xlu1 %1297 }
 0x3aa   : > { %v1350_v25 = vsel %vm1339_vm1, %v1200_v3, %v1296_v0 }
 0x3ab   : > { %1383 = vst.msk [vmem:[%s2143_s14 + $0x50] sm:$0xff] %vm1372_vm2, %v1350_v25 }
 0x3ad   : > { %v1202_v2 = vpop.xlane.xlu2 %1201 }
 0x3ae   : > { %v1351_v33 = vsel %vm1339_vm1, %v1202_v2, %v1298_v20 }
 0x3af   : > { %1384 = vst.msk [vmem:[%s2143_s14 + $0x58] sm:$0xff] %vm1372_vm2, %v1351_v33 }
 0x3b1   : > { %v1320_v27 = vpop.xlane.xlu0 %1319  ;;  %v1322_v52 = vpop.xlane.xlu1 %1321 }
 0x3b2   : > { %v1362_v17 = vsel %vm1339_vm1, %v1224_v55, %v1320_v27 }
 0x3b3   : > { %1395 = vst.msk [vmem:[%s2143_s14 + $0xb0] sm:$0xff] %vm1372_vm2, %v1362_v17 }
 0x3b5   : > { %v1226_v57 = vpop.xlane.xlu2 %1225 }
 0x3b6   : > { %v1363_v18 = vsel %vm1339_vm1, %v1226_v57, %v1322_v52 }
 0x3b7   : > { %1396 = vst.msk [vmem:[%s2143_s14 + $0xb8] sm:$0xff] %vm1372_vm2, %v1363_v18 }
 0x3b9   : > { %v1338_v28 = vpop.xlane.xlu0 %1337  ;;  %v1334_v26 = vpop.xlane.xlu1 %1333 }
 0x3ba   : > { %v1371_v29 = vsel %vm1339_vm1, %v1242_v44, %v1338_v28  ;;  %v1369_v30 = vsel %vm1339_vm1, %v1238_v38, %v1334_v26 }
 0x3bb   : > { %1404 = vst.msk [vmem:[%s2143_s14 + $0xf8] sm:$0xff] %vm1372_vm2, %v1371_v29 }
 0x3bc   : > { %1402 = vst.msk [vmem:[%s2143_s14 + $0xe8] sm:$0xff] %vm1372_vm2, %v1369_v30 }
 0x3bd   : > { %v1336_v45 = vpop.xlane.xlu2 %1335 }
 0x3be   : > { %v1370_v61 = vsel %vm1339_vm1, %v1240_v43, %v1336_v45 }
 0x3bf   : > { %1403 = vst.msk [vmem:[%s2143_s14 + $0xf0] sm:$0xff] %vm1372_vm2, %v1370_v61 }
 0x3c0 PF: > { %s18_s27 = sadd.s32 1, %s1657_s27  }
 0x3c1   : > { %p15_p4 = scmp.ge.s32.totalorder %s18_s27, 4  }
 0x3c3   :  { %17 = sbr.rel (!%p15_p4) target bundleno = 1 (0x1), region = 82 }

// kernel: p2sfield_forward.7
= control target key start
LH: loop header
LB: loop body
LE: loop exit
PB: predicated region body
PF: predicated region fallthrough
CT: control target
= control target key end

     0   :  { %s2785_s21 = smov 0   ;;  %s3815_s0 = inlined_call_operand.vmem [shape: f32[3,256], index: 0, kind: input, shape index: {}]   ;;  %s3816_s1 = inlined_call_operand.vmem [shape: f32[64,3], index: 1, kind: input, shape index: {}]   ;;  %s3817_s2 = inlined_call_operand.vmem [shape: f32[64,1], index: 2, kind: input, shape index: {}]   ;;  %s3818_s3 = inlined_call_operand.vmem [shape: f32[64,1], index: 3, kind: input, shape index: {}]   ;;  %s3819_s4 = inlined_call_operand.vmem [shape: bf16[128,64], index: 4, kind: input, shape index: {}]   ;;  %s3820_s5 = inlined_call_operand.vmem [shape: f32[128,1], index: 5, kind: input, shape index: {}]   ;;  %s3821_s6 = inlined_call_operand.vmem [shape: f32[128,1], index: 6, kind: input, shape index: {}]   ;;  %s3822_s7 = inlined_call_operand.vmem [shape: bf16[256,128], index: 7, kind: input, shape index: {}]   ;;  %s3823_s8 = inlined_call_operand.vmem [shape: f32[256,1], index: 8, kind: input, shape index: {}]   ;;  %s3824_s9 = inlined_call_operand.vmem [shape: f32[256,1], index: 9, kind: input, shape index: {}]   ;;  %s3825_s10 = inlined_call_operand.vmem [shape: bf16[128,256], index: 10, kind: input, shape index: {}]   ;;  %s3826_s11 = inlined_call_operand.vmem [shape: f32[128,1], index: 11, kind: input, shape index: {}]   ;;  %s3827_s12 = inlined_call_operand.vmem [shape: bf16[64,128], index: 12, kind: input, shape index: {}]   ;;  %s3828_s13 = inlined_call_operand.vmem [shape: f32[64,1], index: 13, kind: input, shape index: {}]   ;;  %s3829_s14 = inlined_call_operand.vmem [shape: bf16[3,64], index: 14, kind: input, shape index: {}]   ;;  %s3830_s15 = inlined_call_operand.vmem [shape: f32[3,1], index: 15, kind: input, shape index: {}]   ;;  %s3831_s16 = inlined_call_operand.vmem [shape: f32[3,256], index: 16, kind: output, shape index: {}]  }
   0x1   :  { %3832 = sst [smem:[#allocation13_spill]] %s3815_s0 }
   0x2 LB: > { %s2401_s22 = sadd.s32 4294967295, %s2695_s21   ;;  %p2405_p0 = scmp.ge.s32.totalorder %s2695_s21, 1  ;;  %s2695_s21 = sphi %s2785_s21, %s26_s21  }
   0x3   : > { %p461_p1 = scmp.lt.s32.totalorder %s2695_s21, 3 }
   0x5   : > { %p462_p2 = pnand %p2405_p0, %p461_p1 }
   0x7   : > { %465 = sbr.rel (%p462_p2) target bundleno = 1489 (0x5d1), region = 84 }
   0xc   : > { %v524_v0 = vld [vmem:[%s3816_s1 + $0x30] sm:$0xff]  ;;  %v523_v1 = vld [vmem:[%s3816_s1 + $0x28] sm:$0xff]  ;;  %v2697_v2 = vmov 2   ;;  %v2698_v3 = vmov 1   ;;  %v525_v4 = vld [vmem:[%s3816_s1 + $0x38] sm:$0xff]  ;;  %v2699_v7 = vmov 0  }
   0xd   : > { %2667 = vset.pattern.permute.xlu2 %v2697_v2  ;;  %2670 = vset.pattern.permute.xlu0 %v2698_v3  ;;  %v519_v5 = vld [vmem:[%s3816_s1 + $0x8] sm:$0xff]  ;;  %v522_v6 = vld [vmem:[%s3816_s1 + $0x20] sm:$0xff]  ;;  %v680_v8 = vld [vmem:[%s3817_s2 + $0x30] sm:$0xff]  ;;  %p509_p3 = scmp.lt.s32.totalorder %s2401_s22, 1  ;;  %s3833_s18 = sld [smem:[#allocation13_spill]]  ;;  %vm854_vm0 = vcmask 523264  }
   0xe   : > { %2666 = vset.pattern.permute.xlu1 %v2698_v3  ;;  %650 = vperm.xlu2 %2667, %v524_v0   ;;  %v681_v9 = vld [vmem:[%s3817_s2 + $0x38] sm:$0xff]  ;;  %v520_v10 = vld [vmem:[%s3816_s1 + $0x10] sm:$0xff]  ;;  %v678_v14 = vld [vmem:[%s3817_s2 + $0x20] sm:$0xff] }
   0xf   : > { %601 = vperm.xlu1 %2666, %v524_v0   ;;  %597 = vperm.xlu0 %2670, %v523_v1   ;;  %v521_v11 = vld [vmem:[%s3816_s1 + $0x18] sm:$0xff]  ;;  %v736_v13 = vld [vmem:[%s3818_s3 + $0x30] sm:$0xff]  ;;  %v679_v15 = vld [vmem:[%s3817_s2 + $0x28] sm:$0xff]  ;;  %s3857_s22 = smov (!%p509_p3, %s2401_s22), 1 }
  0x10   : > { %v737_v12 = vld [vmem:[%s3818_s3 + $0x38] sm:$0xff]  ;;  %v518_v16 = vld [vmem:[%s3816_s1] sm:$0xff]  ;;  %v735_v19 = vld [vmem:[%s3818_s3 + $0x28] sm:$0xff]  ;;  %s2406_s30 = sshll.u32 %s3857_s22, 2 }
  0x11   : > { %v734_v17 = vld [vmem:[%s3818_s3 + $0x20] sm:$0xff]  ;;  %v943_v20 = vld [vmem:[%s3820_s5 + $0x78] sm:$0xff]  ;;  %v676_v21 = vld [vmem:[%s3817_s2 + $0x10] sm:$0xff]  ;;  %s516_s28 = scalar_lea.vmem %s3831_s16, %s2406_s30 }
  0x12   : > { %v674_v18 = vld [vmem:[%s3817_s2] sm:$0xff]  ;;  %v677_v24 = vld [vmem:[%s3817_s2 + $0x18] sm:$0xff]  ;;  %v732_v25 = vld [vmem:[%s3818_s3 + $0x10] sm:$0xff] }
  0x13   : > { %v940_v23 = vld [vmem:[%s3820_s5 + $0x60] sm:$0xff]  ;;  %v1053_v26 = vld [vmem:[%s3821_s6 + $0x68] sm:$0xff]  ;;  %v733_v27 = vld [vmem:[%s3818_s3 + $0x18] sm:$0xff]  ;;  %s512_s19 = scalar_lea.vmem %s3833_s18, %s2406_s30 }
  0x14   : > { %v675_v29 = vld [vmem:[%s3817_s2 + $0x8] sm:$0xff]  ;;  %v1050_v30 = vld [vmem:[%s3821_s6 + $0x50] sm:$0xff]  ;;  %v730_v31 = vld [vmem:[%s3818_s3] sm:$0xff] }
  0x15   : > { %v731_v35 = vld [vmem:[%s3818_s3 + $0x8] sm:$0xff]  ;;  %v942_v37 = vld [vmem:[%s3820_s5 + $0x70] sm:$0xff]  ;;  %v1055_v43 = vld [vmem:[%s3821_s6 + $0x78] sm:$0xff] }
  0x16   : > { %654 = vperm.xlu2 %2667, %v525_v4   ;;  %v937_v36 = vld [vmem:[%s3820_s5 + $0x48] sm:$0xff]  ;;  %v1054_v41 = vld [vmem:[%s3821_s6 + $0x70] sm:$0xff]  ;;  %v1047_v48 = vld [vmem:[%s3821_s6 + $0x38] sm:$0xff] }
  0x17   : > { %605 = vperm.xlu1 %2666, %v525_v4   ;;  %2686 = vset.pattern.permute.xlu0 %v2697_v2  ;;  %v934_v42 = vld [vmem:[%s3820_s5 + $0x30] sm:$0xff]  ;;  %v941_v46 = vld [vmem:[%s3820_s5 + $0x68] sm:$0xff]  ;;  %v1052_v49 = vld [vmem:[%s3821_s6 + $0x60] sm:$0xff] }
  0x18   : > { %630 = vperm.xlu0 %2686, %v519_v5   ;;  %v938_v52 = vld [vmem:[%s3820_s5 + $0x50] sm:$0xff]  ;;  %v1044_v53 = vld [vmem:[%s3821_s6 + $0x20] sm:$0xff]  ;;  %v939_v54 = vld [vmem:[%s3820_s5 + $0x58] sm:$0xff] }
  0x19   : > { %v526_v55 = vld [vmem:[%s512_s19] sm:$0x7]  ;;  %v1051_v62 = vld [vmem:[%s3821_s6 + $0x58] sm:$0xff] }
  0x1a   : > { %v2956_v57 = vperm.slane %v526_v55, 0  ;;  %v2958_v58 = vperm.slane %v526_v55, 1  ;;  %v2966_v63 = vperm.slane %v526_v55, 2 }
  0x1e   : > { %2669 = vset.pattern.permute.xlu2 %v2698_v3 }
  0x1f   : > { %2668 = vset.pattern.permute.xlu1 %v2699_v7  ;;  %593 = vperm.xlu2 %2669, %v522_v6  }
  0x20   : > { %554 = vperm.xlu1 %2668, %v523_v1   ;;  %2687 = vset.pattern.permute.xlu0 %v2699_v7 }
  0x21   : > { %559 = vperm.xlu0 %2687, %v524_v0  }
  0x27   : > { %2672 = vset.pattern.permute.xlu2 %v2697_v2 }
  0x28   : > { %2671 = vset.pattern.permute.xlu1 %v2697_v2  ;;  %646 = vperm.xlu2 %2672, %v523_v1  }
  0x29   : > { %642 = vperm.xlu1 %2671, %v522_v6   ;;  %564 = vperm.xlu0 %2687, %v525_v4  }
  0x30   : > { %2674 = vset.pattern.permute.xlu2 %v2699_v7 }
  0x31   : > { %2673 = vset.pattern.permute.xlu1 %v2699_v7  ;;  %549 = vperm.xlu0 %2687, %v522_v6  }
  0x32   : > { %714 = vperm.xlu1 %2673, %v680_v8   ;;  %719 = vperm.xlu2 %2674, %v681_v9  }
  0x39   : > { %539 = vperm.xlu0 %2687, %v520_v10  }
  0x3a   : > { %2675 = vset.pattern.permute.xlu2 %v2698_v3  ;;  %544 = vperm.xlu1 %2673, %v521_v11  }
  0x3b   : > { %585 = vperm.xlu2 %2675, %v520_v10  }
  0x41   : > { %775 = vperm.xlu0 %2687, %v737_v12  }
  0x42   : > { %2676 = vset.pattern.permute.xlu1 %v2698_v3 }
  0x43   : > { %589 = vperm.xlu1 %2676, %v521_v11   ;;  %2677 = vset.pattern.permute.xlu2 %v2699_v7 }
  0x44   : > { %770 = vperm.xlu2 %2677, %v736_v13   ;;  %v1048_v13 = vld [vmem:[%s3821_s6 + $0x40] sm:$0xff] }
  0x49   : > { %704 = vperm.xlu0 %2687, %v678_v14  }
  0x4b   : > { %2678 = vset.pattern.permute.xlu1 %v2697_v2 }
  0x4c   : > { %634 = vperm.xlu1 %2678, %v520_v10   ;;  %2679 = vset.pattern.permute.xlu2 %v2697_v2 }
  0x4d   : > { %638 = vperm.xlu2 %2679, %v521_v11  }
  0x51   : > { %534 = vperm.xlu0 %2687, %v519_v5  }
  0x54   : > { %2680 = vset.pattern.permute.xlu1 %v2699_v7 }
  0x55   : > { %709 = vperm.xlu1 %2680, %v679_v15   ;;  %2681 = vset.pattern.permute.xlu2 %v2699_v7  ;;  %v928_v15 = vld [vmem:[%s3820_s5] sm:$0xff] }
  0x56   : > { %529 = vperm.xlu2 %2681, %v518_v16  }
  0x59   : > { %760 = vperm.xlu0 %2687, %v734_v17  }
  0x5d   : > { %2682 = vset.pattern.permute.xlu1 %v2698_v3 }
  0x5e   : > { %577 = vperm.xlu1 %2682, %v518_v16   ;;  %2683 = vset.pattern.permute.xlu2 %v2698_v3  ;;  %v936_v3 = vld [vmem:[%s3820_s5 + $0x40] sm:$0xff] }
  0x5f   : > { %581 = vperm.xlu2 %2683, %v519_v5  }
  0x61   : > { %684 = vperm.xlu0 %2687, %v674_v18  }
  0x66   : > { %2684 = vset.pattern.permute.xlu1 %v2699_v7 }
  0x67   : > { %765 = vperm.xlu1 %2684, %v735_v19   ;;  %2685 = vset.pattern.permute.xlu2 %v2697_v2  ;;  %v931_v2 = vld [vmem:[%s3820_s5 + $0x18] sm:$0xff] }
  0x68   : > { %626 = vperm.xlu2 %2685, %v518_v16   ;;  %v2865_v22 = vpop.permute.xlu2 %650  ;;  %v1049_v16 = vld [vmem:[%s3821_s6 + $0x48] sm:$0xff] }
  0x69   : > { %1021 = vperm.xlu0 %2687, %v943_v20  }
  0x6f   : > { %694 = vperm.xlu1 %2684, %v676_v21  }
  0x70   : > { %2688 = vset.pattern.permute.xlu2 %v2699_v7  ;;  %v2883_v28 = vpop.permute.xlu2 %654  ;;  %v664_v7 = vmul.f32 %v2966_v63, %v2865_v22 }
  0x71   : > { %1006 = vperm.xlu0 %2687, %v940_v23   ;;  %699 = vperm.xlu2 %2688, %v677_v24   ;;  %v665_v10 = vmul.f32 %v2966_v63, %v2883_v28  ;;  %v935_v23 = vld [vmem:[%s3820_s5 + $0x38] sm:$0xff] }
  0x77   : > { %750 = vperm.xlu1 %2684, %v732_v25  }
  0x79   : > { %1123 = vperm.xlu0 %2687, %v1053_v26   ;;  %755 = vperm.xlu2 %2688, %v733_v27   ;;  %v2894_v32 = vpop.permute.xlu2 %593  ;;  %v1041_v26 = vld [vmem:[%s3821_s6 + $0x8] sm:$0xff]  ;;  %v1046_v27 = vld [vmem:[%s3821_s6 + $0x30] sm:$0xff] }
  0x7f   : > { %689 = vperm.xlu1 %2684, %v675_v29  }
  0x81   : > { %v602_v33 = vpop.permute.xlu1 %601  ;;  %1108 = vperm.xlu0 %2687, %v1050_v30   ;;  %740 = vperm.xlu2 %2688, %v730_v31   ;;  %v2896_v34 = vpop.permute.xlu0 %597  ;;  %v932_v30 = vld [vmem:[%s3820_s5 + $0x20] sm:$0xff] }
  0x82   : > { %v2909_v40 = vpop.permute.xlu2 %646  ;;  %v615_v0 = vmul.f32 %v2958_v58, %v602_v33 }
  0x87   : > { %745 = vperm.xlu1 %2684, %v731_v35   ;;  %v1423_v35 = vld [vmem:[%s3823_s8 + $0xf0] sm:$0xff] }
  0x89   : > { %v606_v38 = vpop.permute.xlu1 %605  ;;  %991 = vperm.xlu0 %2687, %v937_v36   ;;  %1016 = vperm.xlu2 %2688, %v942_v37   ;;  %v933_v36 = vld [vmem:[%s3820_s5 + $0x28] sm:$0xff] }
  0x8a   : > { %v2907_v39 = vpop.permute.xlu0 %630  ;;  %v616_v4 = vmul.f32 %v2958_v58, %v606_v38  ;;  %v1045_v38 = vld [vmem:[%s3821_s6 + $0x28] sm:$0xff] }
  0x8c   : > { %v720_v47 = vpop.permute.xlu2 %719 }
  0x8f   : > { %1128 = vperm.xlu1 %2684, %v1054_v41   ;;  %v1632_v41 = vld [vmem:[%s3824_s9 + $0x78] sm:$0xff] }
  0x91   : > { %976 = vperm.xlu0 %2687, %v934_v42   ;;  %1133 = vperm.xlu2 %2688, %v1055_v43   ;;  %v930_v42 = vld [vmem:[%s3820_s5 + $0x10] sm:$0xff] }
  0x92   : > { %v2922_v44 = vpop.permute.xlu1 %554 }
  0x93   : > { %v560_v45 = vpop.permute.xlu0 %559 }
  0x94   : > { %v574_v60 = vmul.f32 %v2956_v57, %v560_v45 }
  0x95   : > { %v2954_v56 = vpop.permute.xlu2 %585 }
  0x96   : > { %v623_v5 = vadd.f32 %v615_v0, %v574_v60 }
  0x97   : > { %1011 = vperm.xlu1 %2684, %v941_v46  }
  0x98   : > { %v672_v11 = vadd.f32 %v664_v7, %v623_v5 }
  0x99   : > { %1093 = vperm.xlu0 %2687, %v1047_v48   ;;  %1118 = vperm.xlu2 %2688, %v1052_v49   ;;  %v1042_v48 = vld [vmem:[%s3821_s6 + $0x10] sm:$0xff]  ;;  %v614_v49 = vmul.f32 %v2958_v58, %v2896_v34 }
  0x9b   : > { %v2938_v50 = vpop.permute.xlu1 %642  ;;  %v565_v51 = vpop.permute.xlu0 %564 }
  0x9c   : > { %v575_v1 = vmul.f32 %v2956_v57, %v565_v51  ;;  %v613_v51 = vmul.f32 %v2958_v58, %v2894_v32  ;;  %v663_v32 = vmul.f32 %v2966_v63, %v2909_v40  ;;  %v1040_v40 = vld [vmem:[%s3821_s6] sm:$0xff] }
  0x9e   : > { %v771_v6 = vpop.permute.xlu2 %770  ;;  %v624_v8 = vadd.f32 %v616_v4, %v575_v1 }
  0x9f   : > { %996 = vperm.xlu1 %2684, %v938_v52   ;;  %v573_v52 = vmul.f32 %v2956_v57, %v2922_v44  ;;  %v662_v44 = vmul.f32 %v2966_v63, %v2938_v50 }
  0xa0   : > { %v673_v17 = vadd.f32 %v665_v10, %v624_v8 }
  0xa1   : > { %1078 = vperm.xlu0 %2687, %v1044_v53   ;;  %1001 = vperm.xlu2 %2688, %v939_v54   ;;  %v1647_v53 = vld [vmem:[%s3824_s9 + $0xf0] sm:$0xff]  ;;  %v1043_v54 = vld [vmem:[%s3821_s6 + $0x18] sm:$0xff]  ;;  %v622_v34 = vadd.f32 %v614_v49, %v573_v52  ;;  %v1406_v52 = vld [vmem:[%s3823_s8 + $0x68] sm:$0xff] }
  0xa2   : > { %v729_v18 = vmul.f32 %v720_v47, %v673_v17  ;;  %v1408_v17 = vld [vmem:[%s3823_s8 + $0x78] sm:$0xff] }
  0xa3   : > { %v2960_v59 = vpop.permute.xlu0 %549 }
  0xa4   : > { %v715_v61 = vpop.permute.xlu1 %714  ;;  %v572_v47 = vmul.f32 %v2956_v57, %v2960_v59 }
  0xa5   : > { %v728_v14 = vmul.f32 %v715_v61, %v672_v11 }
  0xa6   : > { %v621_v55 = vadd.f32 %v613_v51, %v572_v47 }
  0xa7   : > { %1113 = vperm.xlu1 %2684, %v1051_v62   ;;  %v784_v19 = vadd.f32 %v771_v6, %v728_v14  ;;  %v2994_v20 = vpop.permute.xlu2 %638  ;;  %v929_v62 = vld [vmem:[%s3820_s5 + $0x8] sm:$0xff] }
  0xa8   : > { %v670_v61 = vadd.f32 %v662_v44, %v621_v55 }
  0xa9   : > { %961 = vperm.xlu0 %2687, %v931_v2   ;;  %986 = vperm.xlu2 %2688, %v936_v3   ;;  %v792_v28 = vmax.f32 %v784_v19, 0.0  ;;  %v671_v2 = vadd.f32 %v663_v32, %v622_v34  ;;  %v1422_v3 = vld [vmem:[%s3823_s8 + $0xe8] sm:$0xff]  ;;  %v661_v19 = vmul.f32 %v2966_v63, %v2994_v20  ;;  %v1421_v34 = vld [vmem:[%s3823_s8 + $0xe0] sm:$0xff] }
  0xaa   : > { %v1402_v32 = vld [vmem:[%s3823_s8 + $0x48] sm:$0xff] }
  0xab   : > { %v2979_v9 = vpop.permute.xlu0 %539 }
  0xac   : > { %v2983_v12 = vpop.permute.xlu1 %544 }
  0xad   : > { %v571_v14 = vmul.f32 %v2956_v57, %v2983_v12 }
  0xaf   : > { %1098 = vperm.xlu1 %2684, %v1048_v13   ;;  %v1407_v13 = vld [vmem:[%s3823_s8 + $0x70] sm:$0xff] }
  0xb0   : > { %v3008_v31 = vpop.permute.xlu2 %529 }
  0xb1   : > { %946 = vperm.xlu0 %2687, %v928_v15   ;;  %1103 = vperm.xlu2 %2688, %v1049_v16   ;;  %v1403_v16 = vld [vmem:[%s3823_s8 + $0x50] sm:$0xff] }
  0xb3   : > { %v776_v21 = vpop.permute.xlu0 %775 }
  0xb4   : > { %v785_v22 = vadd.f32 %v776_v21, %v729_v18  ;;  %v611_v18 = vmul.f32 %v2958_v58, %v2954_v56  ;;  %v570_v21 = vmul.f32 %v2956_v57, %v2979_v9  ;;  %v1424_v56 = vld [vmem:[%s3823_s8 + $0xf8] sm:$0xff]  ;;  %v1646_v9 = vld [vmem:[%s3824_s9 + $0xe8] sm:$0xff] }
  0xb5   : > { %v590_v24 = vpop.permute.xlu1 %589 }
  0xb6   : > { %v793_v25 = vmax.f32 %v785_v22, 0.0  ;;  %v612_v8 = vmul.f32 %v2958_v58, %v590_v24  ;;  %v619_v24 = vadd.f32 %v611_v18, %v570_v21  ;;  %v1644_v18 = vld [vmem:[%s3824_s9 + $0xd8] sm:$0xff] }
  0xb7   : > { %981 = vperm.xlu1 %2684, %v935_v23  }
  0xb8   : > { %v797_v29 = vpack.c.bf16 %v793_v25, %v792_v28  ;;  %v620_v12 = vadd.f32 %v612_v8, %v571_v14  ;;  %v1631_v28 = vld [vmem:[%s3824_s9 + $0x70] sm:$0xff]  ;;  %v1641_v8 = vld [vmem:[%s3824_s9 + $0xc0] sm:$0xff]  ;;  %v1416_v14 = vld [vmem:[%s3823_s8 + $0xb8] sm:$0xff] }
  0xb9   : > { %1063 = vperm.xlu0 %2687, %v1041_v26   ;;  %1088 = vperm.xlu2 %2688, %v1046_v27   ;;  %v3027_v43 = vpop.permute.xlu2 %581 }
  0xba   : > { %883 = vmatpush.bf16.msra.mxu0 %v797_v29  ;;  %v669_v25 = vadd.f32 %v661_v19, %v620_v12  ;;  %v2597_v19 = vld [vmem:[%s3819_s4 + $0x10] sm:$0xff]  ;;  %v1418_v12 = vld [vmem:[%s3823_s8 + $0xc8] sm:$0xff] }
  0xbb   : > { %v705_v37 = vpop.permute.xlu0 %704 }
  0xbc   : > { %v726_v1 = vmul.f32 %v705_v37, %v670_v61  ;;  %v568_v37 = vmul.f32 %v2956_v57, %v3008_v31  ;;  %v1627_v31 = vld [vmem:[%s3824_s9 + $0x50] sm:$0xff] }
  0xbe   : > { %v3010_v33 = vpop.permute.xlu1 %634 }
  0xbf   : > { %966 = vperm.xlu1 %2684, %v932_v30   ;;  %v660_v23 = vmul.f32 %v2966_v63, %v3010_v33 }
  0xc1   : > { %1577 = vperm.xlu0 %2687, %v1423_v35   ;;  %971 = vperm.xlu2 %2688, %v933_v36   ;;  %v668_v20 = vadd.f32 %v660_v23, %v619_v24  ;;  %v1640_v23 = vld [vmem:[%s3824_s9 + $0xb8] sm:$0xff]  ;;  %v1625_v24 = vld [vmem:[%s3824_s9 + $0x40] sm:$0xff] }
  0xc2   : > { %v627_v60 = vpop.permute.xlu2 %626 }
  0xc3   : > { %v3029_v46 = vpop.permute.xlu0 %534 }
  0xc4   : > { %v569_v47 = vmul.f32 %v2956_v57, %v3029_v46  ;;  %v659_v57 = vmul.f32 %v2966_v63, %v2907_v39  ;;  %v1648_v46 = vld [vmem:[%s3824_s9 + $0xf8] sm:$0xff] }
  0xc7   : > { %v710_v45 = vpop.permute.xlu1 %709  ;;  %1083 = vperm.xlu1 %2684, %v1045_v38  }
  0xc8   : > { %v727_v4 = vmul.f32 %v710_v45, %v671_v2  ;;  %v610_v45 = vmul.f32 %v2958_v58, %v3027_v43 }
  0xc9   : > { %1726 = vperm.xlu0 %2687, %v1632_v41   ;;  %956 = vperm.xlu2 %2688, %v930_v42   ;;  %v1405_v42 = vld [vmem:[%s3823_s8 + $0x60] sm:$0xff] }
  0xcb   : > { %v761_v0 = vpop.permute.xlu0 %760  ;;  %v700_v7 = vpop.permute.xlu2 %699 }
  0xcc   : > { %v782_v5 = vadd.f32 %v761_v0, %v726_v1  ;;  %v725_v27 = vmul.f32 %v700_v7, %v669_v25  ;;  %v1629_v1 = vld [vmem:[%s3824_s9 + $0x60] sm:$0xff]  ;;  %v1419_v7 = vld [vmem:[%s3823_s8 + $0xd0] sm:$0xff] }
  0xcd   : > { %v1399_v25 = vld [vmem:[%s3823_s8 + $0x30] sm:$0xff] }
  0xce   : > { %v790_v10 = vmax.f32 %v782_v5, 0.0  ;;  %v1404_v5 = vld [vmem:[%s3823_s8 + $0x58] sm:$0xff] }
  0xcf   : > { %1068 = vperm.xlu1 %2684, %v1042_v48   ;;  %v658_v48 = vmul.f32 %v2966_v63, %v627_v60 }
  0xd0   : > { %v578_v59 = vpop.permute.xlu1 %577 }
  0xd1   : > { %1801 = vperm.xlu0 %2687, %v1647_v53   ;;  %1073 = vperm.xlu2 %2688, %v1043_v54   ;;  %v609_v35 = vmul.f32 %v2958_v58, %v578_v59  ;;  %v618_v58 = vadd.f32 %v610_v45, %v569_v47  ;;  %v2599_v45 = vld [vmem:[%s3819_s4 + $0x20] sm:$0xff] }
  0xd3   : > { %v756_v26 = vpop.permute.xlu2 %755  ;;  %v617_v49 = vadd.f32 %v609_v35, %v568_v37  ;;  %v685_v54 = vpop.permute.xlu0 %684  ;;  %v667_v60 = vadd.f32 %v659_v57, %v618_v58 }
  0xd4   : > { %v781_v29 = vadd.f32 %v756_v26, %v725_v27  ;;  %v1621_v27 = vld [vmem:[%s3824_s9 + $0x20] sm:$0xff] }
  0xd5   : > { %v666_v43 = vadd.f32 %v658_v48, %v617_v49 }
  0xd6   : > { %v789_v38 = vmax.f32 %v781_v29, 0.0  ;;  %v1642_v29 = vld [vmem:[%s3824_s9 + $0xc8] sm:$0xff] }
  0xd7   : > { %951 = vperm.xlu1 %2684, %v929_v62   ;;  %v722_v59 = vmul.f32 %v685_v54, %v666_v43  ;;  %v1413_v43 = vld [vmem:[%s3823_s8 + $0xa0] sm:$0xff]  ;;  %v1414_v54 = vld [vmem:[%s3823_s8 + $0xa8] sm:$0xff] }
  0xd9   : > { %1572 = vperm.xlu0 %2687, %v1422_v3   ;;  %v766_v50 = vpop.permute.xlu1 %765  ;;  %1058 = vperm.xlu2 %2688, %v1040_v40   ;;  %v1417_v3 = vld [vmem:[%s3823_s8 + $0xc0] sm:$0xff]  ;;  %v1630_v40 = vld [vmem:[%s3824_s9 + $0x68] sm:$0xff] }
  0xda   : > { %v783_v6 = vadd.f32 %v766_v50, %v727_v4  ;;  %v2595_v4 = vld [vmem:[%s3819_s4] sm:$0xff]  ;;  %v1626_v50 = vld [vmem:[%s3824_s9 + $0x48] sm:$0xff] }
  0xdb   : > { %v741_v55 = vpop.permute.xlu2 %740 }
  0xdc   : > { %v791_v11 = vmax.f32 %v783_v6, 0.0  ;;  %v778_v44 = vadd.f32 %v741_v55, %v722_v59  ;;  %v1645_v6 = vld [vmem:[%s3824_s9 + $0xe0] sm:$0xff]  ;;  %v2600_v55 = vld [vmem:[%s3819_s4 + $0x28] sm:$0xff] }
  0xdd   : > { %v1622_v59 = vld [vmem:[%s3824_s9 + $0x28] sm:$0xff] }
  0xde   : > { %v796_v15 = vpack.c.bf16 %v791_v11, %v790_v10  ;;  %v786_v62 = vmax.f32 %v778_v44, 0.0  ;;  %v1420_v10 = vld [vmem:[%s3823_s8 + $0xd8] sm:$0xff]  ;;  %v2596_v11 = vld [vmem:[%s3819_s4 + $0x8] sm:$0xff]  ;;  %v1395_v44 = vld [vmem:[%s3823_s8 + $0x10] sm:$0xff] }
  0xdf   : > { %1497 = vperm.xlu1 %2684, %v1407_v13   ;;  %v1628_v13 = vld [vmem:[%s3824_s9 + $0x58] sm:$0xff] }
  0xe0   : > { %884 = vmatpush.bf16.msra.mxu0 %v796_v15  ;;  %v1401_v15 = vld [vmem:[%s3823_s8 + $0x40] sm:$0xff] }
  0xe1   : > { %1477 = vperm.xlu0 %2687, %v1403_v16   ;;  %v695_v22 = vpop.permute.xlu1 %694  ;;  %1502 = vperm.xlu2 %2688, %v1408_v17   ;;  %v1643_v16 = vld [vmem:[%s3824_s9 + $0xd0] sm:$0xff]  ;;  %v1397_v17 = vld [vmem:[%s3823_s8 + $0x20] sm:$0xff] }
  0xe2   : > { %v724_v30 = vmul.f32 %v695_v22, %v668_v20  ;;  %v3180_v22 = vpop.permute.xlu0 %1021  ;;  %v1400_v20 = vld [vmem:[%s3823_s8 + $0x38] sm:$0xff] }
  0xe3   : > { %v3174_v21 = vpop.permute.xlu2 %1016 }
  0xe7   : > { %1582 = vperm.xlu1 %2684, %v1424_v56  }
  0xe9   : > { %1796 = vperm.xlu0 %2687, %v1646_v9   ;;  %v751_v33 = vpop.permute.xlu1 %750  ;;  %1721 = vperm.xlu2 %2688, %v1631_v28   ;;  %v2598_v9 = vld [vmem:[%s3819_s4 + $0x18] sm:$0xff] }
  0xea   : > { %v780_v36 = vadd.f32 %v751_v33, %v724_v30  ;;  %v3204_v28 = vpop.permute.xlu0 %1006  ;;  %v1396_v30 = vld [vmem:[%s3823_s8 + $0x18] sm:$0xff]  ;;  %v1415_v33 = vld [vmem:[%s3823_s8 + $0xb0] sm:$0xff] }
  0xeb   : > { %v3191_v56 = vpop.permute.xlu2 %1133 }
  0xec   : > { %v788_v41 = vmax.f32 %v780_v36, 0.0 }
  0xee   : > { %v795_v51 = vpack.c.bf16 %v789_v38, %v788_v41  ;;  %v1623_v38 = vld [vmem:[%s3824_s9 + $0x30] sm:$0xff] }
  0xef   : > { %1487 = vperm.xlu1 %2684, %v1405_v42   ;;  %v1411_v41 = vld [vmem:[%s3823_s8 + $0x90] sm:$0xff]  ;;  %v1624_v42 = vld [vmem:[%s3824_s9 + $0x38] sm:$0xff] }
  0xf0   : > { %885 = vmatpush.bf16.msra.mxu0 %v795_v51  ;;  %v1398_v51 = vld [vmem:[%s3823_s8 + $0x28] sm:$0xff] }
  0xf1   : > { %1701 = vperm.xlu0 %2687, %v1627_v31   ;;  %v690_v53 = vpop.permute.xlu1 %689  ;;  %1492 = vperm.xlu2 %2688, %v1406_v52   ;;  %v1620_v31 = vld [vmem:[%s3824_s9 + $0x18] sm:$0xff]  ;;  %v1639_v52 = vld [vmem:[%s3824_s9 + $0xb0] sm:$0xff] }
  0xf2   : > { %v723_v61 = vmul.f32 %v690_v53, %v667_v60  ;;  %v3220_v37 = vpop.permute.xlu0 %1123 }
  0xf3   : > { %v3216_v35 = vpop.permute.xlu2 %1118 }
  0xf7   : > { %1806 = vperm.xlu1 %2684, %v1648_v46   ;;  %v1635_v46 = vld [vmem:[%s3824_s9 + $0x90] sm:$0xff] }
  0xf9   : > { %1472 = vperm.xlu0 %2687, %v1402_v32   ;;  %v746_v39 = vpop.permute.xlu1 %745  ;;  %1567 = vperm.xlu2 %2688, %v1421_v34   ;;  %v1410_v34 = vld [vmem:[%s3823_s8 + $0x88] sm:$0xff] }
  0xfa   : > { %v779_v63 = vadd.f32 %v746_v39, %v723_v61  ;;  %v3239_v49 = vpop.permute.xlu0 %1108  ;;  %v1637_v39 = vld [vmem:[%s3824_s9 + $0xa0] sm:$0xff] }
  0xfb   : > { %v3234_v47 = vpop.permute.xlu2 %1001 }
  0xfc   : > { %v787_v0 = vmax.f32 %v779_v63, 0.0  ;;  %v1633_v63 = vld [vmem:[%s3824_s9 + $0x80] sm:$0xff] }
  0xfe   : > { %v794_v2 = vpack.c.bf16 %v787_v0, %v786_v62  ;;  %v1638_v62 = vld [vmem:[%s3824_s9 + $0xa8] sm:$0xff] }
  0xff   : > { %1711 = vperm.xlu1 %2684, %v1629_v1   ;;  %v2601_v1 = vld [vmem:[%s3819_s4 + $0x30] sm:$0xff] }
 0x100   : > { %886 = vmatpush.bf16.msra.mxu0 %v794_v2 }
 0x101   : > { %1547 = vperm.xlu0 %2687, %v1417_v3   ;;  %1716 = vperm.xlu2 %2688, %v1630_v40   ;;  %v3193_v26 = vpop.permute.xlu1 %1128  ;;  %v1412_v40 = vld [vmem:[%s3823_s8 + $0x98] sm:$0xff] }
 0x102   : > { %v3257_v57 = vpop.permute.xlu0 %991 }
 0x103   : > { %2440 = vmatmul.msk.bf16.vlgmr.msra.gmra.mxu0 %vm854_vm0, %v2595_v4  ;;  %v3250_v53 = vpop.permute.xlu2 %986  ;;  %v1920_v4 = vld [vmem:[%s3826_s11 + $0x78] sm:$0xff] }
 0x107   : > { %1482 = vperm.xlu1 %2684, %v1404_v5   ;;  %v1619_v5 = vld [vmem:[%s3824_s9 + $0x10] sm:$0xff] }
 0x109   : > { %1696 = vperm.xlu0 %2687, %v1626_v50   ;;  %1791 = vperm.xlu2 %2688, %v1645_v6   ;;  %v3218_v36 = vpop.permute.xlu1 %1011 }
 0x10a   : > { %v3282_v61 = vpop.permute.xlu0 %976 }
 0x10b   : > { %v3272_v60 = vpop.permute.xlu2 %1103 }
 0x10f   : > { %1557 = vperm.xlu1 %2684, %v1419_v7  }
 0x111   : > { %1771 = vperm.xlu0 %2687, %v1641_v8   ;;  %1562 = vperm.xlu2 %2688, %v1420_v10   ;;  %v3236_v48 = vpop.permute.xlu1 %996  ;;  %v1393_v8 = vld [vmem:[%s3823_s8] sm:$0xff]  ;;  %v1915_v10 = vld [vmem:[%s3826_s11 + $0x50] sm:$0xff] }
 0x112   : > { %v3300_v3 = vpop.permute.xlu0 %1093 }
 0x113   : > { %2441 = vmatmul.msk.bf16.gmra.mxu0 %vm854_vm0, %v2596_v11  ;;  %v3293_v0 = vpop.permute.xlu2 %1088  ;;  %v1394_v11 = vld [vmem:[%s3823_s8 + $0x8] sm:$0xff] }
 0x117   : > { %1706 = vperm.xlu1 %2684, %v1628_v13   ;;  %v2602_v13 = vld [vmem:[%s3819_s4 + $0x38] sm:$0xff] }
 0x119   : > { %1542 = vperm.xlu0 %2687, %v1416_v14   ;;  %1467 = vperm.xlu2 %2688, %v1401_v15   ;;  %v3252_v58 = vpop.permute.xlu1 %1113 }
 0x11a   : > { %v3316_v7 = vpop.permute.xlu0 %1078 }
 0x11b   : > { %v3312_v50 = vpop.permute.xlu2 %971 }
 0x11f   : > { %1781 = vperm.xlu1 %2684, %v1643_v16   ;;  %v1636_v16 = vld [vmem:[%s3824_s9 + $0x98] sm:$0xff] }
 0x121   : > { %1447 = vperm.xlu0 %2687, %v1397_v17   ;;  %1786 = vperm.xlu2 %2688, %v1644_v18   ;;  %v3274_v32 = vpop.permute.xlu1 %1098  ;;  %v1914_v18 = vld [vmem:[%s3826_s11 + $0x48] sm:$0xff] }
 0x122   : > { %v962_v17 = vpop.permute.xlu0 %961 }
 0x123   : > { %2442 = vmatmul.msk.bf16.gmra.mxu0 %vm854_vm0, %v2597_v19  ;;  %v957_v14 = vpop.permute.xlu2 %956  ;;  %v1409_v19 = vld [vmem:[%s3823_s8 + $0x80] sm:$0xff] }
 0x127   : > { %1552 = vperm.xlu1 %2684, %v1418_v12   ;;  %v1617_v12 = vld [vmem:[%s3824_s9] sm:$0xff] }
 0x129   : > { %1766 = vperm.xlu0 %2687, %v1640_v23   ;;  %1691 = vperm.xlu2 %2688, %v1625_v24   ;;  %v3298_v2 = vpop.permute.xlu1 %981 }
 0x12b   : > { %v1074_v23 = vpop.permute.xlu2 %1073 }
 0x12f   : > { %1457 = vperm.xlu1 %2684, %v1399_v25   ;;  %v1909_v25 = vld [vmem:[%s3826_s11 + $0x20] sm:$0xff] }
 0x131   : > { %1671 = vperm.xlu0 %2687, %v1621_v27   ;;  %1462 = vperm.xlu2 %2688, %v1400_v20   ;;  %v3314_v6 = vpop.permute.xlu1 %966  ;;  %v1618_v27 = vld [vmem:[%s3824_s9 + $0x8] sm:$0xff]  ;;  %v947_v20 = vpop.permute.xlu0 %946 }
 0x133   : > { %2443 = vmatmul.msk.bf16.gmra.mxu0 %vm854_vm0, %v2598_v9 }
 0x137   : > { %1776 = vperm.xlu1 %2684, %v1642_v29   ;;  %v1634_v29 = vld [vmem:[%s3824_s9 + $0x88] sm:$0xff] }
 0x139   : > { %1442 = vperm.xlu0 %2687, %v1396_v30   ;;  %1537 = vperm.xlu2 %2688, %v1415_v33   ;;  %v3331_v15 = vpop.permute.xlu1 %1083  ;;  %v1908_v33 = vld [vmem:[%s3826_s11 + $0x18] sm:$0xff] }
 0x13f   : > { %1681 = vperm.xlu1 %2684, %v1623_v38   ;;  %v1919_v38 = vld [vmem:[%s3826_s11 + $0x70] sm:$0xff] }
 0x141   : > { %1517 = vperm.xlu0 %2687, %v1411_v41   ;;  %1686 = vperm.xlu2 %2688, %v1624_v42   ;;  %v1069_v24 = vpop.permute.xlu1 %1068  ;;  %v1059_v41 = vpop.permute.xlu2 %1058 }
 0x143   : > { %2444 = vmatmul.msk.bf16.gmra.mxu0 %vm854_vm0, %v2599_v45 }
 0x147   : > { %1452 = vperm.xlu1 %2684, %v1398_v51  }
 0x149   : > { %1666 = vperm.xlu0 %2687, %v1620_v31   ;;  %1761 = vperm.xlu2 %2688, %v1639_v52   ;;  %v952_v42 = vpop.permute.xlu1 %951  ;;  %v1064_v52 = vpop.permute.xlu0 %1063 }
 0x14f   : > { %1527 = vperm.xlu1 %2684, %v1413_v43  }
 0x151   : > { %1741 = vperm.xlu0 %2687, %v1635_v46   ;;  %1532 = vperm.xlu2 %2688, %v1414_v54   ;;  %v1917_v46 = vld [vmem:[%s3826_s11 + $0x60] sm:$0xff] }
 0x153   : > { %2445 = vmatmul.msk.bf16.gmra.mxu0 %vm854_vm0, %v2600_v55 }
 0x157   : > { %1676 = vperm.xlu1 %2684, %v1622_v59   ;;  %v2217_v59 = vld [vmem:[%s3828_s13 + $0x30] sm:$0xff] }
 0x159   : > { %1512 = vperm.xlu0 %2687, %v1410_v34   ;;  %1437 = vperm.xlu2 %2688, %v1395_v44   ;;  %v1918_v34 = vld [vmem:[%s3826_s11 + $0x68] sm:$0xff] }
 0x15f   : > { %1751 = vperm.xlu1 %2684, %v1637_v39  }
 0x161   : > { %1731 = vperm.xlu0 %2687, %v1633_v63   ;;  %1756 = vperm.xlu2 %2688, %v1638_v62   ;;  %v1916_v63 = vld [vmem:[%s3826_s11 + $0x58] sm:$0xff] }
 0x163   : > { %2446 = vmatmul.msk.bf16.gmra.mxu0 %vm854_vm0, %v2601_v1  ;;  %v2216_v1 = vld [vmem:[%s3828_s13 + $0x28] sm:$0xff] }
 0x167   : > { %1522 = vperm.xlu1 %2684, %v1412_v40   ;;  %v1913_v40 = vld [vmem:[%s3826_s11 + $0x40] sm:$0xff] }
 0x169   : > { %1998 = vperm.xlu0 %2687, %v1920_v4   ;;  %1661 = vperm.xlu2 %2688, %v1619_v5  }
 0x16f   : > { %1427 = vperm.xlu1 %2684, %v1393_v8  }
 0x171   : > { %1973 = vperm.xlu0 %2687, %v1915_v10   ;;  %1432 = vperm.xlu2 %2688, %v1394_v11   ;;  %v1911_v11 = vld [vmem:[%s3826_s11 + $0x30] sm:$0xff] }
 0x173   : > { %2447 = vmatmul.msk.bf16.gmra.mxu0 %vm854_vm0, %v2602_v13 }
 0x177   : > { %1746 = vperm.xlu1 %2684, %v1636_v16   ;;  %v2211_v16 = vld [vmem:[%s3828_s13] sm:$0xff] }
 0x179   : > { %1968 = vperm.xlu0 %2687, %v1914_v18   ;;  %1507 = vperm.xlu2 %2688, %v1409_v19   ;;  %v1912_v18 = vld [vmem:[%s3826_s11 + $0x38] sm:$0xff] }
 0x17f   : > { %1651 = vperm.xlu1 %2684, %v1617_v12   ;;  %v1910_v12 = vld [vmem:[%s3826_s11 + $0x28] sm:$0xff] }
 0x180   : > { %v888_v9 = vpop.f32.mrf.mxu0 }
 0x181   : > { %1943 = vperm.xlu0 %2687, %v1909_v25   ;;  %1656 = vperm.xlu2 %2688, %v1618_v27   ;;  %v1024_v30 = vmul.f32 %v947_v20, %v888_v9 }
 0x183   : > { %v1136_v51 = vadd.f32 %v1059_v41, %v1024_v30 }
 0x185   : > { %v1152_v54 = vmax.f32 %v1136_v51, 0.0 }
 0x187   : > { %1736 = vperm.xlu1 %2684, %v1634_v29   ;;  %v1905_v29 = vld [vmem:[%s3826_s11] sm:$0xff] }
 0x188   : > { %v890_v45 = vpop.f32.mrf.mxu0 }
 0x189   : > { %v1025_v31 = vmul.f32 %v952_v42, %v890_v45  ;;  %1938 = vperm.xlu0 %2687, %v1908_v33   ;;  %1993 = vperm.xlu2 %2688, %v1919_v38  }
 0x18b   : > { %v1137_v43 = vadd.f32 %v1064_v52, %v1025_v31  ;;  %v2213_v52 = vld [vmem:[%s3828_s13 + $0x10] sm:$0xff] }
 0x18d   : > { %v1153_v55 = vmax.f32 %v1137_v43, 0.0 }
 0x18f   : > { %1983 = vperm.xlu1 %2684, %v1917_v46   ;;  %v3369_v44 = vpack.c.bf16 %v1153_v55, %v1152_v54 }
 0x190   : > { %v893_v39 = vpop.f32.mrf.mxu0 }
 0x191   : > { %2251 = vperm.xlu0 %2687, %v2217_v59   ;;  %1988 = vperm.xlu2 %2688, %v1918_v34   ;;  %v1026_v62 = vmul.f32 %v957_v14, %v893_v39  ;;  %v3433_v39 = vpop.permute.xlu1 %1497 }
 0x193   : > { %v1138_v5 = vadd.f32 %v1069_v24, %v1026_v62  ;;  %v1907_v24 = vld [vmem:[%s3826_s11 + $0x10] sm:$0xff] }
 0x195   : > { %v1154_v13 = vmax.f32 %v1138_v5, 0.0 }
 0x197   : > { %1978 = vperm.xlu1 %2684, %v1916_v63   ;;  %v3435_v63 = vpop.permute.xlu2 %1502 }
 0x198   : > { %v895_v4 = vpop.f32.mrf.mxu0 }
 0x199   : > { %v1027_v8 = vmul.f32 %v962_v17, %v895_v4  ;;  %2246 = vperm.xlu0 %2687, %v2216_v1   ;;  %1963 = vperm.xlu2 %2688, %v1913_v40   ;;  %v3437_v1 = vpop.permute.xlu1 %1582 }
 0x19b   : > { %v1139_v10 = vadd.f32 %v1074_v23, %v1027_v8 }
 0x19d   : > { %v1155_v14 = vmax.f32 %v1139_v10, 0.0 }
 0x19f   : > { %1953 = vperm.xlu1 %2684, %v1911_v11   ;;  %v3389_v19 = vpack.c.bf16 %v1155_v14, %v1154_v13  ;;  %v3439_v4 = vpop.permute.xlu2 %1721 }
 0x1a0   : > { %v898_v17 = vpop.f32.mrf.mxu0 }
 0x1a1   : > { %2221 = vperm.xlu0 %2687, %v2211_v16   ;;  %1958 = vperm.xlu2 %2688, %v1912_v18   ;;  %v1028_v23 = vmul.f32 %v3314_v6, %v898_v17  ;;  %v1906_v6 = vld [vmem:[%s3826_s11 + $0x8] sm:$0xff]  ;;  %v3441_v8 = vpop.permute.xlu1 %1487 }
 0x1a3   : > { %v1140_v27 = vadd.f32 %v3316_v7, %v1028_v23 }
 0x1a5   : > { %v1156_v30 = vmax.f32 %v1140_v27, 0.0 }
 0x1a7   : > { %1948 = vperm.xlu1 %2684, %v1910_v12   ;;  %v3443_v10 = vpop.permute.xlu2 %1492 }
 0x1a8   : > { %v900_v25 = vpop.f32.mrf.mxu0 }
 0x1a9   : > { %v1029_v20 = vmul.f32 %v3312_v50, %v900_v25  ;;  %1933 = vperm.xlu2 %2688, %v1907_v24   ;;  %v2218_v50 = vld [vmem:[%s3828_s13 + $0x38] sm:$0xff]  ;;  %v3450_v12 = vpop.permute.xlu1 %1806 }
 0x1ab   : > { %v1141_v9 = vadd.f32 %v3331_v15, %v1029_v20  ;;  %v2215_v15 = vld [vmem:[%s3828_s13 + $0x20] sm:$0xff] }
 0x1ad   : > { %v1157_v33 = vmax.f32 %v1141_v9, 0.0 }
 0x1af   : > { %1923 = vperm.xlu1 %2684, %v1905_v29   ;;  %v3407_v38 = vpack.c.bf16 %v1157_v33, %v1156_v30  ;;  %v3455_v27 = vpop.permute.xlu2 %1567 }
 0x1b0   : > { %v903_v41 = vpop.f32.mrf.mxu0 }
 0x1b1   : > { %1928 = vperm.xlu2 %2688, %v1906_v6   ;;  %v1030_v7 = vmul.f32 %v3282_v61, %v903_v41  ;;  %v2214_v61 = vld [vmem:[%s3828_s13 + $0x18] sm:$0xff]  ;;  %v3464_v33 = vpop.permute.xlu1 %1711 }
 0x1b3   : > { %v1142_v45 = vadd.f32 %v3293_v0, %v1030_v7  ;;  %v2212_v0 = vld [vmem:[%s3828_s13 + $0x8] sm:$0xff] }
 0x1b5   : > { %v1158_v43 = vmax.f32 %v1142_v45, 0.0 }
 0x1b7   : > { %2256 = vperm.xlu1 %2684, %v2218_v50  }
 0x1b8   : > { %v905_v42 = vpop.f32.mrf.mxu0 }
 0x1b9   : > { %v1031_v51 = vmul.f32 %v3298_v2, %v905_v42  ;;  %2241 = vperm.xlu2 %2688, %v2215_v15   ;;  %v2325_v2 = vld [vmem:[%s3830_s15] sm:$0x7]  ;;  %v3471_v7 = vpop.permute.xlu1 %1482 }
 0x1bb   : > { %v1143_v31 = vadd.f32 %v3300_v3, %v1031_v51  ;;  %v2603_v51 = vld [vmem:[%s3822_s7] sm:$0xff] }
 0x1bd   : > { %v1159_v46 = vmax.f32 %v1143_v31, 0.0  ;;  %v2616_v31 = vld [vmem:[%s3822_s7 + $0x68] sm:$0xff] }
 0x1bf   : > { %2231 = vperm.xlu1 %2684, %v2213_v52   ;;  %v3425_v54 = vpack.c.bf16 %v1159_v46, %v1158_v43 }
 0x1c0   : > { %v908_v55 = vpop.f32.mrf.mxu0 }
 0x1c1   : > { %2236 = vperm.xlu2 %2688, %v2214_v61   ;;  %v3483_v42 = vpop.permute.xlu1 %1557  ;;  %v2604_v61 = vld [vmem:[%s3822_s7 + $0x8] sm:$0xff] }
 0x1c7   : > { %2226 = vperm.xlu1 %2684, %v2212_v0  }
 0x1c8   : > { %v910_v3 = vpop.f32.mrf.mxu0 }
 0x1c9   : > { %2328 = vperm.xlu2 %2688, %v2325_v2   ;;  %v3504_v52 = vpop.permute.xlu1 %1706 }
 0x1d0   : > { %v913_v59 = vpop.f32.mrf.mxu0 }
 0x1d8   : > { %v915_v34 = vpop.f32.mrf.mxu0 }
 0x1d9   : > { %v1035_v23 = vmul.f32 %v3234_v47, %v915_v34  ;;  %v1032_v47 = vmul.f32 %v3250_v53, %v908_v55  ;;  %v2617_v55 = vld [vmem:[%s3822_s7 + $0x70] sm:$0xff] }
 0x1da   : > { %v2605_v34 = vld [vmem:[%s3822_s7 + $0x10] sm:$0xff] }
 0x1e0   : > { %v918_v62 = vpop.f32.mrf.mxu0 }
 0x1e1   : > { %v1036_v16 = vmul.f32 %v3204_v28, %v918_v62  ;;  %v2618_v62 = vld [vmem:[%s3822_s7 + $0x78] sm:$0xff] }
 0x1e8   : > { %v920_v40 = vpop.f32.mrf.mxu0 }
 0x1e9   : > { %v1037_v13 = vmul.f32 %v3218_v36, %v920_v40  ;;  %v1148_v36 = vadd.f32 %v3216_v35, %v1036_v16  ;;  %v2606_v16 = vld [vmem:[%s3822_s7 + $0x18] sm:$0xff] }
 0x1eb   : > { %v1149_v24 = vadd.f32 %v3220_v37, %v1037_v13  ;;  %v1164_v30 = vmax.f32 %v1148_v36, 0.0 }
 0x1ed   : > { %v1165_v9 = vmax.f32 %v1149_v24, 0.0 }
 0x1ef   : > { %v1174_v35 = vpack.c.bf16 %v1165_v9, %v1164_v30  ;;  %v2608_v9 = vld [vmem:[%s3822_s7 + $0x28] sm:$0xff] }
 0x1f0   : > { %v923_v5 = vpop.f32.mrf.mxu0 }
 0x1f1   : > { %v1038_v11 = vmul.f32 %v3174_v21, %v923_v5  ;;  %v1034_v21 = vmul.f32 %v3236_v48, %v913_v59 }
 0x1f3   : > { %v1150_v18 = vadd.f32 %v3193_v26, %v1038_v11  ;;  %v1033_v26 = vmul.f32 %v3257_v57, %v910_v3  ;;  %v1146_v37 = vadd.f32 %v3239_v49, %v1034_v21  ;;  %v1144_v57 = vadd.f32 %v3274_v32, %v1032_v47 }
 0x1f5   : > { %v1166_v20 = vmax.f32 %v1150_v18, 0.0  ;;  %v1162_v6 = vmax.f32 %v1146_v37, 0.0  ;;  %v1160_v41 = vmax.f32 %v1144_v57, 0.0 }
 0x1f8   : > { %v925_v14 = vpop.f32.mrf.mxu0 }
 0x1f9   : > { %v1039_v17 = vmul.f32 %v3180_v22, %v925_v14  ;;  %v1147_v22 = vadd.f32 %v3252_v58, %v1035_v23  ;;  %v3467_v58 = vpop.permute.xlu2 %1716 }
 0x1fb   : > { %v1151_v25 = vadd.f32 %v3191_v56, %v1039_v17  ;;  %v1145_v56 = vadd.f32 %v3272_v60, %v1033_v26  ;;  %v1163_v48 = vmax.f32 %v1147_v22, 0.0  ;;  %v3469_v60 = vpop.permute.xlu0 %1577 }
 0x1fd   : > { %v1167_v28 = vmax.f32 %v1151_v25, 0.0  ;;  %v1161_v53 = vmax.f32 %v1145_v56, 0.0  ;;  %v1173_v49 = vpack.c.bf16 %v1163_v48, %v1162_v6  ;;  %v2607_v25 = vld [vmem:[%s3822_s7 + $0x20] sm:$0xff]  ;;  %v2609_v56 = vld [vmem:[%s3822_s7 + $0x30] sm:$0xff] }
 0x1ff   : > { %v1175_v29 = vpack.c.bf16 %v1167_v28, %v1166_v20  ;;  %v1172_v50 = vpack.c.bf16 %v1161_v53, %v1160_v41 }
 0x201   : > { %1304 = vmatpush.bf16.msra.mxu1 %v1175_v29  ;;  %2639 = vmatpush.bf16.msra.mxu2 %v1175_v29  ;;  %v3473_v32 = vpop.permute.xlu2 %1791 }
 0x202   : > { %2640 = vmatpush.bf16.msra.mxu3 %v1175_v29 }
 0x203   : > { %v3481_v15 = vpop.permute.xlu0 %1726 }
 0x205   : > { %1305 = vmatpush.bf16.msra.mxu1 %v1174_v35  ;;  %2641 = vmatpush.bf16.msra.mxu2 %v1174_v35 }
 0x206   : > { %2642 = vmatpush.bf16.msra.mxu3 %v1174_v35 }
 0x209   : > { %1306 = vmatpush.bf16.msra.mxu1 %v1173_v49  ;;  %2643 = vmatpush.bf16.msra.mxu2 %v1173_v49  ;;  %v3488_v45 = vpop.permute.xlu2 %1562 }
 0x20a   : > { %2644 = vmatpush.bf16.msra.mxu3 %v1173_v49  ;;  %v2610_v49 = vld [vmem:[%s3822_s7 + $0x38] sm:$0xff] }
 0x20d   : > { %1307 = vmatpush.bf16.msra.mxu1 %v1172_v50  ;;  %2645 = vmatpush.bf16.msra.mxu2 %v1172_v50 }
 0x20e   : > { %2646 = vmatpush.bf16.msra.mxu3 %v1172_v50 }
 0x211   : > { %1308 = vmatpush.bf16.msra.mxu1 %v3425_v54  ;;  %2647 = vmatpush.bf16.msra.mxu2 %v3425_v54  ;;  %v3506_v43 = vpop.permute.xlu2 %1467 }
 0x212   : > { %2648 = vmatpush.bf16.msra.mxu3 %v3425_v54  ;;  %3834 = vst [vmem:[#allocation2_spill] sm:$0xff] %v3506_v43  ;;  %v2615_v54 = vld [vmem:[%s3822_s7 + $0x60] sm:$0xff] }
 0x215   : > { %1309 = vmatpush.bf16.msra.mxu1 %v3407_v38  ;;  %2649 = vmatpush.bf16.msra.mxu2 %v3407_v38 }
 0x216   : > { %2650 = vmatpush.bf16.msra.mxu3 %v3407_v38  ;;  %v2614_v38 = vld [vmem:[%s3822_s7 + $0x58] sm:$0xff] }
 0x219   : > { %1310 = vmatpush.bf16.msra.mxu1 %v3389_v19  ;;  %2651 = vmatpush.bf16.msra.mxu2 %v3389_v19  ;;  %v3521_v0 = vpop.permute.xlu2 %1786 }
 0x21a   : > { %2652 = vmatpush.bf16.msra.mxu3 %v3389_v19  ;;  %v3502_v19 = vpop.permute.xlu0 %1801 }
 0x21d   : > { %1311 = vmatpush.bf16.msra.mxu1 %v3369_v44  ;;  %2653 = vmatpush.bf16.msra.mxu2 %v3369_v44 }
 0x21e   : > { %2654 = vmatpush.bf16.msra.mxu3 %v3369_v44  ;;  %v3516_v44 = vpop.permute.xlu1 %1781 }
 0x220   : > { %1312 = vmatmul.bf16.vlgmr.msra.gmra.mxu1 %v2603_v51  ;;  %1367 = vmatmul.bf16.vlgmr.msra.gmra.mxu2 %v2614_v38 }
 0x221   : > { %1377 = vmatmul.bf16.vlgmr.msra.gmra.mxu3 %v2616_v31  ;;  %v3527_v59 = vpop.permute.xlu2 %1691 }
 0x222   : > { %v3508_v46 = vpop.permute.xlu0 %1572  ;;  %3835 = vst [vmem:[#allocation3_spill] sm:$0xff] %v3527_v59 }
 0x226   : > { %v3525_v3 = vpop.permute.xlu1 %1552 }
 0x229   : > { %v3539_v11 = vpop.permute.xlu2 %1462 }
 0x22a   : > { %v3523_v2 = vpop.permute.xlu0 %1477 }
 0x22e   : > { %v3537_v5 = vpop.permute.xlu1 %1457 }
 0x230   : > { %1317 = vmatmul.bf16.gmra.mxu1 %v2604_v61  ;;  %1372 = vmatmul.bf16.gmra.mxu2 %v2615_v54  ;;  %v2611_v61 = vld [vmem:[%s3822_s7 + $0x40] sm:$0xff] }
 0x231   : > { %1382 = vmatmul.bf16.gmra.mxu3 %v2617_v55  ;;  %v3548_v18 = vpop.permute.xlu2 %1537 }
 0x232   : > { %v3535_v40 = vpop.permute.xlu0 %1796 }
 0x236   : > { %v3543_v14 = vpop.permute.xlu1 %1776 }
 0x239   : > { %v3554_v24 = vpop.permute.xlu2 %1686 }
 0x23a   : > { %v3541_v13 = vpop.permute.xlu0 %1701 }
 0x23b   : > { %3836 = vst [vmem:[#allocation4_spill] sm:$0xff] %v3541_v13 }
 0x23e   : > { %v3552_v23 = vpop.permute.xlu1 %1681 }
 0x240   : > { %1322 = vmatmul.bf16.gmra.mxu1 %v2605_v34 }
 0x241   : > { %1387 = vmatmul.bf16.gmra.mxu3 %v2618_v62  ;;  %v3563_v20 = vpop.permute.xlu2 %1761 }
 0x242   : > { %v3550_v17 = vpop.permute.xlu0 %1472 }
 0x246   : > { %v3561_v36 = vpop.permute.xlu1 %1452 }
 0x249   : > { %v3569_v22 = vpop.permute.xlu2 %1532 }
 0x24a   : > { %v3559_v21 = vpop.permute.xlu0 %1547  ;;  %3839 = vst [vmem:[#allocation7_spill] sm:$0xff] %v3569_v22 }
 0x24e   : > { %v3567_v26 = vpop.permute.xlu1 %1527 }
 0x24f   : > { %3838 = vst [vmem:[#allocation6_spill] sm:$0xff] %v3567_v26  ;;  %v2612_v26 = vld [vmem:[%s3822_s7 + $0x48] sm:$0xff] }
 0x250   : > { %1327 = vmatmul.bf16.gmra.mxu1 %v2606_v16 }
 0x251   : > { %v1438_v37 = vpop.permute.xlu2 %1437 }
 0x252   : > { %v3565_v28 = vpop.permute.xlu0 %1696 }
 0x253   : > { %3837 = vst [vmem:[#allocation5_spill] sm:$0xff] %v3565_v28 }
 0x256   : > { %v3576_v47 = vpop.permute.xlu1 %1676 }
 0x259   : > { %v3585_v35 = vpop.permute.xlu2 %1756 }
 0x25a   : > { %v3574_v29 = vpop.permute.xlu0 %1771  ;;  %3841 = vst [vmem:[#allocation9_spill] sm:$0xff] %v3585_v35 }
 0x25e   : > { %v3583_v48 = vpop.permute.xlu1 %1751 }
 0x25f   : > { %3840 = vst [vmem:[#allocation8_spill] sm:$0xff] %v3583_v48 }
 0x260   : > { %1332 = vmatmul.bf16.gmra.mxu1 %v2607_v25 }
 0x261   : > { %v1662_v53 = vpop.permute.xlu2 %1661 }
 0x262   : > { %v3578_v30 = vpop.permute.xlu0 %1542 }
 0x266   : > { %v3587_v6 = vpop.permute.xlu1 %1522 }
 0x267   : > { %3842 = vst [vmem:[#allocation10_spill] sm:$0xff] %v3587_v6 }
 0x269   : > { %v1433_v51 = vpop.permute.xlu2 %1432 }
 0x26a   : > { %v1448_v57 = vpop.permute.xlu0 %1447 }
 0x26e   : > { %v1428_v50 = vpop.permute.xlu1 %1427 }
 0x270   : > { %1337 = vmatmul.bf16.gmra.mxu1 %v2608_v9 }
 0x271   : > { %v3599_v54 = vpop.permute.xlu2 %1507 }
 0x272   : > { %v3592_v41 = vpop.permute.xlu0 %1766  ;;  %3844 = vst [vmem:[#allocation12_spill] sm:$0xff] %v3599_v54 }
 0x276   : > { %v3594_v31 = vpop.permute.xlu1 %1746 }
 0x277   : > { %3843 = vst [vmem:[#allocation11_spill] sm:$0xff] %v3594_v31 }
 0x279   : > { %v1657_v35 = vpop.permute.xlu2 %1656 }
 0x27a   : > { %v1672_v38 = vpop.permute.xlu0 %1671 }
 0x27e   : > { %v1652_v25 = vpop.permute.xlu1 %1651 }
 0x280   : > { %1342 = vmatmul.bf16.gmra.mxu1 %v2609_v56 }
 0x282   : > { %v1443_v62 = vpop.permute.xlu0 %1442 }
 0x28a   : > { %v3606_v54 = vpop.permute.xlu0 %1517 }
 0x290   : > { %1347 = vmatmul.bf16.gmra.mxu1 %v2610_v49 }
 0x29d   : > { %v1313_v55 = vpop.f32.mrf.mxu1 }
 0x29e   : > { %v1585_v34 = vmul.f32 %v1428_v50, %v1313_v55 }
 0x2a0   : > { %1352 = vmatmul.bf16.gmra.mxu1 %v2611_v61  ;;  %v1809_v56 = vadd.f32 %v1652_v25, %v1585_v34 }
 0x2a2   : > { %v1841_v48 = vmax.f32 %v1809_v56, 0.0 }
 0x2a3   : > { %v1368_v61 = vpop.f32.mrf.mxu2 }
 0x2a4   : > { %v1378_v16 = vpop.f32.mrf.mxu3 }
 0x2a5   : > { %v1315_v9 = vpop.f32.mrf.mxu1 }
 0x2a6   : > { %v1586_v49 = vmul.f32 %v1433_v51, %v1315_v9 }
 0x2a8   : > { %v1810_v22 = vadd.f32 %v1657_v35, %v1586_v49  ;;  %v1667_v35 = vpop.permute.xlu0 %1666 }
 0x2aa   : > { %v1842_v6 = vmax.f32 %v1810_v22, 0.0 }
 0x2ab   : > { %v1370_v13 = vpop.f32.mrf.mxu2 }
 0x2ac   : > { %v1380_v31 = vpop.f32.mrf.mxu3  ;;  %v3604_v59 = vpack.c.bf16 %v1842_v6, %v1841_v48  ;;  %v2613_v48 = vld [vmem:[%s3822_s7 + $0x50] sm:$0xff] }
 0x2ad   : > { %v1318_v50 = vpop.f32.mrf.mxu1 }
 0x2ae   : > { %v1587_v55 = vmul.f32 %v1438_v37, %v1318_v50 }
 0x2b0   : > { %1357 = vmatmul.bf16.gmra.mxu1 %v2612_v26  ;;  %v1811_v51 = vadd.f32 %v1662_v53, %v1587_v55 }
 0x2b2   : > { %v1843_v56 = vmax.f32 %v1811_v51, 0.0 }
 0x2b4   : > { %v1383_v28 = vpop.f32.mrf.mxu3 }
 0x2b5   : > { %v1320_v34 = vpop.f32.mrf.mxu1  ;;  %v1613_v22 = vmul.f32 %v3455_v27, %v1383_v28 }
 0x2b6   : > { %v1588_v25 = vmul.f32 %v1443_v62, %v1320_v34 }
 0x2b7   : > { %v1837_v26 = vadd.f32 %v3473_v32, %v1613_v22 }
 0x2b8   : > { %v1812_v9 = vadd.f32 %v1667_v35, %v1588_v25  ;;  %v1373_v25 = vpop.f32.mrf.mxu2 }
 0x2b9   : > { %v1869_v50 = vmax.f32 %v1837_v26, 0.0  ;;  %v1612_v26 = vmul.f32 %v3488_v45, %v1380_v31 }
 0x2ba   : > { %v1844_v49 = vmax.f32 %v1812_v9, 0.0 }
 0x2bc   : > { %v1385_v43 = vpop.f32.mrf.mxu3  ;;  %v3612_v6 = vpack.c.bf16 %v1844_v49, %v1843_v56 }
 0x2bd   : > { %v1614_v37 = vmul.f32 %v3508_v46, %v1385_v43  ;;  %v1323_v53 = vpop.f32.mrf.mxu1 }
 0x2be   : > { %v1589_v28 = vmul.f32 %v1448_v57, %v1323_v53 }
 0x2bf   : > { %v1838_v62 = vadd.f32 %v3535_v40, %v1614_v37 }
 0x2c0   : > { %1362 = vmatmul.bf16.gmra.mxu1 %v2613_v48  ;;  %v1813_v35 = vadd.f32 %v1672_v38, %v1589_v28  ;;  %v1375_v37 = vpop.f32.mrf.mxu2 }
 0x2c1   : > { %v1870_v27 = vmax.f32 %v1838_v62, 0.0  ;;  %v1836_v62 = vadd.f32 %v3521_v0, %v1612_v26 }
 0x2c2   : > { %v1845_v22 = vmax.f32 %v1813_v35, 0.0 }
 0x2c3   : > { %v1887_v55 = vpack.c.bf16 %v1870_v27, %v1869_v50  ;;  %v1610_v50 = vmul.f32 %v3525_v3, %v1375_v37  ;;  %v1607_v3 = vmul.f32 %v3548_v18, %v1368_v61 }
 0x2c4   : > { %v1388_v34 = vpop.f32.mrf.mxu3 }
 0x2c5   : > { %v1325_v51 = vpop.f32.mrf.mxu1  ;;  %v1615_v32 = vmul.f32 %v3469_v60, %v1388_v34 }
 0x2c6   : > { %v1590_v9 = vmul.f32 %v3561_v36, %v1325_v51  ;;  %v1611_v36 = vmul.f32 %v3483_v42, %v1378_v16  ;;  %v1608_v42 = vmul.f32 %v3578_v30, %v1370_v13  ;;  %v1868_v16 = vmax.f32 %v1836_v62, 0.0 }
 0x2c7   : > { %v1839_v40 = vadd.f32 %v3502_v19, %v1615_v32  ;;  %v1831_v13 = vadd.f32 %v3563_v20, %v1607_v3  ;;  %v2620_v3 = vld [vmem:[%s3825_s10 + $0x4] sm:$0xf0] }
 0x2c8   : > { %v1814_v56 = vadd.f32 %v3576_v47, %v1590_v9  ;;  %v1835_v19 = vadd.f32 %v3516_v44, %v1611_v36  ;;  %v1832_v51 = vadd.f32 %v3592_v41, %v1608_v42 }
 0x2c9   : > { %v1871_v47 = vmax.f32 %v1839_v40, 0.0  ;;  %v1863_v9 = vmax.f32 %v1831_v13, 0.0  ;;  %v3851_v13 = vld [vmem:[#allocation8_spill] sm:$0xff] }
 0x2ca   : > { %v1846_v43 = vmax.f32 %v1814_v56, 0.0  ;;  %v1867_v28 = vmax.f32 %v1835_v19, 0.0  ;;  %v1864_v35 = vmax.f32 %v1832_v51, 0.0 }
 0x2cc   : > { %v1390_v46 = vpop.f32.mrf.mxu3  ;;  %v3620_v49 = vpack.c.bf16 %v1846_v43, %v1845_v22  ;;  %v1884_v18 = vpack.c.bf16 %v1864_v35, %v1863_v9 }
 0x2cd   : > { %v1616_v57 = vmul.f32 %v3437_v1, %v1390_v46  ;;  %v1328_v48 = vpop.f32.mrf.mxu1  ;;  %v1609_v1 = vmul.f32 %v3559_v21, %v1373_v25  ;;  %v1886_v25 = vpack.c.bf16 %v1868_v16, %v1867_v28  ;;  %v1742_v28 = vpop.permute.xlu0 %1741 }
 0x2ce   : > { %v1591_v60 = vmul.f32 %v3537_v5, %v1328_v48  ;;  %v1834_v5 = vadd.f32 %v3543_v14, %v1610_v50 }
 0x2cf   : > { %v1840_v38 = vadd.f32 %v3450_v12, %v1616_v57  ;;  %v1833_v44 = vadd.f32 %v3574_v29, %v1609_v1 }
 0x2d0   : > { %v1815_v12 = vadd.f32 %v3552_v23, %v1591_v60  ;;  %v1866_v23 = vmax.f32 %v1834_v5, 0.0 }
 0x2d1   : > { %v1872_v53 = vmax.f32 %v1840_v38, 0.0  ;;  %v1865_v30 = vmax.f32 %v1833_v44, 0.0 }
 0x2d2   : > { %v1847_v21 = vmax.f32 %v1815_v12, 0.0 }
 0x2d3   : > { %v1888_v27 = vpack.c.bf16 %v1872_v53, %v1871_v47 }
 0x2d5   : > { %2130 = vmatpush.bf16.msrb.mxu3 %v1888_v27  ;;  %v1330_v45 = vpop.f32.mrf.mxu1 }
 0x2d6   : > { %v1592_v31 = vmul.f32 %v3539_v11, %v1330_v45 }
 0x2d8   : > { %v1816_v0 = vadd.f32 %v3554_v24, %v1592_v31  ;;  %v1885_v24 = vpack.c.bf16 %v1866_v23, %v1865_v30  ;;  %v3850_v23 = vld [vmem:[#allocation10_spill] sm:$0xff] }
 0x2d9   : > { %2131 = vmatpush.bf16.msrb.mxu3 %v1887_v55 }
 0x2da   : > { %v1848_v34 = vmax.f32 %v1816_v0, 0.0  ;;  %v2514_v0 = vld [vmem:[%s3825_s10] sm:$0xf] }
 0x2db   : > { %v2515_v44 = vor.u32 %v2620_v3, %v2514_v0  ;;  %v2627_v0 = vld [vmem:[%s3825_s10 + $0x44] sm:$0xf]  ;;  %v2548_v3 = vld [vmem:[%s3825_s10 + $0x48] sm:$0xf0] }
 0x2dc   : > { %v1876_v11 = vpack.c.bf16 %v1848_v34, %v1847_v21  ;;  %v3849_v34 = vld [vmem:[#allocation6_spill] sm:$0xff] }
 0x2dd   : > { %2132 = vmatpush.bf16.msrb.mxu3 %v1886_v25  ;;  %v1333_v14 = vpop.f32.mrf.mxu1 }
 0x2e1   : > { %2133 = vmatpush.bf16.msrb.mxu3 %v1885_v24  ;;  %v2522_v24 = vld [vmem:[%s3825_s10 + $0x10] sm:$0xf] }
 0x2e5   : > { %2134 = vmatpush.bf16.msrb.mxu3 %v1884_v18  ;;  %v1335_v29 = vpop.f32.mrf.mxu1  ;;  %v3853_v18 = vld [vmem:[#allocation11_spill] sm:$0xff] }
 0x2ed   : > { %v1338_v61 = vpop.f32.mrf.mxu1 }
 0x2ee   : > { %v1595_v37 = vmul.f32 %v3523_v2, %v1338_v61  ;;  %v3854_v61 = vld [vmem:[#allocation9_spill] sm:$0xff] }
 0x2f5   : > { %v1340_v55 = vpop.f32.mrf.mxu1 }
 0x2f6   : > { %v1596_v48 = vmul.f32 %v3471_v7, %v1340_v55  ;;  %v3846_v7 = vld [vmem:[#allocation4_spill] sm:$0xff] }
 0x2f7   : > { %v1819_v50 = vadd.f32 %v3846_v7, %v1595_v37  ;;  %v2524_v7 = vld [vmem:[%s3825_s10 + $0x18] sm:$0xf0] }
 0x2f9   : > { %v1851_v45 = vmax.f32 %v1819_v50, 0.0 }
 0x2fd   : > { %v1343_v56 = vpop.f32.mrf.mxu1 }
 0x2fe   : > { %v1597_v46 = vmul.f32 %v3441_v8, %v1343_v56  ;;  %v1820_v8 = vadd.f32 %v3504_v52, %v1596_v48 }
 0x300   : > { %v1821_v36 = vadd.f32 %v3464_v33, %v1597_v46  ;;  %v1852_v2 = vmax.f32 %v1820_v8, 0.0  ;;  %v3848_v33 = vld [vmem:[#allocation3_spill] sm:$0xff] }
 0x302   : > { %v1878_v12 = vpack.c.bf16 %v1852_v2, %v1851_v45  ;;  %v2623_v2 = vld [vmem:[%s3825_s10 + $0x24] sm:$0xf]  ;;  %v2628_v45 = vld [vmem:[%s3825_s10 + $0x44] sm:$0xf0] }
 0x305   : > { %v1345_v32 = vpop.f32.mrf.mxu1 }
 0x306   : > { %v1598_v43 = vmul.f32 %v3443_v10, %v1345_v32  ;;  %v1594_v10 = vmul.f32 %v3550_v17, %v1335_v29  ;;  %v3855_v32 = vld [vmem:[#allocation12_spill] sm:$0xff] }
 0x308   : > { %v1822_v26 = vadd.f32 %v3467_v58, %v1598_v43  ;;  %v1853_v58 = vmax.f32 %v1821_v36, 0.0 }
 0x30a   : > { %v1854_v53 = vmax.f32 %v1822_v26, 0.0 }
 0x30c   : > { %v1879_v19 = vpack.c.bf16 %v1854_v53, %v1853_v58  ;;  %v2538_v58 = vld [vmem:[%s3825_s10 + $0x30] sm:$0xf] }
 0x30d   : > { %v1348_v41 = vpop.f32.mrf.mxu1 }
 0x30e   : > { %v1599_v22 = vmul.f32 %v3433_v39, %v1348_v41 }
 0x310   : > { %v1823_v40 = vadd.f32 %v3439_v4, %v1599_v22 }
 0x312   : > { %v1855_v39 = vmax.f32 %v1823_v40, 0.0 }
 0x315   : > { %v1350_v20 = vpop.f32.mrf.mxu1 }
 0x316   : > { %v1600_v57 = vmul.f32 %v3435_v63, %v1350_v20  ;;  %v3845_v63 = vld [vmem:[#allocation2_spill] sm:$0xff]  ;;  %v1737_v20 = vpop.permute.xlu1 %1736 }
 0x317   : > { %v1593_v62 = vmul.f32 %v3845_v63, %v1333_v14  ;;  %v3852_v14 = vld [vmem:[#allocation7_spill] sm:$0xff] }
 0x318   : > { %v1824_v38 = vadd.f32 %v3481_v15, %v1600_v57  ;;  %v3847_v15 = vld [vmem:[#allocation5_spill] sm:$0xff] }
 0x319   : > { %v1818_v27 = vadd.f32 %v3847_v15, %v1594_v10  ;;  %v1817_v1 = vadd.f32 %v3848_v33, %v1593_v62  ;;  %v2516_v10 = vld [vmem:[%s3825_s10 + $0x8] sm:$0xf0]  ;;  %v2621_v62 = vld [vmem:[%s3825_s10 + $0x14] sm:$0xf]  ;;  %v2626_v15 = vld [vmem:[%s3825_s10 + $0x34] sm:$0xf0] }
 0x31a   : > { %v1856_v47 = vmax.f32 %v1824_v38, 0.0  ;;  %v2527_v50 = vor.u32 %v2621_v62, %v2524_v7 }
 0x31b   : > { %v1850_v17 = vmax.f32 %v1818_v27, 0.0  ;;  %v1849_v31 = vmax.f32 %v1817_v1, 0.0  ;;  %v2539_v27 = vor.u32 %v2626_v15, %v2538_v58  ;;  %v2546_v1 = vld [vmem:[%s3825_s10 + $0x40] sm:$0xf] }
 0x31c   : > { %v1880_v4 = vpack.c.bf16 %v1856_v47, %v1855_v39  ;;  %v2619_v47 = vld [vmem:[%s3825_s10 + $0x4] sm:$0xf] }
 0x31d   : > { %v1353_v60 = vpop.f32.mrf.mxu1  ;;  %v1877_v42 = vpack.c.bf16 %v1850_v17, %v1849_v31  ;;  %v2519_v53 = vor.u32 %v2619_v47, %v2516_v10  ;;  %v2547_v17 = vor.u32 %v2628_v45, %v2546_v1 }
 0x31e   : > { %2081 = vmatpush.bf16.msrb.mxu2 %v1880_v4  ;;  %v2530_v4 = vld [vmem:[%s3825_s10 + $0x20] sm:$0xf] }
 0x322   : > { %2082 = vmatpush.bf16.msrb.mxu2 %v1879_v19  ;;  %v2532_v19 = vld [vmem:[%s3825_s10 + $0x28] sm:$0xf0] }
 0x323   : > { %v2535_v33 = vor.u32 %v2623_v2, %v2532_v19 }
 0x325   : > { %v1355_v52 = vpop.f32.mrf.mxu1 }
 0x326   : > { %2083 = vmatpush.bf16.msrb.mxu2 %v1878_v12  ;;  %v2625_v12 = vld [vmem:[%s3825_s10 + $0x34] sm:$0xf] }
 0x32a   : > { %2084 = vmatpush.bf16.msrb.mxu2 %v1877_v42  ;;  %v2554_v42 = vld [vmem:[%s3825_s10 + $0x50] sm:$0xf] }
 0x32d   : > { %v1358_v16 = vpop.f32.mrf.mxu1 }
 0x32e   : > { %2085 = vmatpush.bf16.msrb.mxu2 %v1876_v11  ;;  %v1603_v11 = vmul.f32 %v3606_v54, %v1358_v16  ;;  %v1601_v54 = vmul.f32 %v3855_v32, %v1353_v60  ;;  %v2624_v60 = vld [vmem:[%s3825_s10 + $0x24] sm:$0xf0]  ;;  %v2630_v16 = vld [vmem:[%s3825_s10 + $0x54] sm:$0xf0] }
 0x32f   : > { %v2531_v63 = vor.u32 %v2624_v60, %v2530_v4 }
 0x330   : > { %v1827_v41 = vadd.f32 %v1742_v28, %v1603_v11  ;;  %v2551_v28 = vor.u32 %v2627_v0, %v2548_v3 }
 0x332   : > { %2086 = vmatpush.bf16.msrb.mxu2 %v3620_v49  ;;  %v1513_v49 = vpop.permute.xlu0 %1512  ;;  %v1859_v38 = vmax.f32 %v1827_v41, 0.0 }
 0x333   : > { %v1602_v9 = vmul.f32 %v1513_v49, %v1355_v52  ;;  %v2540_v52 = vld [vmem:[%s3825_s10 + $0x38] sm:$0xf0] }
 0x334   : > { %v2543_v31 = vor.u32 %v2625_v12, %v2540_v52  ;;  %v2556_v49 = vld [vmem:[%s3825_s10 + $0x58] sm:$0xf0] }
 0x335   : > { %v1360_v5 = vpop.f32.mrf.mxu1  ;;  %v1826_v46 = vadd.f32 %v1737_v20, %v1602_v9 }
 0x336   : > { %2087 = vmatpush.bf16.msrb.mxu2 %v3612_v6  ;;  %v1604_v25 = vmul.f32 %v3850_v23, %v1360_v5  ;;  %v2555_v5 = vor.u32 %v2630_v16, %v2554_v42 }
 0x337   : > { %v1858_v37 = vmax.f32 %v1826_v46, 0.0 }
 0x338   : > { %v1828_v29 = vadd.f32 %v3853_v18, %v1604_v25  ;;  %v2570_v25 = vld [vmem:[%s3825_s10 + $0x70] sm:$0xf] }
 0x33a   : > { %2088 = vmatpush.bf16.msrb.mxu2 %v3604_v59  ;;  %v2622_v59 = vld [vmem:[%s3825_s10 + $0x14] sm:$0xf0]  ;;  %v1860_v40 = vmax.f32 %v1828_v29, 0.0  ;;  %v1732_v48 = vpop.permute.xlu0 %1731  ;;  %v2633_v29 = vld [vmem:[%s3825_s10 + $0x74] sm:$0xf] }
 0x33b   : > { %v2523_v56 = vor.u32 %v2622_v59, %v2522_v24  ;;  %v1825_v26 = vadd.f32 %v1732_v48, %v1601_v54 }
 0x33c   : > { %v1882_v36 = vpack.c.bf16 %v1860_v40, %v1859_v38 }
 0x33d   : > { %v1363_v21 = vpop.f32.mrf.mxu1  ;;  %2089 = vmatmul.bf16.vlgmr.msrb.gmra.mxu2 %v2515_v44  ;;  %v1857_v39 = vmax.f32 %v1825_v26, 0.0  ;;  %v2562_v44 = vld [vmem:[%s3825_s10 + $0x60] sm:$0xf] }
 0x33e   : > { %v1605_v51 = vmul.f32 %v3849_v34, %v1363_v21  ;;  %v2632_v21 = vld [vmem:[%s3825_s10 + $0x64] sm:$0xf0] }
 0x33f   : > { %v1881_v8 = vpack.c.bf16 %v1858_v37, %v1857_v39  ;;  %v2563_v34 = vor.u32 %v2632_v21, %v2562_v44 }
 0x340   : > { %v1829_v30 = vadd.f32 %v3851_v13, %v1605_v51  ;;  %v2629_v51 = vld [vmem:[%s3825_s10 + $0x54] sm:$0xf]  ;;  %v3752_v13 = vpop.permute.xlu2 %1993 }
 0x341   : > { %v2559_v23 = vor.u32 %v2629_v51, %v2556_v49 }
 0x342   : > { %v1861_v22 = vmax.f32 %v1829_v30, 0.0  ;;  %v3754_v30 = vpop.permute.xlu1 %1983  ;;  %v3772_v41 = vpop.permute.xlu0 %1998 }
 0x345   : > { %v1365_v6 = vpop.f32.mrf.mxu1 }
 0x346   : > { %v1606_v35 = vmul.f32 %v3852_v14, %v1365_v6  ;;  %v2634_v6 = vld [vmem:[%s3825_s10 + $0x74] sm:$0xf0]  ;;  %v2631_v14 = vld [vmem:[%s3825_s10 + $0x64] sm:$0xf] }
 0x347   : > { %v2571_v11 = vor.u32 %v2634_v6, %v2570_v25 }
 0x348   : > { %v1830_v55 = vadd.f32 %v3854_v61, %v1606_v35  ;;  %v2564_v35 = vld [vmem:[%s3825_s10 + $0x68] sm:$0xf0]  ;;  %v3762_v59 = vpop.permute.xlu2 %1988  ;;  %v2572_v61 = vld [vmem:[%s3825_s10 + $0x78] sm:$0xf0] }
 0x349   : > { %v2567_v24 = vor.u32 %v2631_v14, %v2564_v35 }
 0x34a   : > { %v1862_v43 = vmax.f32 %v1830_v55, 0.0  ;;  %v3764_v9 = vpop.permute.xlu1 %1978  ;;  %v3774_v46 = vpop.permute.xlu0 %1973 }
 0x34c   : > { %v1883_v57 = vpack.c.bf16 %v1862_v43, %v1861_v22 }
 0x34d   : > { %2094 = vmatmul.bf16.gmra.mxu2 %v2523_v56  ;;  %v2575_v56 = vor.u32 %v2633_v29, %v2572_v61 }
 0x34e   : > { %2135 = vmatpush.bf16.msrb.mxu3 %v1883_v57 }
 0x350   : > { %v1964_v55 = vpop.permute.xlu2 %1963 }
 0x352   : > { %2136 = vmatpush.bf16.msrb.mxu3 %v1882_v36  ;;  %v1954_v32 = vpop.permute.xlu1 %1953  ;;  %v3776_v36 = vpop.permute.xlu0 %1968 }
 0x356   : > { %2137 = vmatpush.bf16.msrb.mxu3 %v1881_v8 }
 0x358   : > { %v1959_v22 = vpop.permute.xlu2 %1958 }
 0x359   : > { %2138 = vmatmul.bf16.vlgmr.msrb.gmra.mxu3 %v2519_v53 }
 0x35a   : > { %v1949_v43 = vpop.permute.xlu1 %1948 }
 0x35d   : > { %2099 = vmatmul.bf16.gmra.mxu2 %v2531_v63  ;;  %v1944_v63 = vpop.permute.xlu0 %1943 }
 0x360   : > { %v1934_v40 = vpop.permute.xlu2 %1933 }
 0x362   : > { %v1924_v48 = vpop.permute.xlu1 %1923 }
 0x368   : > { %v1929_v39 = vpop.permute.xlu2 %1928 }
 0x369   : > { %2143 = vmatmul.bf16.gmra.mxu3 %v2527_v50 }
 0x36d   : > { %2104 = vmatmul.bf16.gmra.mxu2 %v2539_v27  ;;  %v1939_v27 = vpop.permute.xlu0 %1938 }
 0x379   : > { %2148 = vmatmul.bf16.gmra.mxu3 %v2535_v33 }
 0x37d   : > { %2109 = vmatmul.bf16.gmra.mxu2 %v2547_v17 }
 0x389   : > { %2153 = vmatmul.bf16.gmra.mxu3 %v2543_v31 }
 0x38d   : > { %2114 = vmatmul.bf16.gmra.mxu2 %v2555_v5 }
 0x399   : > { %2158 = vmatmul.bf16.gmra.mxu3 %v2551_v28 }
 0x39d   : > { %2119 = vmatmul.bf16.gmra.mxu2 %v2563_v34 }
 0x3a9   : > { %2163 = vmatmul.bf16.gmra.mxu3 %v2559_v23 }
 0x3ad   : > { %2124 = vmatmul.bf16.gmra.mxu2 %v2571_v11 }
 0x3b9   : > { %2168 = vmatmul.bf16.gmra.mxu3 %v2567_v24 }
 0x3c0   : > { %v2090_v18 = vpop.f32.mrf.mxu2 }
 0x3c1   : > { %v2091_v26 = vadd.f32 %v2090_v18, %v1924_v48 }
 0x3c8   : > { %v2092_v54 = vpop.f32.mrf.mxu2 }
 0x3c9   : > { %2173 = vmatmul.bf16.gmra.mxu3 %v2575_v56  ;;  %v2093_v10 = vadd.f32 %v2092_v54, %v1929_v39 }
 0x3d0   : > { %v2095_v20 = vpop.f32.mrf.mxu2 }
 0x3d1   : > { %v2096_v7 = vadd.f32 %v2095_v20, %v1934_v40 }
 0x3d8   : > { %v2097_v57 = vpop.f32.mrf.mxu2 }
 0x3d9   : > { %v2098_v2 = vadd.f32 %v2097_v57, %v1939_v27 }
 0x3dc   : > { %v2139_v38 = vpop.f32.mrf.mxu3 }
 0x3dd   : > { %v2140_v37 = vadd.f32 %v2139_v38, %v2091_v26 }
 0x3df   : > { %v2179_v4 = vmax.f32 %v2140_v37, 0.0 }
 0x3e0   : > { %v2100_v47 = vpop.f32.mrf.mxu2 }
 0x3e1   : > { %v2101_v52 = vadd.f32 %v2100_v47, %v1944_v63 }
 0x3e4   : > { %v2141_v8 = vpop.f32.mrf.mxu3 }
 0x3e5   : > { %v2142_v53 = vadd.f32 %v2141_v8, %v2093_v10 }
 0x3e7   : > { %v2180_v60 = vmax.f32 %v2142_v53, 0.0 }
 0x3e8   : > { %v2102_v50 = vpop.f32.mrf.mxu2 }
 0x3e9   : > { %v3778_v62 = vpack.c.bf16 %v2180_v60, %v2179_v4  ;;  %v2103_v5 = vadd.f32 %v2102_v50, %v1949_v43 }
 0x3ec   : > { %v2144_v58 = vpop.f32.mrf.mxu3 }
 0x3ed   : > { %v2145_v15 = vadd.f32 %v2144_v58, %v2096_v7 }
 0x3ef   : > { %v2181_v45 = vmax.f32 %v2145_v15, 0.0 }
 0x3f0   : > { %v2105_v1 = vpop.f32.mrf.mxu2 }
 0x3f1   : > { %v2106_v51 = vadd.f32 %v2105_v1, %v1954_v32 }
 0x3f4   : > { %v2146_v19 = vpop.f32.mrf.mxu3 }
 0x3f5   : > { %v2147_v33 = vadd.f32 %v2146_v19, %v2098_v2 }
 0x3f7   : > { %v2182_v17 = vmax.f32 %v2147_v33, 0.0 }
 0x3f8   : > { %v2107_v16 = vpop.f32.mrf.mxu2 }
 0x3f9   : > { %v3780_v12 = vpack.c.bf16 %v2182_v17, %v2181_v45  ;;  %v2108_v25 = vadd.f32 %v2107_v16, %v1959_v22  ;;  %v2637_v16 = vld [vmem:[%s3827_s12 + $0x10] sm:$0xff] }
 0x3fc   : > { %v2149_v31 = vpop.f32.mrf.mxu3 }
 0x3fd   : > { %v2150_v42 = vadd.f32 %v2149_v31, %v2101_v52 }
 0x3ff   : > { %v2183_v28 = vmax.f32 %v2150_v42, 0.0 }
 0x400   : > { %v2110_v34 = vpop.f32.mrf.mxu2 }
 0x401   : > { %v2111_v29 = vadd.f32 %v2110_v34, %v1964_v55  ;;  %v2252_v34 = vpop.permute.xlu0 %2251 }
 0x404   : > { %v2151_v0 = vpop.f32.mrf.mxu3 }
 0x405   : > { %v2152_v3 = vadd.f32 %v2151_v0, %v2103_v5 }
 0x407   : > { %v2184_v44 = vmax.f32 %v2152_v3, 0.0 }
 0x408   : > { %v2112_v6 = vpop.f32.mrf.mxu2 }
 0x409   : > { %v2197_v21 = vpack.c.bf16 %v2184_v44, %v2183_v28 }
 0x40c   : > { %v2154_v49 = vpop.f32.mrf.mxu3 }
 0x40d   : > { %v2155_v23 = vadd.f32 %v2154_v49, %v2106_v51  ;;  %v2242_v49 = vpop.permute.xlu2 %2241 }
 0x40f   : > { %v2185_v35 = vmax.f32 %v2155_v23, 0.0 }
 0x410   : > { %v2115_v54 = vpop.f32.mrf.mxu2 }
 0x411   : > { %v2116_v27 = vadd.f32 %v2115_v54, %v3774_v46  ;;  %v2635_v46 = vld [vmem:[%s3827_s12] sm:$0xff] }
 0x414   : > { %v2156_v11 = vpop.f32.mrf.mxu3 }
 0x415   : > { %v2157_v14 = vadd.f32 %v2156_v11, %v2108_v25 }
 0x417   : > { %v2186_v24 = vmax.f32 %v2157_v14, 0.0 }
 0x418   : > { %v2117_v20 = vpop.f32.mrf.mxu2 }
 0x419   : > { %v2198_v18 = vpack.c.bf16 %v2186_v24, %v2185_v35  ;;  %v2118_v7 = vadd.f32 %v2117_v20, %v3764_v9 }
 0x41c   : > { %v2159_v61 = vpop.f32.mrf.mxu3 }
 0x41d   : > { %v2160_v56 = vadd.f32 %v2159_v61, %v2111_v29  ;;  %v2237_v61 = vpop.permute.xlu2 %2236 }
 0x41f   : > { %v2187_v31 = vmax.f32 %v2160_v56, 0.0 }
 0x420   : > { %v2120_v57 = vpop.f32.mrf.mxu2 }
 0x421   : > { %v2121_v4 = vadd.f32 %v2120_v57, %v3754_v30 }
 0x424   : > { %v2161_v43 = vpop.f32.mrf.mxu3 }
 0x428   : > { %v2122_v26 = vpop.f32.mrf.mxu2 }
 0x429   : > { %v2123_v10 = vadd.f32 %v2122_v26, %v3762_v59  ;;  %v2113_v59 = vadd.f32 %v2112_v6, %v3776_v36  ;;  %v2636_v36 = vld [vmem:[%s3827_s12 + $0x8] sm:$0xff]  ;;  %v2247_v6 = vpop.permute.xlu0 %2246 }
 0x42b   : > { %v2162_v1 = vadd.f32 %v2161_v43, %v2113_v59 }
 0x42c   : > { %v2164_v40 = vpop.f32.mrf.mxu3 }
 0x42d   : > { %v2165_v33 = vadd.f32 %v2164_v40, %v2116_v27  ;;  %v2188_v52 = vmax.f32 %v2162_v1, 0.0 }
 0x42f   : > { %v2189_v17 = vmax.f32 %v2165_v33, 0.0  ;;  %v2199_v42 = vpack.c.bf16 %v2188_v52, %v2187_v31 }
 0x430   : > { %v2125_v37 = vpop.f32.mrf.mxu2 }
 0x431   : > { %v2126_v47 = vadd.f32 %v2125_v37, %v3752_v13 }
 0x434   : > { %v2166_v48 = vpop.f32.mrf.mxu3 }
 0x435   : > { %v2167_v2 = vadd.f32 %v2166_v48, %v2118_v7 }
 0x437   : > { %v2190_v45 = vmax.f32 %v2167_v2, 0.0 }
 0x438   : > { %v2127_v39 = vpop.f32.mrf.mxu2 }
 0x439   : > { %v2128_v55 = vadd.f32 %v2127_v39, %v3772_v41  ;;  %v2200_v9 = vpack.c.bf16 %v2190_v45, %v2189_v17 }
 0x43c   : > { %v2169_v32 = vpop.f32.mrf.mxu3 }
 0x43d   : > { %v2170_v50 = vadd.f32 %v2169_v32, %v2121_v4 }
 0x43f   : > { %v2191_v41 = vmax.f32 %v2170_v50, 0.0 }
 0x444   : > { %v2171_v38 = vpop.f32.mrf.mxu3 }
 0x445   : > { %v2172_v60 = vadd.f32 %v2171_v38, %v2123_v10  ;;  %v2222_v38 = vpop.permute.xlu0 %2221 }
 0x447   : > { %v2192_v19 = vmax.f32 %v2172_v60, 0.0 }
 0x449   : > { %v2201_v30 = vpack.c.bf16 %v2192_v19, %v2191_v41 }
 0x44c   : > { %v2174_v22 = vpop.f32.mrf.mxu3 }
 0x44d   : > { %v2175_v8 = vadd.f32 %v2174_v22, %v2126_v47 }
 0x44f   : > { %v2193_v58 = vmax.f32 %v2175_v8, 0.0  ;;  %v2324_v8 = vld [vmem:[%s3829_s14] sm:$0x3] }
 0x454   : > { %v2176_v53 = vpop.f32.mrf.mxu3 }
 0x455   : > { %v2177_v63 = vadd.f32 %v2176_v53, %v2128_v55  ;;  %v2329_v53 = vpop.permute.xlu2 %2328 }
 0x457   : > { %v2194_v15 = vmax.f32 %v2177_v63, 0.0 }
 0x459   : > { %v2202_v13 = vpack.c.bf16 %v2194_v15, %v2193_v58 }
 0x45b   : > { %2283 = vmatpush.bf16.msrb.mxu0 %v2202_v13 }
 0x45f   : > { %2284 = vmatpush.bf16.msrb.mxu0 %v2201_v30 }
 0x463   : > { %2285 = vmatpush.bf16.msrb.mxu0 %v2200_v9 }
 0x467   : > { %2286 = vmatpush.bf16.msrb.mxu0 %v2199_v42 }
 0x46b   : > { %2287 = vmatpush.bf16.msrb.mxu0 %v2198_v18 }
 0x46f   : > { %2288 = vmatpush.bf16.msrb.mxu0 %v2197_v21  ;;  %v2257_v21 = vpop.permute.xlu1 %2256 }
 0x473   : > { %2289 = vmatpush.bf16.msrb.mxu0 %v3780_v12  ;;  %v2638_v12 = vld [vmem:[%s3827_s12 + $0x18] sm:$0xff] }
 0x477   : > { %2290 = vmatpush.bf16.msrb.mxu0 %v3778_v62  ;;  %v2232_v23 = vpop.permute.xlu1 %2231 }
 0x47a   : > { %2291 = vmatmul.bf16.vlgmr.msrb.gmra.mxu0 %v2635_v46 }
 0x47f   : > { %v2227_v57 = vpop.permute.xlu1 %2226 }
 0x48a   : > { %2296 = vmatmul.bf16.gmra.mxu0 %v2636_v36 }
 0x49a   : > { %2301 = vmatmul.bf16.gmra.mxu0 %v2637_v16 }
 0x4aa   : > { %2306 = vmatmul.bf16.gmra.mxu0 %v2638_v12 }
 0x4f7   : > { %v2292_v5 = vpop.f32.mrf.mxu0 }
 0x4f8   : > { %v2293_v37 = vadd.f32 %v2292_v5, %v2222_v38 }
 0x4fa   : > { %v2312_v10 = vmax.f32 %v2293_v37, 0.0 }
 0x4ff   : > { %v2294_v0 = vpop.f32.mrf.mxu0 }
 0x500   : > { %v2295_v48 = vadd.f32 %v2294_v0, %v2227_v57 }
 0x502   : > { %v2313_v39 = vmax.f32 %v2295_v48, 0.0 }
 0x504   : > { %v2320_v55 = vpack.c.bf16 %v2313_v39, %v2312_v10 }
 0x507   : > { %v2297_v3 = vpop.f32.mrf.mxu0 }
 0x508   : > { %v2298_v20 = vadd.f32 %v2297_v3, %v2232_v23 }
 0x50a   : > { %v2314_v22 = vmax.f32 %v2298_v20, 0.0 }
 0x50f   : > { %v2299_v62 = vpop.f32.mrf.mxu0 }
 0x510   : > { %v2300_v56 = vadd.f32 %v2299_v62, %v2237_v61 }
 0x512   : > { %v2315_v26 = vmax.f32 %v2300_v56, 0.0 }
 0x514   : > { %v2321_v47 = vpack.c.bf16 %v2315_v26, %v2314_v22 }
 0x517   : > { %v2302_v28 = vpop.f32.mrf.mxu0 }
 0x518   : > { %v2303_v24 = vadd.f32 %v2302_v28, %v2242_v49 }
 0x51a   : > { %v2316_v40 = vmax.f32 %v2303_v24, 0.0 }
 0x51f   : > { %v2304_v44 = vpop.f32.mrf.mxu0 }
 0x520   : > { %v2305_v14 = vadd.f32 %v2304_v44, %v2247_v6 }
 0x522   : > { %v2317_v54 = vmax.f32 %v2305_v14, 0.0 }
 0x524   : > { %v2322_v32 = vpack.c.bf16 %v2317_v54, %v2316_v40 }
 0x527   : > { %v2307_v51 = vpop.f32.mrf.mxu0 }
 0x528   : > { %v2308_v25 = vadd.f32 %v2307_v51, %v2252_v34 }
 0x52a   : > { %v2318_v18 = vmax.f32 %v2308_v25, 0.0 }
 0x52f   : > { %v2309_v11 = vpop.f32.mrf.mxu0 }
 0x530   : > { %v2310_v35 = vadd.f32 %v2309_v11, %v2257_v21 }
 0x532   : > { %v2319_v29 = vmax.f32 %v2310_v35, 0.0 }
 0x534   : > { %v2323_v43 = vpack.c.bf16 %v2319_v29, %v2318_v18 }
 0x536   : > { %2338 = vmatpush.bf16.msra.mxu2 %v2323_v43 }
 0x53a   : > { %2339 = vmatpush.bf16.msra.mxu2 %v2322_v32 }
 0x53e   : > { %2340 = vmatpush.bf16.msra.mxu2 %v2321_v47 }
 0x542   : > { %2341 = vmatpush.bf16.msra.mxu2 %v2320_v55 }
 0x545   : > { %2592 = vmatmul.msk.bf16.vlgmr.msra.gmra.mxu2 %vm854_vm0, %v2324_v8 }
 0x5c8   : > { %v2343_v4 = vpop.f32.mrf.mxu2 }
 0x5c9   : > { %v2344_v60 = vadd.f32 %v2343_v4, %v2329_v53 }
 0x5cb   : > { %2347 = vst [vmem:[%s516_s28] sm:$0x7] %v2344_v60 }
 0x5d0   : > { %v2345_v63 = vpop.f32.mrf.mxu2 }
 0x5d1 PF: > { %s26_s21 = sadd.s32 1, %s2695_s21  }
 0x5d2   : > { %p23_p4 = scmp.ge.s32.totalorder %s26_s21, 4  }
 0x5d4   :  { %25 = sbr.rel (!%p23_p4) target bundleno = 2 (0x2), region = 114 }

</bundles_post_ra>
